<compile_context>
chip_gen: v7x
topology: tpu7x:2x2x1
jax: 0.10.0
libtpu: 0.0.40
codegen_flags: <defaults>
</compile_context>

<pallas_src>
import jax
import jax.numpy as jnp
from jax import lax
from jax.experimental import pallas as pl
from jax.experimental.pallas import tpu as pltpu

NC = 1
NDF = 32
LEAKY_ALPHA = 0.2
BN_EPS = 1e-5
K = 4  # conv kernel size (all layers)


# ------------------------------ fused kernel -------------------------------

def _disc_fused_kernel(cols1_ref, w1_ref, w2_ref, g2_ref, b2_ref,
                       w3_ref, g3_ref, b3_ref, w4_ref, o_ref):
    B = cols1_ref.shape[0] // 256
    B16 = B * 16

    def leaky(y):
        return jnp.maximum(y, LEAKY_ALPHA * y)

    def bn_leaky(y, g, b):
        # Two-pass BatchNorm (biased variance, PyTorch training mode), f32.
        m = y.shape[0]
        mean = jnp.sum(y, axis=0, keepdims=True) * (1.0 / m)
        c = y - mean
        var = jnp.sum(c * c, axis=0, keepdims=True) * (1.0 / m)
        return leaky(c * (lax.rsqrt(var + BN_EPS) * g) + b)

    def tap_block(planes, s_h, s_w, q):
        """One conv tap as a shifted plane view.

        planes[a][b]: (B, 4, 4, C) plane holding activations whose spatial
        coords are (q*i + a, q*j + b).  The tap needs coords (q*u + s_h,
        q*v + s_w) with s in [-1, q]; out-of-range rows/cols are conv padding
        (zeros), realised as a one-row/col shift against a zero slab.
        Returns the (B16, C) patch column block (rows ordered (b, u, v)).
        """
        def pick(s):
            if s == -1:
                return q - 1, 1          # read row u-1  -> prepend zero row
            if s == q:
                return 0, -1             # read row u+1  -> append zero row
            return s, 0
        qh, dh = pick(s_h)
        qw, dw = pick(s_w)
        blk = planes[qh][qw]
        if dh:
            z = jnp.zeros_like(blk[:, :1])
            blk = (jnp.concatenate([z, blk[:, :-1]], axis=1) if dh > 0 else
                   jnp.concatenate([blk[:, 1:], z], axis=1))
        if dw:
            z = jnp.zeros_like(blk[:, :, :1])
            blk = (jnp.concatenate([z, blk[:, :, :-1]], axis=2) if dw > 0 else
                   jnp.concatenate([blk[:, :, 1:], z], axis=2))
        return blk.reshape(B16, blk.shape[-1])

    # ---- layer 1: Conv(1->32, 4, 2, 1) + LeakyReLU  -- one MXU matmul
    y1 = jnp.dot(cols1_ref[...], w1_ref[...],
                 preferred_element_type=jnp.float32)          # (B*256, 32) f32
    a1 = leaky(y1).astype(jnp.bfloat16)
    # a1 rows are ordered (h1%4, w1%4, b, h1//4, w1//4): slice the 16 planes.
    planes1 = [[a1[(qh * 4 + qw) * B16:(qh * 4 + qw + 1) * B16]
                .reshape(B, 4, 4, NDF) for qw in range(4)] for qh in range(4)]

    # ---- layer 2: Conv(32->64, 4, 2, 1) + BN + LeakyReLU -- one matmul, K=512
    p2_parts = []
    for ph in range(2):                  # output-row parity  (h2 = 2u + ph)
        for pw in range(2):              # output-col parity  (w2 = 2v + pw)
            taps = [tap_block(planes1, 2 * ph + ki - 1, 2 * pw + kj - 1, 4)
                    for ki in range(K) for kj in range(K)]
            p2_parts.append(jnp.concatenate(taps, axis=-1))   # (B16, 512)
    p2 = jnp.concatenate(p2_parts, axis=0)                    # (B*64, 512)
    y2 = jnp.dot(p2, w2_ref[...], preferred_element_type=jnp.float32)
    a2 = bn_leaky(y2, g2_ref[...], b2_ref[...]).astype(jnp.bfloat16)
    # a2 rows are ordered (h2%2, w2%2, b, h2//2, w2//2): slice the 4 planes.
    planes2 = [[a2[(ph * 2 + pw) * B16:(ph * 2 + pw + 1) * B16]
                .reshape(B, 4, 4, 2 * NDF) for pw in range(2)]
               for ph in range(2)]

    # ---- layer 3: Conv(64->128, 4, 2, 1) + BN + LeakyReLU -- one matmul, K=1024
    taps3 = [tap_block(planes2, ki - 1, kj - 1, 2)
             for ki in range(K) for kj in range(K)]
    p3 = jnp.concatenate(taps3, axis=-1)                      # (B*16, 1024)
    y3 = jnp.dot(p3, w3_ref[...], preferred_element_type=jnp.float32)
    a3 = bn_leaky(y3, g3_ref[...], b3_ref[...])               # (B*16, 128) f32
    # a3 rows are ordered (b, h3, w3).

    # ---- layer 4: Conv(128->1, 4, 1, 0) == full (h3, w3, c) weighted reduce
    prod = a3.reshape(B, 16, 4 * NDF) * w4_ref[...][None]     # (B, 16, 128)
    o_ref[...] = jnp.sum(jnp.sum(prod, axis=2), axis=1, keepdims=True)


# ------------------------------- JAX wrapper --------------------------------

def discriminator_forward(x, params):
    B, C, H, W = x.shape
    assert C == NC and H == 32 and W == 32, (B, C, H, W)

    # Layer-1 im2col on the raw input (one small stream; same jit region).
    # Rows are emitted in (h1%4, w1%4)-plane-major order so the kernel can
    # build layer-2 patches with plain contiguous slices.
    xp = jnp.pad(x[:, 0], ((0, 0), (1, 1), (1, 1)))                    # (B,34,34)
    taps = [xp[:, ki:ki + 32:2, kj:kj + 32:2]
            for ki in range(K) for kj in range(K)]
    cols = jnp.stack(taps, axis=-1)                                    # (B,16,16,16)
    cols = cols.reshape(B, 4, 4, 4, 4, K * K).transpose(2, 4, 0, 1, 3, 5)
    cols1 = cols.reshape(B * 256, K * K).astype(jnp.bfloat16)          # (B*256,16)

    # Conv weights reshaped so feature order matches the patch columns (ki,kj,cin).
    w1m = params["w1"].transpose(2, 3, 1, 0).reshape(K * K, NDF).astype(jnp.bfloat16)
    w2m = params["w2"].transpose(2, 3, 1, 0).reshape(K * K * NDF, 2 * NDF).astype(jnp.bfloat16)
    w3m = params["w3"].transpose(2, 3, 1, 0).reshape(K * K * 2 * NDF, 4 * NDF).astype(jnp.bfloat16)
    # Final conv weight indexed (h3*4 + w3, c) to match the layer-3 row order.
    w4m = params["w4"][0].transpose(1, 2, 0).reshape(K * K, 4 * NDF)   # (16,128) f32

    operands = (cols1, w1m, w2m, params["g2"], params["b2"],
                w3m, params["g3"], params["b3"], w4m)

    def full(shape):
        n = len(shape)
        return pl.BlockSpec(shape, lambda *_, n=n: (0,) * n)

    flops = (2 * B * 256 * K * K * NDF
             + 2 * B * 64 * (K * K * NDF) * (2 * NDF)
             + 2 * B * 16 * (K * K * 2 * NDF) * (4 * NDF)
             + 2 * B * 16 * (4 * NDF))
    bytes_accessed = sum(int(a.size) * a.dtype.itemsize for a in operands) + B * 4

    out = pl.pallas_call(
        _disc_fused_kernel,
        out_shape=jax.ShapeDtypeStruct((B, 1), jnp.float32),
        grid=(1,),
        in_specs=[full(a.shape) for a in operands],
        out_specs=full((B, 1)),
        compiler_params=pltpu.CompilerParams(
            dimension_semantics=("arbitrary",)),
        cost_estimate=pl.CostEstimate(flops=int(flops),
                                      transcendentals=6 * NDF,
                                      bytes_accessed=int(bytes_accessed)),
    )(*operands)

    return out.reshape(B, 1, 1, 1)


# ----------------------- pure-JAX reference (self-check) --------------------

def _reference_forward(x, params):
    def conv(h, w, stride, pad):
        return lax.conv_general_dilated(
            h, w, (stride, stride), [(pad, pad), (pad, pad)],
            dimension_numbers=("NCHW", "OIHW", "NCHW"))

    def bn(h, g, b):
        mean = jnp.mean(h, axis=(0, 2, 3), keepdims=True)
        var = jnp.mean(jnp.square(h - mean), axis=(0, 2, 3), keepdims=True)
        hn = (h - mean) * lax.rsqrt(var + BN_EPS)
        return hn * g.reshape(1, -1, 1, 1) + b.reshape(1, -1, 1, 1)

    def lrelu(h):
        return jnp.maximum(h, LEAKY_ALPHA * h)

    h = lrelu(conv(x, params["w1"], 2, 1))
    h = lrelu(bn(conv(h, params["w2"], 2, 1), params["g2"], params["b2"]))
    h = lrelu(bn(conv(h, params["w3"], 2, 1), params["g3"], params["b3"]))
    return conv(h, params["w4"], 1, 0)


def init_params(key):
    k1, k2, k3, k4 = jax.random.split(key, 4)
    std = 0.02  # DCGAN-style deterministic init
    return {
        "w1": std * jax.random.normal(k1, (NDF, NC, 4, 4), jnp.float32),
        "w2": std * jax.random.normal(k2, (NDF * 2, NDF, 4, 4), jnp.float32),
        "g2": jnp.ones((1, NDF * 2), jnp.float32),
        "b2": jnp.zeros((1, NDF * 2), jnp.float32),
        "w3": std * jax.random.normal(k3, (NDF * 4, NDF * 2, 4, 4), jnp.float32),
        "g3": jnp.ones((1, NDF * 4), jnp.float32),
        "b3": jnp.zeros((1, NDF * 4), jnp.float32),
        "w4": std * jax.random.normal(k4, (1, NDF * 4, 4, 4), jnp.float32),
    }


if __name__ == "__main__":
    key = jax.random.PRNGKey(0)
    pkey, xkey = jax.random.split(key)
    params = init_params(pkey)
    # 32x32 input so the 2x/2x/2x/4x downsampling chain ends at 1x1.
    x = jax.random.normal(xkey, (2, NC, 32, 32), jnp.float32)

    out = jax.jit(discriminator_forward)(x, params)
    out = jax.block_until_ready(out)
    assert out.shape == (2, 1, 1, 1), out.shape
    assert out.dtype == jnp.float32

    ref = jax.jit(_reference_forward)(x, params)
    err = float(jnp.max(jnp.abs(out - ref)))
    assert err < 1e-1, err  # bf16 MXU inputs / bf16 inter-layer activations vs f32 reference

    print("KERNEL_OK")
</pallas_src>

<mosaic_0001>
module attributes {stable_mosaic.version = 11 : i64} {
  func.func @_disc_fused_kernel(%arg0: i32, %arg1: memref<512x16xbf16, #tpu.memory_space<vmem>>, %arg2: memref<16x32xbf16, #tpu.memory_space<vmem>>, %arg3: memref<512x64xbf16, #tpu.memory_space<vmem>>, %arg4: memref<1x64xf32, #tpu.memory_space<vmem>>, %arg5: memref<1x64xf32, #tpu.memory_space<vmem>>, %arg6: memref<1024x128xbf16, #tpu.memory_space<vmem>>, %arg7: memref<1x128xf32, #tpu.memory_space<vmem>>, %arg8: memref<1x128xf32, #tpu.memory_space<vmem>>, %arg9: memref<16x128xf32, #tpu.memory_space<vmem>>, %arg10: memref<2x1xf32, #tpu.memory_space<vmem>>) attributes {dimension_semantics = [#tpu.dimension_semantics<arbitrary>], iteration_bounds = array<i64: 1>, scalar_prefetch = 0 : i64, scratch_operands = 0 : i64, tpu.core_type = #tpu.core_type<tc>, window_params = [{pipeline_mode = #tpu.pipeline_mode<synchronous>, transform_indices = @transform_0, window_bounds = array<i64: 512, 16>}, {pipeline_mode = #tpu.pipeline_mode<synchronous>, transform_indices = @transform_1, window_bounds = array<i64: 16, 32>}, {pipeline_mode = #tpu.pipeline_mode<synchronous>, transform_indices = @transform_2, window_bounds = array<i64: 512, 64>}, {pipeline_mode = #tpu.pipeline_mode<synchronous>, transform_indices = @transform_3, window_bounds = array<i64: 1, 64>}, {pipeline_mode = #tpu.pipeline_mode<synchronous>, transform_indices = @transform_4, window_bounds = array<i64: 1, 64>}, {pipeline_mode = #tpu.pipeline_mode<synchronous>, transform_indices = @transform_5, window_bounds = array<i64: 1024, 128>}, {pipeline_mode = #tpu.pipeline_mode<synchronous>, transform_indices = @transform_6, window_bounds = array<i64: 1, 128>}, {pipeline_mode = #tpu.pipeline_mode<synchronous>, transform_indices = @transform_7, window_bounds = array<i64: 1, 128>}, {pipeline_mode = #tpu.pipeline_mode<synchronous>, transform_indices = @transform_8, window_bounds = array<i64: 16, 128>}, {pipeline_mode = #tpu.pipeline_mode<synchronous>, transform_indices = @transform_9, window_bounds = array<i64: 2, 1>}]} {
    %c0 = arith.constant 0 : index
    %c0_0 = arith.constant 0 : index
    %0 = vector.load %arg1[%c0, %c0_0] : memref<512x16xbf16, #tpu.memory_space<vmem>>, vector<512x16xbf16>
    %c0_1 = arith.constant 0 : index
    %c0_2 = arith.constant 0 : index
    %1 = vector.load %arg2[%c0_1, %c0_2] : memref<16x32xbf16, #tpu.memory_space<vmem>>, vector<16x32xbf16>
    %cst = arith.constant dense<0.000000e+00> : vector<512x32xf32>
    %2 = tpu.matmul %0, %1, %cst {dimension_numbers = #tpu.dot_dimension_numbers<[1], [0], [0], [1], [0, 0, 1, 1], [], []>} : vector<512x16xbf16>, vector<16x32xbf16>, vector<512x32xf32> -> vector<512x32xf32>
    %cst_3 = arith.constant 2.000000e-01 : f32
    %3 = vector.broadcast %cst_3 : f32 to vector<512x32xf32>
    %4 = arith.mulf %3, %2 : vector<512x32xf32>
    %5 = arith.maximumf %2, %4 : vector<512x32xf32>
    %6 = arith.truncf %5 : vector<512x32xf32> to vector<512x32xbf16>
    %7 = vector.extract_strided_slice %6 {offsets = [0, 0], sizes = [32, 32], strides = [1, 1]} : vector<512x32xbf16> to vector<32x32xbf16>
    %8 = vector.shape_cast %7 : vector<32x32xbf16> to vector<2x4x4x32xbf16>
    %9 = vector.extract_strided_slice %6 {offsets = [32, 0], sizes = [32, 32], strides = [1, 1]} : vector<512x32xbf16> to vector<32x32xbf16>
    %10 = vector.shape_cast %9 : vector<32x32xbf16> to vector<2x4x4x32xbf16>
    %11 = vector.extract_strided_slice %6 {offsets = [64, 0], sizes = [32, 32], strides = [1, 1]} : vector<512x32xbf16> to vector<32x32xbf16>
    %12 = vector.shape_cast %11 : vector<32x32xbf16> to vector<2x4x4x32xbf16>
    %13 = vector.extract_strided_slice %6 {offsets = [96, 0], sizes = [32, 32], strides = [1, 1]} : vector<512x32xbf16> to vector<32x32xbf16>
    %14 = vector.shape_cast %13 : vector<32x32xbf16> to vector<2x4x4x32xbf16>
    %15 = vector.extract_strided_slice %6 {offsets = [128, 0], sizes = [32, 32], strides = [1, 1]} : vector<512x32xbf16> to vector<32x32xbf16>
    %16 = vector.shape_cast %15 : vector<32x32xbf16> to vector<2x4x4x32xbf16>
    %17 = vector.extract_strided_slice %6 {offsets = [160, 0], sizes = [32, 32], strides = [1, 1]} : vector<512x32xbf16> to vector<32x32xbf16>
    %18 = vector.shape_cast %17 : vector<32x32xbf16> to vector<2x4x4x32xbf16>
    %19 = vector.extract_strided_slice %6 {offsets = [192, 0], sizes = [32, 32], strides = [1, 1]} : vector<512x32xbf16> to vector<32x32xbf16>
    %20 = vector.shape_cast %19 : vector<32x32xbf16> to vector<2x4x4x32xbf16>
    %21 = vector.extract_strided_slice %6 {offsets = [224, 0], sizes = [32, 32], strides = [1, 1]} : vector<512x32xbf16> to vector<32x32xbf16>
    %22 = vector.shape_cast %21 : vector<32x32xbf16> to vector<2x4x4x32xbf16>
    %23 = vector.extract_strided_slice %6 {offsets = [256, 0], sizes = [32, 32], strides = [1, 1]} : vector<512x32xbf16> to vector<32x32xbf16>
    %24 = vector.shape_cast %23 : vector<32x32xbf16> to vector<2x4x4x32xbf16>
    %25 = vector.extract_strided_slice %6 {offsets = [288, 0], sizes = [32, 32], strides = [1, 1]} : vector<512x32xbf16> to vector<32x32xbf16>
    %26 = vector.shape_cast %25 : vector<32x32xbf16> to vector<2x4x4x32xbf16>
    %27 = vector.extract_strided_slice %6 {offsets = [320, 0], sizes = [32, 32], strides = [1, 1]} : vector<512x32xbf16> to vector<32x32xbf16>
    %28 = vector.shape_cast %27 : vector<32x32xbf16> to vector<2x4x4x32xbf16>
    %29 = vector.extract_strided_slice %6 {offsets = [352, 0], sizes = [32, 32], strides = [1, 1]} : vector<512x32xbf16> to vector<32x32xbf16>
    %30 = vector.shape_cast %29 : vector<32x32xbf16> to vector<2x4x4x32xbf16>
    %31 = vector.extract_strided_slice %6 {offsets = [384, 0], sizes = [32, 32], strides = [1, 1]} : vector<512x32xbf16> to vector<32x32xbf16>
    %32 = vector.shape_cast %31 : vector<32x32xbf16> to vector<2x4x4x32xbf16>
    %33 = vector.extract_strided_slice %6 {offsets = [416, 0], sizes = [32, 32], strides = [1, 1]} : vector<512x32xbf16> to vector<32x32xbf16>
    %34 = vector.shape_cast %33 : vector<32x32xbf16> to vector<2x4x4x32xbf16>
    %35 = vector.extract_strided_slice %6 {offsets = [448, 0], sizes = [32, 32], strides = [1, 1]} : vector<512x32xbf16> to vector<32x32xbf16>
    %36 = vector.shape_cast %35 : vector<32x32xbf16> to vector<2x4x4x32xbf16>
    %37 = vector.extract_strided_slice %6 {offsets = [480, 0], sizes = [32, 32], strides = [1, 1]} : vector<512x32xbf16> to vector<32x32xbf16>
    %38 = vector.shape_cast %37 : vector<32x32xbf16> to vector<2x4x4x32xbf16>
    %cst_4 = arith.constant 0.000000e+00 : bf16
    %39 = vector.broadcast %cst_4 : bf16 to vector<2x1x4x32xbf16>
    %40 = vector.extract_strided_slice %38 {offsets = [0, 0, 0, 0], sizes = [2, 3, 4, 32], strides = [1, 1, 1, 1]} : vector<2x4x4x32xbf16> to vector<2x3x4x32xbf16>
    %41 = tpu.concatenate %39, %40 in 1 : vector<2x1x4x32xbf16>, vector<2x3x4x32xbf16> -> vector<2x4x4x32xbf16>
    %cst_5 = arith.constant 0.000000e+00 : bf16
    %42 = vector.broadcast %cst_5 : bf16 to vector<2x4x1x32xbf16>
    %43 = vector.extract_strided_slice %41 {offsets = [0, 0, 0, 0], sizes = [2, 4, 3, 32], strides = [1, 1, 1, 1]} : vector<2x4x4x32xbf16> to vector<2x4x3x32xbf16>
    %44 = tpu.concatenate %42, %43 in 2 : vector<2x4x1x32xbf16>, vector<2x4x3x32xbf16> -> vector<2x4x4x32xbf16>
    %45 = vector.shape_cast %44 : vector<2x4x4x32xbf16> to vector<32x32xbf16>
    %cst_6 = arith.constant 0.000000e+00 : bf16
    %46 = vector.broadcast %cst_6 : bf16 to vector<2x1x4x32xbf16>
    %47 = vector.extract_strided_slice %32 {offsets = [0, 0, 0, 0], sizes = [2, 3, 4, 32], strides = [1, 1, 1, 1]} : vector<2x4x4x32xbf16> to vector<2x3x4x32xbf16>
    %48 = tpu.concatenate %46, %47 in 1 : vector<2x1x4x32xbf16>, vector<2x3x4x32xbf16> -> vector<2x4x4x32xbf16>
    %49 = vector.shape_cast %48 : vector<2x4x4x32xbf16> to vector<32x32xbf16>
    %cst_7 = arith.constant 0.000000e+00 : bf16
    %50 = vector.broadcast %cst_7 : bf16 to vector<2x1x4x32xbf16>
    %51 = vector.extract_strided_slice %34 {offsets = [0, 0, 0, 0], sizes = [2, 3, 4, 32], strides = [1, 1, 1, 1]} : vector<2x4x4x32xbf16> to vector<2x3x4x32xbf16>
    %52 = tpu.concatenate %50, %51 in 1 : vector<2x1x4x32xbf16>, vector<2x3x4x32xbf16> -> vector<2x4x4x32xbf16>
    %53 = vector.shape_cast %52 : vector<2x4x4x32xbf16> to vector<32x32xbf16>
    %cst_8 = arith.constant 0.000000e+00 : bf16
    %54 = vector.broadcast %cst_8 : bf16 to vector<2x1x4x32xbf16>
    %55 = vector.extract_strided_slice %36 {offsets = [0, 0, 0, 0], sizes = [2, 3, 4, 32], strides = [1, 1, 1, 1]} : vector<2x4x4x32xbf16> to vector<2x3x4x32xbf16>
    %56 = tpu.concatenate %54, %55 in 1 : vector<2x1x4x32xbf16>, vector<2x3x4x32xbf16> -> vector<2x4x4x32xbf16>
    %57 = vector.shape_cast %56 : vector<2x4x4x32xbf16> to vector<32x32xbf16>
    %cst_9 = arith.constant 0.000000e+00 : bf16
    %58 = vector.broadcast %cst_9 : bf16 to vector<2x4x1x32xbf16>
    %59 = vector.extract_strided_slice %14 {offsets = [0, 0, 0, 0], sizes = [2, 4, 3, 32], strides = [1, 1, 1, 1]} : vector<2x4x4x32xbf16> to vector<2x4x3x32xbf16>
    %60 = tpu.concatenate %58, %59 in 2 : vector<2x4x1x32xbf16>, vector<2x4x3x32xbf16> -> vector<2x4x4x32xbf16>
    %61 = vector.shape_cast %60 : vector<2x4x4x32xbf16> to vector<32x32xbf16>
    %62 = vector.shape_cast %8 : vector<2x4x4x32xbf16> to vector<32x32xbf16>
    %63 = vector.shape_cast %10 : vector<2x4x4x32xbf16> to vector<32x32xbf16>
    %64 = vector.shape_cast %12 : vector<2x4x4x32xbf16> to vector<32x32xbf16>
    %cst_10 = arith.constant 0.000000e+00 : bf16
    %65 = vector.broadcast %cst_10 : bf16 to vector<2x4x1x32xbf16>
    %66 = vector.extract_strided_slice %22 {offsets = [0, 0, 0, 0], sizes = [2, 4, 3, 32], strides = [1, 1, 1, 1]} : vector<2x4x4x32xbf16> to vector<2x4x3x32xbf16>
    %67 = tpu.concatenate %65, %66 in 2 : vector<2x4x1x32xbf16>, vector<2x4x3x32xbf16> -> vector<2x4x4x32xbf16>
    %68 = vector.shape_cast %67 : vector<2x4x4x32xbf16> to vector<32x32xbf16>
    %69 = vector.shape_cast %16 : vector<2x4x4x32xbf16> to vector<32x32xbf16>
    %70 = vector.shape_cast %18 : vector<2x4x4x32xbf16> to vector<32x32xbf16>
    %71 = vector.shape_cast %20 : vector<2x4x4x32xbf16> to vector<32x32xbf16>
    %cst_11 = arith.constant 0.000000e+00 : bf16
    %72 = vector.broadcast %cst_11 : bf16 to vector<2x4x1x32xbf16>
    %73 = vector.extract_strided_slice %30 {offsets = [0, 0, 0, 0], sizes = [2, 4, 3, 32], strides = [1, 1, 1, 1]} : vector<2x4x4x32xbf16> to vector<2x4x3x32xbf16>
    %74 = tpu.concatenate %72, %73 in 2 : vector<2x4x1x32xbf16>, vector<2x4x3x32xbf16> -> vector<2x4x4x32xbf16>
    %75 = vector.shape_cast %74 : vector<2x4x4x32xbf16> to vector<32x32xbf16>
    %76 = vector.shape_cast %24 : vector<2x4x4x32xbf16> to vector<32x32xbf16>
    %77 = vector.shape_cast %26 : vector<2x4x4x32xbf16> to vector<32x32xbf16>
    %78 = vector.shape_cast %28 : vector<2x4x4x32xbf16> to vector<32x32xbf16>
    %79 = tpu.concatenate %45, %49, %53, %57, %61, %62, %63, %64, %68, %69, %70, %71, %75, %76, %77, %78 in 1 : vector<32x32xbf16>, vector<32x32xbf16>, vector<32x32xbf16>, vector<32x32xbf16>, vector<32x32xbf16>, vector<32x32xbf16>, vector<32x32xbf16>, vector<32x32xbf16>, vector<32x32xbf16>, vector<32x32xbf16>, vector<32x32xbf16>, vector<32x32xbf16>, vector<32x32xbf16>, vector<32x32xbf16>, vector<32x32xbf16>, vector<32x32xbf16> -> vector<32x512xbf16>
    %cst_12 = arith.constant 0.000000e+00 : bf16
    %80 = vector.broadcast %cst_12 : bf16 to vector<2x1x4x32xbf16>
    %81 = vector.extract_strided_slice %34 {offsets = [0, 0, 0, 0], sizes = [2, 3, 4, 32], strides = [1, 1, 1, 1]} : vector<2x4x4x32xbf16> to vector<2x3x4x32xbf16>
    %82 = tpu.concatenate %80, %81 in 1 : vector<2x1x4x32xbf16>, vector<2x3x4x32xbf16> -> vector<2x4x4x32xbf16>
    %83 = vector.shape_cast %82 : vector<2x4x4x32xbf16> to vector<32x32xbf16>
    %cst_13 = arith.constant 0.000000e+00 : bf16
    %84 = vector.broadcast %cst_13 : bf16 to vector<2x1x4x32xbf16>
    %85 = vector.extract_strided_slice %36 {offsets = [0, 0, 0, 0], sizes = [2, 3, 4, 32], strides = [1, 1, 1, 1]} : vector<2x4x4x32xbf16> to vector<2x3x4x32xbf16>
    %86 = tpu.concatenate %84, %85 in 1 : vector<2x1x4x32xbf16>, vector<2x3x4x32xbf16> -> vector<2x4x4x32xbf16>
    %87 = vector.shape_cast %86 : vector<2x4x4x32xbf16> to vector<32x32xbf16>
    %cst_14 = arith.constant 0.000000e+00 : bf16
    %88 = vector.broadcast %cst_14 : bf16 to vector<2x1x4x32xbf16>
    %89 = vector.extract_strided_slice %38 {offsets = [0, 0, 0, 0], sizes = [2, 3, 4, 32], strides = [1, 1, 1, 1]} : vector<2x4x4x32xbf16> to vector<2x3x4x32xbf16>
    %90 = tpu.concatenate %88, %89 in 1 : vector<2x1x4x32xbf16>, vector<2x3x4x32xbf16> -> vector<2x4x4x32xbf16>
    %91 = vector.shape_cast %90 : vector<2x4x4x32xbf16> to vector<32x32xbf16>
    %cst_15 = arith.constant 0.000000e+00 : bf16
    %92 = vector.broadcast %cst_15 : bf16 to vector<2x1x4x32xbf16>
    %93 = vector.extract_strided_slice %32 {offsets = [0, 0, 0, 0], sizes = [2, 3, 4, 32], strides = [1, 1, 1, 1]} : vector<2x4x4x32xbf16> to vector<2x3x4x32xbf16>
    %94 = tpu.concatenate %92, %93 in 1 : vector<2x1x4x32xbf16>, vector<2x3x4x32xbf16> -> vector<2x4x4x32xbf16>
    %cst_16 = arith.constant 0.000000e+00 : bf16
    %95 = vector.broadcast %cst_16 : bf16 to vector<2x4x1x32xbf16>
    %96 = vector.extract_strided_slice %94 {offsets = [0, 0, 1, 0], sizes = [2, 4, 3, 32], strides = [1, 1, 1, 1]} : vector<2x4x4x32xbf16> to vector<2x4x3x32xbf16>
    %97 = tpu.concatenate %96, %95 in 2 : vector<2x4x3x32xbf16>, vector<2x4x1x32xbf16> -> vector<2x4x4x32xbf16>
    %98 = vector.shape_cast %97 : vector<2x4x4x32xbf16> to vector<32x32xbf16>
    %99 = vector.shape_cast %10 : vector<2x4x4x32xbf16> to vector<32x32xbf16>
    %100 = vector.shape_cast %12 : vector<2x4x4x32xbf16> to vector<32x32xbf16>
    %101 = vector.shape_cast %14 : vector<2x4x4x32xbf16> to vector<32x32xbf16>
    %cst_17 = arith.constant 0.000000e+00 : bf16
    %102 = vector.broadcast %cst_17 : bf16 to vector<2x4x1x32xbf16>
    %103 = vector.extract_strided_slice %8 {offsets = [0, 0, 1, 0], sizes = [2, 4, 3, 32], strides = [1, 1, 1, 1]} : vector<2x4x4x32xbf16> to vector<2x4x3x32xbf16>
    %104 = tpu.concatenate %103, %102 in 2 : vector<2x4x3x32xbf16>, vector<2x4x1x32xbf16> -> vector<2x4x4x32xbf16>
    %105 = vector.shape_cast %104 : vector<2x4x4x32xbf16> to vector<32x32xbf16>
    %106 = vector.shape_cast %18 : vector<2x4x4x32xbf16> to vector<32x32xbf16>
    %107 = vector.shape_cast %20 : vector<2x4x4x32xbf16> to vector<32x32xbf16>
    %108 = vector.shape_cast %22 : vector<2x4x4x32xbf16> to vector<32x32xbf16>
    %cst_18 = arith.constant 0.000000e+00 : bf16
    %109 = vector.broadcast %cst_18 : bf16 to vector<2x4x1x32xbf16>
    %110 = vector.extract_strided_slice %16 {offsets = [0, 0, 1, 0], sizes = [2, 4, 3, 32], strides = [1, 1, 1, 1]} : vector<2x4x4x32xbf16> to vector<2x4x3x32xbf16>
    %111 = tpu.concatenate %110, %109 in 2 : vector<2x4x3x32xbf16>, vector<2x4x1x32xbf16> -> vector<2x4x4x32xbf16>
    %112 = vector.shape_cast %111 : vector<2x4x4x32xbf16> to vector<32x32xbf16>
    %113 = vector.shape_cast %26 : vector<2x4x4x32xbf16> to vector<32x32xbf16>
    %114 = vector.shape_cast %28 : vector<2x4x4x32xbf16> to vector<32x32xbf16>
    %115 = vector.shape_cast %30 : vector<2x4x4x32xbf16> to vector<32x32xbf16>
    %cst_19 = arith.constant 0.000000e+00 : bf16
    %116 = vector.broadcast %cst_19 : bf16 to vector<2x4x1x32xbf16>
    %117 = vector.extract_strided_slice %24 {offsets = [0, 0, 1, 0], sizes = [2, 4, 3, 32], strides = [1, 1, 1, 1]} : vector<2x4x4x32xbf16> to vector<2x4x3x32xbf16>
    %118 = tpu.concatenate %117, %116 in 2 : vector<2x4x3x32xbf16>, vector<2x4x1x32xbf16> -> vector<2x4x4x32xbf16>
    %119 = vector.shape_cast %118 : vector<2x4x4x32xbf16> to vector<32x32xbf16>
    %120 = tpu.concatenate %83, %87, %91, %98, %99, %100, %101, %105, %106, %107, %108, %112, %113, %114, %115, %119 in 1 : vector<32x32xbf16>, vector<32x32xbf16>, vector<32x32xbf16>, vector<32x32xbf16>, vector<32x32xbf16>, vector<32x32xbf16>, vector<32x32xbf16>, vector<32x32xbf16>, vector<32x32xbf16>, vector<32x32xbf16>, vector<32x32xbf16>, vector<32x32xbf16>, vector<32x32xbf16>, vector<32x32xbf16>, vector<32x32xbf16>, vector<32x32xbf16> -> vector<32x512xbf16>
    %cst_20 = arith.constant 0.000000e+00 : bf16
    %121 = vector.broadcast %cst_20 : bf16 to vector<2x4x1x32xbf16>
    %122 = vector.extract_strided_slice %22 {offsets = [0, 0, 0, 0], sizes = [2, 4, 3, 32], strides = [1, 1, 1, 1]} : vector<2x4x4x32xbf16> to vector<2x4x3x32xbf16>
    %123 = tpu.concatenate %121, %122 in 2 : vector<2x4x1x32xbf16>, vector<2x4x3x32xbf16> -> vector<2x4x4x32xbf16>
    %124 = vector.shape_cast %123 : vector<2x4x4x32xbf16> to vector<32x32xbf16>
    %125 = vector.shape_cast %16 : vector<2x4x4x32xbf16> to vector<32x32xbf16>
    %126 = vector.shape_cast %18 : vector<2x4x4x32xbf16> to vector<32x32xbf16>
    %127 = vector.shape_cast %20 : vector<2x4x4x32xbf16> to vector<32x32xbf16>
    %cst_21 = arith.constant 0.000000e+00 : bf16
    %128 = vector.broadcast %cst_21 : bf16 to vector<2x4x1x32xbf16>
    %129 = vector.extract_strided_slice %30 {offsets = [0, 0, 0, 0], sizes = [2, 4, 3, 32], strides = [1, 1, 1, 1]} : vector<2x4x4x32xbf16> to vector<2x4x3x32xbf16>
    %130 = tpu.concatenate %128, %129 in 2 : vector<2x4x1x32xbf16>, vector<2x4x3x32xbf16> -> vector<2x4x4x32xbf16>
    %131 = vector.shape_cast %130 : vector<2x4x4x32xbf16> to vector<32x32xbf16>
    %132 = vector.shape_cast %24 : vector<2x4x4x32xbf16> to vector<32x32xbf16>
    %133 = vector.shape_cast %26 : vector<2x4x4x32xbf16> to vector<32x32xbf16>
    %134 = vector.shape_cast %28 : vector<2x4x4x32xbf16> to vector<32x32xbf16>
    %cst_22 = arith.constant 0.000000e+00 : bf16
    %135 = vector.broadcast %cst_22 : bf16 to vector<2x4x1x32xbf16>
    %136 = vector.extract_strided_slice %38 {offsets = [0, 0, 0, 0], sizes = [2, 4, 3, 32], strides = [1, 1, 1, 1]} : vector<2x4x4x32xbf16> to vector<2x4x3x32xbf16>
    %137 = tpu.concatenate %135, %136 in 2 : vector<2x4x1x32xbf16>, vector<2x4x3x32xbf16> -> vector<2x4x4x32xbf16>
    %138 = vector.shape_cast %137 : vector<2x4x4x32xbf16> to vector<32x32xbf16>
    %139 = vector.shape_cast %32 : vector<2x4x4x32xbf16> to vector<32x32xbf16>
    %140 = vector.shape_cast %34 : vector<2x4x4x32xbf16> to vector<32x32xbf16>
    %141 = vector.shape_cast %36 : vector<2x4x4x32xbf16> to vector<32x32xbf16>
    %cst_23 = arith.constant 0.000000e+00 : bf16
    %142 = vector.broadcast %cst_23 : bf16 to vector<2x1x4x32xbf16>
    %143 = vector.extract_strided_slice %14 {offsets = [0, 1, 0, 0], sizes = [2, 3, 4, 32], strides = [1, 1, 1, 1]} : vector<2x4x4x32xbf16> to vector<2x3x4x32xbf16>
    %144 = tpu.concatenate %143, %142 in 1 : vector<2x3x4x32xbf16>, vector<2x1x4x32xbf16> -> vector<2x4x4x32xbf16>
    %cst_24 = arith.constant 0.000000e+00 : bf16
    %145 = vector.broadcast %cst_24 : bf16 to vector<2x4x1x32xbf16>
    %146 = vector.extract_strided_slice %144 {offsets = [0, 0, 0, 0], sizes = [2, 4, 3, 32], strides = [1, 1, 1, 1]} : vector<2x4x4x32xbf16> to vector<2x4x3x32xbf16>
    %147 = tpu.concatenate %145, %146 in 2 : vector<2x4x1x32xbf16>, vector<2x4x3x32xbf16> -> vector<2x4x4x32xbf16>
    %148 = vector.shape_cast %147 : vector<2x4x4x32xbf16> to vector<32x32xbf16>
    %cst_25 = arith.constant 0.000000e+00 : bf16
    %149 = vector.broadcast %cst_25 : bf16 to vector<2x1x4x32xbf16>
    %150 = vector.extract_strided_slice %8 {offsets = [0, 1, 0, 0], sizes = [2, 3, 4, 32], strides = [1, 1, 1, 1]} : vector<2x4x4x32xbf16> to vector<2x3x4x32xbf16>
    %151 = tpu.concatenate %150, %149 in 1 : vector<2x3x4x32xbf16>, vector<2x1x4x32xbf16> -> vector<2x4x4x32xbf16>
    %152 = vector.shape_cast %151 : vector<2x4x4x32xbf16> to vector<32x32xbf16>
    %cst_26 = arith.constant 0.000000e+00 : bf16
    %153 = vector.broadcast %cst_26 : bf16 to vector<2x1x4x32xbf16>
    %154 = vector.extract_strided_slice %10 {offsets = [0, 1, 0, 0], sizes = [2, 3, 4, 32], strides = [1, 1, 1, 1]} : vector<2x4x4x32xbf16> to vector<2x3x4x32xbf16>
    %155 = tpu.concatenate %154, %153 in 1 : vector<2x3x4x32xbf16>, vector<2x1x4x32xbf16> -> vector<2x4x4x32xbf16>
    %156 = vector.shape_cast %155 : vector<2x4x4x32xbf16> to vector<32x32xbf16>
    %cst_27 = arith.constant 0.000000e+00 : bf16
    %157 = vector.broadcast %cst_27 : bf16 to vector<2x1x4x32xbf16>
    %158 = vector.extract_strided_slice %12 {offsets = [0, 1, 0, 0], sizes = [2, 3, 4, 32], strides = [1, 1, 1, 1]} : vector<2x4x4x32xbf16> to vector<2x3x4x32xbf16>
    %159 = tpu.concatenate %158, %157 in 1 : vector<2x3x4x32xbf16>, vector<2x1x4x32xbf16> -> vector<2x4x4x32xbf16>
    %160 = vector.shape_cast %159 : vector<2x4x4x32xbf16> to vector<32x32xbf16>
    %161 = tpu.concatenate %124, %125, %126, %127, %131, %132, %133, %134, %138, %139, %140, %141, %148, %152, %156, %160 in 1 : vector<32x32xbf16>, vector<32x32xbf16>, vector<32x32xbf16>, vector<32x32xbf16>, vector<32x32xbf16>, vector<32x32xbf16>, vector<32x32xbf16>, vector<32x32xbf16>, vector<32x32xbf16>, vector<32x32xbf16>, vector<32x32xbf16>, vector<32x32xbf16>, vector<32x32xbf16>, vector<32x32xbf16>, vector<32x32xbf16>, vector<32x32xbf16> -> vector<32x512xbf16>
    %162 = vector.shape_cast %18 : vector<2x4x4x32xbf16> to vector<32x32xbf16>
    %163 = vector.shape_cast %20 : vector<2x4x4x32xbf16> to vector<32x32xbf16>
    %164 = vector.shape_cast %22 : vector<2x4x4x32xbf16> to vector<32x32xbf16>
    %cst_28 = arith.constant 0.000000e+00 : bf16
    %165 = vector.broadcast %cst_28 : bf16 to vector<2x4x1x32xbf16>
    %166 = vector.extract_strided_slice %16 {offsets = [0, 0, 1, 0], sizes = [2, 4, 3, 32], strides = [1, 1, 1, 1]} : vector<2x4x4x32xbf16> to vector<2x4x3x32xbf16>
    %167 = tpu.concatenate %166, %165 in 2 : vector<2x4x3x32xbf16>, vector<2x4x1x32xbf16> -> vector<2x4x4x32xbf16>
    %168 = vector.shape_cast %167 : vector<2x4x4x32xbf16> to vector<32x32xbf16>
    %169 = vector.shape_cast %26 : vector<2x4x4x32xbf16> to vector<32x32xbf16>
    %170 = vector.shape_cast %28 : vector<2x4x4x32xbf16> to vector<32x32xbf16>
    %171 = vector.shape_cast %30 : vector<2x4x4x32xbf16> to vector<32x32xbf16>
    %cst_29 = arith.constant 0.000000e+00 : bf16
    %172 = vector.broadcast %cst_29 : bf16 to vector<2x4x1x32xbf16>
    %173 = vector.extract_strided_slice %24 {offsets = [0, 0, 1, 0], sizes = [2, 4, 3, 32], strides = [1, 1, 1, 1]} : vector<2x4x4x32xbf16> to vector<2x4x3x32xbf16>
    %174 = tpu.concatenate %173, %172 in 2 : vector<2x4x3x32xbf16>, vector<2x4x1x32xbf16> -> vector<2x4x4x32xbf16>
    %175 = vector.shape_cast %174 : vector<2x4x4x32xbf16> to vector<32x32xbf16>
    %176 = vector.shape_cast %34 : vector<2x4x4x32xbf16> to vector<32x32xbf16>
    %177 = vector.shape_cast %36 : vector<2x4x4x32xbf16> to vector<32x32xbf16>
    %178 = vector.shape_cast %38 : vector<2x4x4x32xbf16> to vector<32x32xbf16>
    %cst_30 = arith.constant 0.000000e+00 : bf16
    %179 = vector.broadcast %cst_30 : bf16 to vector<2x4x1x32xbf16>
    %180 = vector.extract_strided_slice %32 {offsets = [0, 0, 1, 0], sizes = [2, 4, 3, 32], strides = [1, 1, 1, 1]} : vector<2x4x4x32xbf16> to vector<2x4x3x32xbf16>
    %181 = tpu.concatenate %180, %179 in 2 : vector<2x4x3x32xbf16>, vector<2x4x1x32xbf16> -> vector<2x4x4x32xbf16>
    %182 = vector.shape_cast %181 : vector<2x4x4x32xbf16> to vector<32x32xbf16>
    %cst_31 = arith.constant 0.000000e+00 : bf16
    %183 = vector.broadcast %cst_31 : bf16 to vector<2x1x4x32xbf16>
    %184 = vector.extract_strided_slice %10 {offsets = [0, 1, 0, 0], sizes = [2, 3, 4, 32], strides = [1, 1, 1, 1]} : vector<2x4x4x32xbf16> to vector<2x3x4x32xbf16>
    %185 = tpu.concatenate %184, %183 in 1 : vector<2x3x4x32xbf16>, vector<2x1x4x32xbf16> -> vector<2x4x4x32xbf16>
    %186 = vector.shape_cast %185 : vector<2x4x4x32xbf16> to vector<32x32xbf16>
    %cst_32 = arith.constant 0.000000e+00 : bf16
    %187 = vector.broadcast %cst_32 : bf16 to vector<2x1x4x32xbf16>
    %188 = vector.extract_strided_slice %12 {offsets = [0, 1, 0, 0], sizes = [2, 3, 4, 32], strides = [1, 1, 1, 1]} : vector<2x4x4x32xbf16> to vector<2x3x4x32xbf16>
    %189 = tpu.concatenate %188, %187 in 1 : vector<2x3x4x32xbf16>, vector<2x1x4x32xbf16> -> vector<2x4x4x32xbf16>
    %190 = vector.shape_cast %189 : vector<2x4x4x32xbf16> to vector<32x32xbf16>
    %cst_33 = arith.constant 0.000000e+00 : bf16
    %191 = vector.broadcast %cst_33 : bf16 to vector<2x1x4x32xbf16>
    %192 = vector.extract_strided_slice %14 {offsets = [0, 1, 0, 0], sizes = [2, 3, 4, 32], strides = [1, 1, 1, 1]} : vector<2x4x4x32xbf16> to vector<2x3x4x32xbf16>
    %193 = tpu.concatenate %192, %191 in 1 : vector<2x3x4x32xbf16>, vector<2x1x4x32xbf16> -> vector<2x4x4x32xbf16>
    %194 = vector.shape_cast %193 : vector<2x4x4x32xbf16> to vector<32x32xbf16>
    %cst_34 = arith.constant 0.000000e+00 : bf16
    %195 = vector.broadcast %cst_34 : bf16 to vector<2x1x4x32xbf16>
    %196 = vector.extract_strided_slice %8 {offsets = [0, 1, 0, 0], sizes = [2, 3, 4, 32], strides = [1, 1, 1, 1]} : vector<2x4x4x32xbf16> to vector<2x3x4x32xbf16>
    %197 = tpu.concatenate %196, %195 in 1 : vector<2x3x4x32xbf16>, vector<2x1x4x32xbf16> -> vector<2x4x4x32xbf16>
    %cst_35 = arith.constant 0.000000e+00 : bf16
    %198 = vector.broadcast %cst_35 : bf16 to vector<2x4x1x32xbf16>
    %199 = vector.extract_strided_slice %197 {offsets = [0, 0, 1, 0], sizes = [2, 4, 3, 32], strides = [1, 1, 1, 1]} : vector<2x4x4x32xbf16> to vector<2x4x3x32xbf16>
    %200 = tpu.concatenate %199, %198 in 2 : vector<2x4x3x32xbf16>, vector<2x4x1x32xbf16> -> vector<2x4x4x32xbf16>
    %201 = vector.shape_cast %200 : vector<2x4x4x32xbf16> to vector<32x32xbf16>
    %202 = tpu.concatenate %162, %163, %164, %168, %169, %170, %171, %175, %176, %177, %178, %182, %186, %190, %194, %201 in 1 : vector<32x32xbf16>, vector<32x32xbf16>, vector<32x32xbf16>, vector<32x32xbf16>, vector<32x32xbf16>, vector<32x32xbf16>, vector<32x32xbf16>, vector<32x32xbf16>, vector<32x32xbf16>, vector<32x32xbf16>, vector<32x32xbf16>, vector<32x32xbf16>, vector<32x32xbf16>, vector<32x32xbf16>, vector<32x32xbf16>, vector<32x32xbf16> -> vector<32x512xbf16>
    %203 = tpu.concatenate %79, %120, %161, %202 in 0 : vector<32x512xbf16>, vector<32x512xbf16>, vector<32x512xbf16>, vector<32x512xbf16> -> vector<128x512xbf16>
    %c0_36 = arith.constant 0 : index
    %c0_37 = arith.constant 0 : index
    %204 = vector.load %arg3[%c0_36, %c0_37] : memref<512x64xbf16, #tpu.memory_space<vmem>>, vector<512x64xbf16>
    %cst_38 = arith.constant dense<0.000000e+00> : vector<128x64xf32>
    %205 = tpu.matmul %203, %204, %cst_38 {dimension_numbers = #tpu.dot_dimension_numbers<[1], [0], [0], [1], [0, 0, 1, 1], [], []>} : vector<128x512xbf16>, vector<512x64xbf16>, vector<128x64xf32> -> vector<128x64xf32>
    %c0_39 = arith.constant 0 : index
    %c0_40 = arith.constant 0 : index
    %206 = vector.load %arg4[%c0_39, %c0_40] : memref<1x64xf32, #tpu.memory_space<vmem>>, vector<1x64xf32>
    %c0_41 = arith.constant 0 : index
    %c0_42 = arith.constant 0 : index
    %207 = vector.load %arg5[%c0_41, %c0_42] : memref<1x64xf32, #tpu.memory_space<vmem>>, vector<1x64xf32>
    %cst_43 = arith.constant dense<0.000000e+00> : vector<64xf32>
    %208 = vector.multi_reduction <add>, %205, %cst_43 [0] : vector<128x64xf32> to vector<64xf32>
    %209 = vector.shape_cast %208 : vector<64xf32> to vector<1x64xf32>
    %cst_44 = arith.constant 7.812500e-03 : f32
    %210 = vector.broadcast %cst_44 : f32 to vector<1x64xf32>
    %211 = arith.mulf %209, %210 : vector<1x64xf32>
    %212 = vector.broadcast %211 : vector<1x64xf32> to vector<128x64xf32>
    %213 = arith.subf %205, %212 : vector<128x64xf32>
    %214 = arith.mulf %213, %213 : vector<128x64xf32>
    %cst_45 = arith.constant dense<0.000000e+00> : vector<64xf32>
    %215 = vector.multi_reduction <add>, %214, %cst_45 [0] : vector<128x64xf32> to vector<64xf32>
    %216 = vector.shape_cast %215 : vector<64xf32> to vector<1x64xf32>
    %cst_46 = arith.constant 7.812500e-03 : f32
    %217 = vector.broadcast %cst_46 : f32 to vector<1x64xf32>
    %218 = arith.mulf %216, %217 : vector<1x64xf32>
    %cst_47 = arith.constant 9.99999974E-6 : f32
    %219 = vector.broadcast %cst_47 : f32 to vector<1x64xf32>
    %220 = arith.addf %218, %219 : vector<1x64xf32>
    %221 = math.rsqrt %220 : vector<1x64xf32>
    %222 = arith.mulf %221, %206 : vector<1x64xf32>
    %223 = vector.broadcast %222 : vector<1x64xf32> to vector<128x64xf32>
    %224 = arith.mulf %213, %223 : vector<128x64xf32>
    %225 = vector.broadcast %207 : vector<1x64xf32> to vector<128x64xf32>
    %226 = arith.addf %224, %225 : vector<128x64xf32>
    %cst_48 = arith.constant 2.000000e-01 : f32
    %227 = vector.broadcast %cst_48 : f32 to vector<128x64xf32>
    %228 = arith.mulf %227, %226 : vector<128x64xf32>
    %229 = arith.maximumf %226, %228 : vector<128x64xf32>
    %230 = arith.truncf %229 : vector<128x64xf32> to vector<128x64xbf16>
    %231 = vector.extract_strided_slice %230 {offsets = [0, 0], sizes = [32, 64], strides = [1, 1]} : vector<128x64xbf16> to vector<32x64xbf16>
    %232 = vector.shape_cast %231 : vector<32x64xbf16> to vector<2x4x4x64xbf16>
    %233 = vector.extract_strided_slice %230 {offsets = [32, 0], sizes = [32, 64], strides = [1, 1]} : vector<128x64xbf16> to vector<32x64xbf16>
    %234 = vector.shape_cast %233 : vector<32x64xbf16> to vector<2x4x4x64xbf16>
    %235 = vector.extract_strided_slice %230 {offsets = [64, 0], sizes = [32, 64], strides = [1, 1]} : vector<128x64xbf16> to vector<32x64xbf16>
    %236 = vector.shape_cast %235 : vector<32x64xbf16> to vector<2x4x4x64xbf16>
    %237 = vector.extract_strided_slice %230 {offsets = [96, 0], sizes = [32, 64], strides = [1, 1]} : vector<128x64xbf16> to vector<32x64xbf16>
    %238 = vector.shape_cast %237 : vector<32x64xbf16> to vector<2x4x4x64xbf16>
    %cst_49 = arith.constant 0.000000e+00 : bf16
    %239 = vector.broadcast %cst_49 : bf16 to vector<2x1x4x64xbf16>
    %240 = vector.extract_strided_slice %238 {offsets = [0, 0, 0, 0], sizes = [2, 3, 4, 64], strides = [1, 1, 1, 1]} : vector<2x4x4x64xbf16> to vector<2x3x4x64xbf16>
    %241 = tpu.concatenate %239, %240 in 1 : vector<2x1x4x64xbf16>, vector<2x3x4x64xbf16> -> vector<2x4x4x64xbf16>
    %cst_50 = arith.constant 0.000000e+00 : bf16
    %242 = vector.broadcast %cst_50 : bf16 to vector<2x4x1x64xbf16>
    %243 = vector.extract_strided_slice %241 {offsets = [0, 0, 0, 0], sizes = [2, 4, 3, 64], strides = [1, 1, 1, 1]} : vector<2x4x4x64xbf16> to vector<2x4x3x64xbf16>
    %244 = tpu.concatenate %242, %243 in 2 : vector<2x4x1x64xbf16>, vector<2x4x3x64xbf16> -> vector<2x4x4x64xbf16>
    %245 = vector.shape_cast %244 : vector<2x4x4x64xbf16> to vector<32x64xbf16>
    %cst_51 = arith.constant 0.000000e+00 : bf16
    %246 = vector.broadcast %cst_51 : bf16 to vector<2x1x4x64xbf16>
    %247 = vector.extract_strided_slice %236 {offsets = [0, 0, 0, 0], sizes = [2, 3, 4, 64], strides = [1, 1, 1, 1]} : vector<2x4x4x64xbf16> to vector<2x3x4x64xbf16>
    %248 = tpu.concatenate %246, %247 in 1 : vector<2x1x4x64xbf16>, vector<2x3x4x64xbf16> -> vector<2x4x4x64xbf16>
    %249 = vector.shape_cast %248 : vector<2x4x4x64xbf16> to vector<32x64xbf16>
    %cst_52 = arith.constant 0.000000e+00 : bf16
    %250 = vector.broadcast %cst_52 : bf16 to vector<2x1x4x64xbf16>
    %251 = vector.extract_strided_slice %238 {offsets = [0, 0, 0, 0], sizes = [2, 3, 4, 64], strides = [1, 1, 1, 1]} : vector<2x4x4x64xbf16> to vector<2x3x4x64xbf16>
    %252 = tpu.concatenate %250, %251 in 1 : vector<2x1x4x64xbf16>, vector<2x3x4x64xbf16> -> vector<2x4x4x64xbf16>
    %253 = vector.shape_cast %252 : vector<2x4x4x64xbf16> to vector<32x64xbf16>
    %cst_53 = arith.constant 0.000000e+00 : bf16
    %254 = vector.broadcast %cst_53 : bf16 to vector<2x1x4x64xbf16>
    %255 = vector.extract_strided_slice %236 {offsets = [0, 0, 0, 0], sizes = [2, 3, 4, 64], strides = [1, 1, 1, 1]} : vector<2x4x4x64xbf16> to vector<2x3x4x64xbf16>
    %256 = tpu.concatenate %254, %255 in 1 : vector<2x1x4x64xbf16>, vector<2x3x4x64xbf16> -> vector<2x4x4x64xbf16>
    %cst_54 = arith.constant 0.000000e+00 : bf16
    %257 = vector.broadcast %cst_54 : bf16 to vector<2x4x1x64xbf16>
    %258 = vector.extract_strided_slice %256 {offsets = [0, 0, 1, 0], sizes = [2, 4, 3, 64], strides = [1, 1, 1, 1]} : vector<2x4x4x64xbf16> to vector<2x4x3x64xbf16>
    %259 = tpu.concatenate %258, %257 in 2 : vector<2x4x3x64xbf16>, vector<2x4x1x64xbf16> -> vector<2x4x4x64xbf16>
    %260 = vector.shape_cast %259 : vector<2x4x4x64xbf16> to vector<32x64xbf16>
    %cst_55 = arith.constant 0.000000e+00 : bf16
    %261 = vector.broadcast %cst_55 : bf16 to vector<2x4x1x64xbf16>
    %262 = vector.extract_strided_slice %234 {offsets = [0, 0, 0, 0], sizes = [2, 4, 3, 64], strides = [1, 1, 1, 1]} : vector<2x4x4x64xbf16> to vector<2x4x3x64xbf16>
    %263 = tpu.concatenate %261, %262 in 2 : vector<2x4x1x64xbf16>, vector<2x4x3x64xbf16> -> vector<2x4x4x64xbf16>
    %264 = vector.shape_cast %263 : vector<2x4x4x64xbf16> to vector<32x64xbf16>
    %265 = vector.shape_cast %232 : vector<2x4x4x64xbf16> to vector<32x64xbf16>
    %266 = vector.shape_cast %234 : vector<2x4x4x64xbf16> to vector<32x64xbf16>
    %cst_56 = arith.constant 0.000000e+00 : bf16
    %267 = vector.broadcast %cst_56 : bf16 to vector<2x4x1x64xbf16>
    %268 = vector.extract_strided_slice %232 {offsets = [0, 0, 1, 0], sizes = [2, 4, 3, 64], strides = [1, 1, 1, 1]} : vector<2x4x4x64xbf16> to vector<2x4x3x64xbf16>
    %269 = tpu.concatenate %268, %267 in 2 : vector<2x4x3x64xbf16>, vector<2x4x1x64xbf16> -> vector<2x4x4x64xbf16>
    %270 = vector.shape_cast %269 : vector<2x4x4x64xbf16> to vector<32x64xbf16>
    %cst_57 = arith.constant 0.000000e+00 : bf16
    %271 = vector.broadcast %cst_57 : bf16 to vector<2x4x1x64xbf16>
    %272 = vector.extract_strided_slice %238 {offsets = [0, 0, 0, 0], sizes = [2, 4, 3, 64], strides = [1, 1, 1, 1]} : vector<2x4x4x64xbf16> to vector<2x4x3x64xbf16>
    %273 = tpu.concatenate %271, %272 in 2 : vector<2x4x1x64xbf16>, vector<2x4x3x64xbf16> -> vector<2x4x4x64xbf16>
    %274 = vector.shape_cast %273 : vector<2x4x4x64xbf16> to vector<32x64xbf16>
    %275 = vector.shape_cast %236 : vector<2x4x4x64xbf16> to vector<32x64xbf16>
    %276 = vector.shape_cast %238 : vector<2x4x4x64xbf16> to vector<32x64xbf16>
    %cst_58 = arith.constant 0.000000e+00 : bf16
    %277 = vector.broadcast %cst_58 : bf16 to vector<2x4x1x64xbf16>
    %278 = vector.extract_strided_slice %236 {offsets = [0, 0, 1, 0], sizes = [2, 4, 3, 64], strides = [1, 1, 1, 1]} : vector<2x4x4x64xbf16> to vector<2x4x3x64xbf16>
    %279 = tpu.concatenate %278, %277 in 2 : vector<2x4x3x64xbf16>, vector<2x4x1x64xbf16> -> vector<2x4x4x64xbf16>
    %280 = vector.shape_cast %279 : vector<2x4x4x64xbf16> to vector<32x64xbf16>
    %cst_59 = arith.constant 0.000000e+00 : bf16
    %281 = vector.broadcast %cst_59 : bf16 to vector<2x1x4x64xbf16>
    %282 = vector.extract_strided_slice %234 {offsets = [0, 1, 0, 0], sizes = [2, 3, 4, 64], strides = [1, 1, 1, 1]} : vector<2x4x4x64xbf16> to vector<2x3x4x64xbf16>
    %283 = tpu.concatenate %282, %281 in 1 : vector<2x3x4x64xbf16>, vector<2x1x4x64xbf16> -> vector<2x4x4x64xbf16>
    %cst_60 = arith.constant 0.000000e+00 : bf16
    %284 = vector.broadcast %cst_60 : bf16 to vector<2x4x1x64xbf16>
    %285 = vector.extract_strided_slice %283 {offsets = [0, 0, 0, 0], sizes = [2, 4, 3, 64], strides = [1, 1, 1, 1]} : vector<2x4x4x64xbf16> to vector<2x4x3x64xbf16>
    %286 = tpu.concatenate %284, %285 in 2 : vector<2x4x1x64xbf16>, vector<2x4x3x64xbf16> -> vector<2x4x4x64xbf16>
    %287 = vector.shape_cast %286 : vector<2x4x4x64xbf16> to vector<32x64xbf16>
    %cst_61 = arith.constant 0.000000e+00 : bf16
    %288 = vector.broadcast %cst_61 : bf16 to vector<2x1x4x64xbf16>
    %289 = vector.extract_strided_slice %232 {offsets = [0, 1, 0, 0], sizes = [2, 3, 4, 64], strides = [1, 1, 1, 1]} : vector<2x4x4x64xbf16> to vector<2x3x4x64xbf16>
    %290 = tpu.concatenate %289, %288 in 1 : vector<2x3x4x64xbf16>, vector<2x1x4x64xbf16> -> vector<2x4x4x64xbf16>
    %291 = vector.shape_cast %290 : vector<2x4x4x64xbf16> to vector<32x64xbf16>
    %cst_62 = arith.constant 0.000000e+00 : bf16
    %292 = vector.broadcast %cst_62 : bf16 to vector<2x1x4x64xbf16>
    %293 = vector.extract_strided_slice %234 {offsets = [0, 1, 0, 0], sizes = [2, 3, 4, 64], strides = [1, 1, 1, 1]} : vector<2x4x4x64xbf16> to vector<2x3x4x64xbf16>
    %294 = tpu.concatenate %293, %292 in 1 : vector<2x3x4x64xbf16>, vector<2x1x4x64xbf16> -> vector<2x4x4x64xbf16>
    %295 = vector.shape_cast %294 : vector<2x4x4x64xbf16> to vector<32x64xbf16>
    %cst_63 = arith.constant 0.000000e+00 : bf16
    %296 = vector.broadcast %cst_63 : bf16 to vector<2x1x4x64xbf16>
    %297 = vector.extract_strided_slice %232 {offsets = [0, 1, 0, 0], sizes = [2, 3, 4, 64], strides = [1, 1, 1, 1]} : vector<2x4x4x64xbf16> to vector<2x3x4x64xbf16>
    %298 = tpu.concatenate %297, %296 in 1 : vector<2x3x4x64xbf16>, vector<2x1x4x64xbf16> -> vector<2x4x4x64xbf16>
    %cst_64 = arith.constant 0.000000e+00 : bf16
    %299 = vector.broadcast %cst_64 : bf16 to vector<2x4x1x64xbf16>
    %300 = vector.extract_strided_slice %298 {offsets = [0, 0, 1, 0], sizes = [2, 4, 3, 64], strides = [1, 1, 1, 1]} : vector<2x4x4x64xbf16> to vector<2x4x3x64xbf16>
    %301 = tpu.concatenate %300, %299 in 2 : vector<2x4x3x64xbf16>, vector<2x4x1x64xbf16> -> vector<2x4x4x64xbf16>
    %302 = vector.shape_cast %301 : vector<2x4x4x64xbf16> to vector<32x64xbf16>
    %303 = tpu.concatenate %245, %249, %253, %260, %264, %265, %266, %270, %274, %275, %276, %280, %287, %291, %295, %302 in 1 : vector<32x64xbf16>, vector<32x64xbf16>, vector<32x64xbf16>, vector<32x64xbf16>, vector<32x64xbf16>, vector<32x64xbf16>, vector<32x64xbf16>, vector<32x64xbf16>, vector<32x64xbf16>, vector<32x64xbf16>, vector<32x64xbf16>, vector<32x64xbf16>, vector<32x64xbf16>, vector<32x64xbf16>, vector<32x64xbf16>, vector<32x64xbf16> -> vector<32x1024xbf16>
    %c0_65 = arith.constant 0 : index
    %c0_66 = arith.constant 0 : index
    %304 = vector.load %arg6[%c0_65, %c0_66] : memref<1024x128xbf16, #tpu.memory_space<vmem>>, vector<1024x128xbf16>
    %cst_67 = arith.constant dense<0.000000e+00> : vector<32x128xf32>
    %305 = tpu.matmul %303, %304, %cst_67 {dimension_numbers = #tpu.dot_dimension_numbers<[1], [0], [0], [1], [0, 0, 1, 1], [], []>} : vector<32x1024xbf16>, vector<1024x128xbf16>, vector<32x128xf32> -> vector<32x128xf32>
    %c0_68 = arith.constant 0 : index
    %c0_69 = arith.constant 0 : index
    %306 = vector.load %arg7[%c0_68, %c0_69] : memref<1x128xf32, #tpu.memory_space<vmem>>, vector<1x128xf32>
    %c0_70 = arith.constant 0 : index
    %c0_71 = arith.constant 0 : index
    %307 = vector.load %arg8[%c0_70, %c0_71] : memref<1x128xf32, #tpu.memory_space<vmem>>, vector<1x128xf32>
    %cst_72 = arith.constant dense<0.000000e+00> : vector<128xf32>
    %308 = vector.multi_reduction <add>, %305, %cst_72 [0] : vector<32x128xf32> to vector<128xf32>
    %309 = vector.shape_cast %308 : vector<128xf32> to vector<1x128xf32>
    %cst_73 = arith.constant 3.125000e-02 : f32
    %310 = vector.broadcast %cst_73 : f32 to vector<1x128xf32>
    %311 = arith.mulf %309, %310 : vector<1x128xf32>
    %312 = vector.broadcast %311 : vector<1x128xf32> to vector<32x128xf32>
    %313 = arith.subf %305, %312 : vector<32x128xf32>
    %314 = arith.mulf %313, %313 : vector<32x128xf32>
    %cst_74 = arith.constant dense<0.000000e+00> : vector<128xf32>
    %315 = vector.multi_reduction <add>, %314, %cst_74 [0] : vector<32x128xf32> to vector<128xf32>
    %316 = vector.shape_cast %315 : vector<128xf32> to vector<1x128xf32>
    %cst_75 = arith.constant 3.125000e-02 : f32
    %317 = vector.broadcast %cst_75 : f32 to vector<1x128xf32>
    %318 = arith.mulf %316, %317 : vector<1x128xf32>
    %cst_76 = arith.constant 9.99999974E-6 : f32
    %319 = vector.broadcast %cst_76 : f32 to vector<1x128xf32>
    %320 = arith.addf %318, %319 : vector<1x128xf32>
    %321 = math.rsqrt %320 : vector<1x128xf32>
    %322 = arith.mulf %321, %306 : vector<1x128xf32>
    %323 = vector.broadcast %322 : vector<1x128xf32> to vector<32x128xf32>
    %324 = arith.mulf %313, %323 : vector<32x128xf32>
    %325 = vector.broadcast %307 : vector<1x128xf32> to vector<32x128xf32>
    %326 = arith.addf %324, %325 : vector<32x128xf32>
    %cst_77 = arith.constant 2.000000e-01 : f32
    %327 = vector.broadcast %cst_77 : f32 to vector<32x128xf32>
    %328 = arith.mulf %327, %326 : vector<32x128xf32>
    %329 = arith.maximumf %326, %328 : vector<32x128xf32>
    %330 = vector.shape_cast %329 : vector<32x128xf32> to vector<2x16x128xf32>
    %c0_78 = arith.constant 0 : index
    %c0_79 = arith.constant 0 : index
    %331 = vector.load %arg9[%c0_78, %c0_79] : memref<16x128xf32, #tpu.memory_space<vmem>>, vector<16x128xf32>
    %332 = vector.shape_cast %331 : vector<16x128xf32> to vector<1x16x128xf32>
    %333 = vector.broadcast %332 : vector<1x16x128xf32> to vector<2x16x128xf32>
    %334 = arith.mulf %330, %333 : vector<2x16x128xf32>
    %cst_80 = arith.constant dense<0.000000e+00> : vector<2x16xf32>
    %335 = vector.multi_reduction <add>, %334, %cst_80 [2] : vector<2x16x128xf32> to vector<2x16xf32>
    %cst_81 = arith.constant dense<0.000000e+00> : vector<2xf32>
    %336 = vector.multi_reduction <add>, %335, %cst_81 [1] : vector<2x16xf32> to vector<2xf32>
    %337 = vector.shape_cast %336 : vector<2xf32> to vector<2x1xf32>
    %c0_82 = arith.constant 0 : index
    %c0_83 = arith.constant 0 : index
    %338 = vector.load %arg10[%c0_82, %c0_83] : memref<2x1xf32, #tpu.memory_space<vmem>>, vector<2x1xf32>
    tpu.vector_store %arg10[%c0_82, %c0_83], %337 {strides = array<i32>} : memref<2x1xf32, #tpu.memory_space<vmem>>, vector<2x1xf32>,
    return
  }
  func.func @transform_0(%arg0: i32) -> (i32, i32) {
    %c0_i32 = arith.constant 0 : i32
    %c0_i32_0 = arith.constant 0 : i32
    %c0_i32_1 = arith.constant 0 : i32
    return %c0_i32, %c0_i32_0 : i32, i32
  }
  func.func @transform_1(%arg0: i32) -> (i32, i32) {
    %c0_i32 = arith.constant 0 : i32
    %c0_i32_0 = arith.constant 0 : i32
    %c0_i32_1 = arith.constant 0 : i32
    return %c0_i32, %c0_i32_0 : i32, i32
  }
  func.func @transform_2(%arg0: i32) -> (i32, i32) {
    %c0_i32 = arith.constant 0 : i32
    %c0_i32_0 = arith.constant 0 : i32
    %c0_i32_1 = arith.constant 0 : i32
    return %c0_i32, %c0_i32_0 : i32, i32
  }
  func.func @transform_3(%arg0: i32) -> (i32, i32) {
    %c0_i32 = arith.constant 0 : i32
    %c0_i32_0 = arith.constant 0 : i32
    %c0_i32_1 = arith.constant 0 : i32
    return %c0_i32, %c0_i32_0 : i32, i32
  }
  func.func @transform_4(%arg0: i32) -> (i32, i32) {
    %c0_i32 = arith.constant 0 : i32
    %c0_i32_0 = arith.constant 0 : i32
    %c0_i32_1 = arith.constant 0 : i32
    return %c0_i32, %c0_i32_0 : i32, i32
  }
  func.func @transform_5(%arg0: i32) -> (i32, i32) {
    %c0_i32 = arith.constant 0 : i32
    %c0_i32_0 = arith.constant 0 : i32
    %c0_i32_1 = arith.constant 0 : i32
    return %c0_i32, %c0_i32_0 : i32, i32
  }
  func.func @transform_6(%arg0: i32) -> (i32, i32) {
    %c0_i32 = arith.constant 0 : i32
    %c0_i32_0 = arith.constant 0 : i32
    %c0_i32_1 = arith.constant 0 : i32
    return %c0_i32, %c0_i32_0 : i32, i32
  }
  func.func @transform_7(%arg0: i32) -> (i32, i32) {
    %c0_i32 = arith.constant 0 : i32
    %c0_i32_0 = arith.constant 0 : i32
    %c0_i32_1 = arith.constant 0 : i32
    return %c0_i32, %c0_i32_0 : i32, i32
  }
  func.func @transform_8(%arg0: i32) -> (i32, i32) {
    %c0_i32 = arith.constant 0 : i32
    %c0_i32_0 = arith.constant 0 : i32
    %c0_i32_1 = arith.constant 0 : i32
    return %c0_i32, %c0_i32_0 : i32, i32
  }
  func.func @transform_9(%arg0: i32) -> (i32, i32) {
    %c0_i32 = arith.constant 0 : i32
    %c0_i32_0 = arith.constant 0 : i32
    %c0_i32_1 = arith.constant 0 : i32
    return %c0_i32, %c0_i32_0 : i32, i32
  }
}

</mosaic_0001>

<bundles_post_ra>
// kernel: discriminator_forward.1
= control target key start
LH: loop header
LB: loop body
LE: loop exit
PB: predicated region body
PF: predicated region fallthrough
CT: control target
= control target key end

     0   :  { %vm265_vm0 = vcmask 130048   ;;  %v6983_v33 = vmov 1983009808   ;;  %v9665_v35 = vlaneseq  ;;  %s6985_s30 = smov 64   ;;  %s6986_s10 = smov 96   ;;  %vm2133_vm1 = vcmask 1041408   ;;  %s9655_s1 = inlined_call_operand.vmem [shape: bf16[16,32], index: 1, kind: input, shape index: {}]   ;;  %s9656_s0 = inlined_call_operand.vmem [shape: bf16[512,16], index: 0, kind: input, shape index: {}]   ;;  %s9657_s2 = inlined_call_operand.vmem [shape: bf16[512,64], index: 2, kind: input, shape index: {}]   ;;  %s9658_s5 = inlined_call_operand.vmem [shape: bf16[1024,128], index: 5, kind: input, shape index: {}]   ;;  %s9659_s3 = inlined_call_operand.vmem [shape: f32[1,64], index: 3, kind: input, shape index: {}]   ;;  %s9660_s4 = inlined_call_operand.vmem [shape: f32[1,64], index: 4, kind: input, shape index: {}]   ;;  %s9661_s6 = inlined_call_operand.vmem [shape: f32[1,128], index: 6, kind: input, shape index: {}]   ;;  %s9662_s7 = inlined_call_operand.vmem [shape: f32[1,128], index: 7, kind: input, shape index: {}]   ;;  %s9663_s8 = inlined_call_operand.vmem [shape: f32[16,128], index: 8, kind: input, shape index: {}]   ;;  %s9664_s9 = inlined_call_operand.vmem [shape: f32[2,1], index: 9, kind: output, shape index: {}]  }
   0x1   :  { %v6850_v0 = vld [vmem:[%s9655_s1] sm:$0xff]   ;;  %v6852_v2 = vld [vmem:[%s9656_s0 + $0x8] sm:$0xff]   ;;  %v6853_v3 = vld [vmem:[%s9656_s0 + $0x10] sm:$0xff]   ;;  %v815_v34 = vunpack.c.l.s4 %v6983_v33  ;;  %vm2134_vm2 = vsmask.f32 1280  ;;  %vm1295_vm4 = vcmask 1040384  }
   0x2   :  { %v6851_v1 = vld [vmem:[%s9656_s0] sm:$0xff]   ;;  %6763 = vmatprep.subr.bf16.mxu0 %v6850_v0  ;;  %v6854_v4 = vld [vmem:[%s9656_s0 + $0x18] sm:$0xff]   ;;  %v6856_v6 = vld [vmem:[%s9656_s0 + $0x28] sm:$0xff]   ;;  %v7170_v42 = vshrl.u32 %v9665_v35, 7  ;;  %vm1296_vm5 = vsmask.f32 256 }
   0x3   :  { %6764 = vmatpush3.bf16.msra.mxu0 %v6850_v0  ;;  %6765 = vmatprep.mubr.msk.bf16.mxu0 %vm265_vm0, %v6851_v1  ;;  %v6855_v5 = vld [vmem:[%s9656_s0 + $0x20] sm:$0xff]   ;;  %v6857_v7 = vld [vmem:[%s9656_s0 + $0x30] sm:$0xff]   ;;  %v6858_v8 = vld [vmem:[%s9656_s0 + $0x38] sm:$0xff]   ;;  %v816_v41 = vunpack.c.0.s8 %v815_v34  ;;  %vm2015_vm7 = vcmask 261120   ;;  %vm2022_vm8 = vcmask 523264   ;;  %vm2027_vm9 = vcmask 785408  }
   0x4   :  { %v6859_v9 = vld [vmem:[%s9656_s0 + $0x40] sm:$0xff]   ;;  %v6860_v10 = vld [vmem:[%s9656_s0 + $0x48] sm:$0xff]   ;;  %v6861_v11 = vld [vmem:[%s9656_s0 + $0x50] sm:$0xff]   ;;  %9754 = vst [vmem:[#allocation2_spill] sm:$0xff] %v7170_v42  ;;  %vm6271_vm10 = vcmask 130112   ;;  %vm6282_vm11 = vcmask 1041409  }
   0x5   :  { %v6862_v12 = vld [vmem:[%s9656_s0 + $0x58] sm:$0xff]   ;;  %v6863_v13 = vld [vmem:[%s9656_s0 + $0x60] sm:$0xff]   ;;  %v6864_v14 = vld [vmem:[%s9656_s0 + $0x68] sm:$0xff]   ;;  %v7173_v49 = vsub.s32 %v816_v41, %v7170_v42  ;;  %vm6285_vm12 = vcmask 123904   ;;  %vm6289_vm13 = vcmask 1024  }
   0x6   :  { %6766 = vmatmul.mubr.msk.bf16.vlgmr.msra.gmra.mrb[0].mxu0 %vm265_vm0, %v6852_v2  ;;  %v6865_v15 = vld [vmem:[%s9656_s0 + $0x70] sm:$0xff]   ;;  %v6866_v16 = vld [vmem:[%s9656_s0 + $0x78] sm:$0xff]   ;;  %v6867_v17 = vld [vmem:[%s9656_s0 + $0x80] sm:$0xff]  }
   0x7   :  { %6769 = vmatprep.mubr.msk.bf16.mxu0 %vm265_vm0, %v6853_v3  ;;  %v6868_v18 = vld [vmem:[%s9656_s0 + $0x88] sm:$0xff]   ;;  %v6869_v19 = vld [vmem:[%s9656_s0 + $0x90] sm:$0xff]   ;;  %v6870_v20 = vld [vmem:[%s9656_s0 + $0x98] sm:$0xff]  }
   0x8   :  { %v6871_v21 = vld [vmem:[%s9656_s0 + $0xa0] sm:$0xff]   ;;  %v6872_v22 = vld [vmem:[%s9656_s0 + $0xa8] sm:$0xff]   ;;  %v6873_v23 = vld [vmem:[%s9656_s0 + $0xb0] sm:$0xff]  }
   0x9   :  { %v6874_v24 = vld [vmem:[%s9656_s0 + $0xb8] sm:$0xff]   ;;  %v6875_v25 = vld [vmem:[%s9656_s0 + $0xc0] sm:$0xff]   ;;  %v6876_v26 = vld [vmem:[%s9656_s0 + $0xc8] sm:$0xff]  }
   0xa   :  { %v6877_v27 = vld [vmem:[%s9656_s0 + $0xd0] sm:$0xff]   ;;  %v6878_v28 = vld [vmem:[%s9656_s0 + $0xd8] sm:$0xff]   ;;  %v6879_v29 = vld [vmem:[%s9656_s0 + $0xe0] sm:$0xff]  }
   0xb   :  { %v6880_v30 = vld [vmem:[%s9656_s0 + $0xe8] sm:$0xff]   ;;  %v6881_v31 = vld [vmem:[%s9656_s0 + $0xf0] sm:$0xff]   ;;  %v6882_v32 = vld [vmem:[%s9656_s0 + $0xf8] sm:$0xff]   ;;  %s6984_s0 = smov 32  }
   0xc   :  { %vm7249_vm3 = vmand %vm2133_vm1, %vm2134_vm2 }
   0xd   :  { %vm7623_vm6 = vmand %vm1295_vm4, %vm1296_vm5 }
   0xe   :  { %6770 = vmatmul.mubr.msk.bf16.gmra.mrb[4].mxu0 %vm265_vm0, %v6854_v4 }
   0xf   :  { %6773 = vmatprep.mubr.msk.bf16.mxu0 %vm265_vm0, %v6855_v5 }
  0x16   :  { %6774 = vmatmul.mubr.msk.bf16.gmra.mrb[8].mxu0 %vm265_vm0, %v6856_v6 }
  0x17   :  { %6777 = vmatprep.mubr.msk.bf16.mxu0 %vm265_vm0, %v6857_v7 }
  0x1e   :  { %6778 = vmatmul.mubr.msk.bf16.gmra.mrb[12].mxu0 %vm265_vm0, %v6858_v8 }
  0x1f   :  { %6781 = vmatprep.mubr.msk.bf16.mxu0 %vm265_vm0, %v6859_v9 }
  0x26   :  { %6782 = vmatmul.mubr.msk.bf16.gmra.mrb[16].mxu0 %vm265_vm0, %v6860_v10 }
  0x27   :  { %6785 = vmatprep.mubr.msk.bf16.mxu0 %vm265_vm0, %v6861_v11 }
  0x2e   :  { %6786 = vmatmul.mubr.msk.bf16.gmra.mrb[20].mxu0 %vm265_vm0, %v6862_v12 }
  0x2f   :  { %6789 = vmatprep.mubr.msk.bf16.mxu0 %vm265_vm0, %v6863_v13 }
  0x36   :  { %6790 = vmatmul.mubr.msk.bf16.gmra.mrb[24].mxu0 %vm265_vm0, %v6864_v14 }
  0x37   :  { %6793 = vmatprep.mubr.msk.bf16.mxu0 %vm265_vm0, %v6865_v15 }
  0x3e   :  { %6794 = vmatmul.mubr.msk.bf16.gmra.mrb[28].mxu0 %vm265_vm0, %v6866_v16 }
  0x3f   :  { %6797 = vmatprep.mubr.msk.bf16.mxu0 %vm265_vm0, %v6867_v17 }
  0x46   :  { %6798 = vmatmul.mubr.msk.bf16.gmra.mrb[32].mxu0 %vm265_vm0, %v6868_v18 }
  0x47   :  { %6801 = vmatprep.mubr.msk.bf16.mxu0 %vm265_vm0, %v6869_v19 }
  0x4e   :  { %6802 = vmatmul.mubr.msk.bf16.gmra.mrb[36].mxu0 %vm265_vm0, %v6870_v20 }
  0x4f   :  { %6805 = vmatprep.mubr.msk.bf16.mxu0 %vm265_vm0, %v6871_v21 }
  0x56   :  { %6806 = vmatmul.mubr.msk.bf16.gmra.mrb[40].mxu0 %vm265_vm0, %v6872_v22 }
  0x57   :  { %6809 = vmatprep.mubr.msk.bf16.mxu0 %vm265_vm0, %v6873_v23 }
  0x5e   :  { %6810 = vmatmul.mubr.msk.bf16.gmra.mrb[44].mxu0 %vm265_vm0, %v6874_v24 }
  0x5f   :  { %6813 = vmatprep.mubr.msk.bf16.mxu0 %vm265_vm0, %v6875_v25 }
  0x66   :  { %6814 = vmatmul.mubr.msk.bf16.gmra.mrb[48].mxu0 %vm265_vm0, %v6876_v26 }
  0x67   :  { %6817 = vmatprep.mubr.msk.bf16.mxu0 %vm265_vm0, %v6877_v27 }
  0x6e   :  { %6818 = vmatmul.mubr.msk.bf16.gmra.mrb[52].mxu0 %vm265_vm0, %v6878_v28 }
  0x6f   :  { %6821 = vmatprep.mubr.msk.bf16.mxu0 %vm265_vm0, %v6879_v29 }
  0x76   :  { %6822 = vmatmul.mubr.msk.bf16.gmra.mrb[56].mxu0 %vm265_vm0, %v6880_v30 }
  0x77   :  { %6825 = vmatprep.mubr.msk.bf16.mxu0 %vm265_vm0, %v6881_v31 }
  0x7e   :  { %6826 = vmatmul.mubr.msk.bf16.gmra.mrb[60].mxu0 %vm265_vm0, %v6882_v32 }
  0xd9   :  { %v6767_v36 = vpop.f32.mrb[0].mxu0 }
  0xda   :  { %v653_v37 = vmul.f32 0.2, %v6767_v36  ;;  %v396_v38 = vpop.f32.mrb[1].mxu0 }
  0xdb   :  { %v651_v39 = vmul.f32 0.2, %v396_v38  ;;  %v6768_v40 = vpop.f32.mrb[2].mxu0 }
  0xdc   :  { %v654_v43 = vmul.f32 0.2, %v6768_v40  ;;  %v399_v44 = vpop.f32.mrb[3].mxu0  ;;  %v717_v46 = vmax.f32 %v6767_v36, %v653_v37 }
  0xdd   :  { %v652_v45 = vmul.f32 0.2, %v399_v44  ;;  %v715_v48 = vmax.f32 %v396_v38, %v651_v39 }
  0xde   :  { %v718_v47 = vmax.f32 %v6768_v40, %v654_v43 }
  0xdf   :  { %v716_v50 = vmax.f32 %v399_v44, %v652_v45 }
  0xe0   :  { %v780_v51 = vpack.c.bf16 %v718_v47, %v717_v46  ;;  %v6361_v58 = vpack.c.bf16 %v718_v47, %v718_v47 }
  0xe1   :  { %v779_v52 = vpack.c.bf16 %v716_v50, %v715_v48  ;;  %v6771_v53 = vpop.f32.mrb[4].mxu0  ;;  %v6360_v4 = vpack.c.bf16 %v716_v50, %v716_v50 }
  0xe2   :  { %1889 = vrot.lane.b32.xlu0 %v780_v51, %s6984_s0  ;;  %v412_v54 = vpop.f32.mrb[5].mxu0  ;;  %v7177_v55 = vrot.slane %v780_v51, %v7173_v49  ;;  %v7185_v60 = vrot.slane %v6361_v58, %v7173_v49  ;;  %v657_v61 = vmul.f32 0.2, %v6771_v53 }
  0xe3   :  { %v6772_v56 = vpop.f32.mrb[6].mxu0  ;;  %v655_v63 = vmul.f32 0.2, %v412_v54  ;;  %v820_v15 = vrot.slane %v779_v52, %v7173_v49  ;;  %v7200_v19 = vrot.slane %v6360_v4, %v7173_v49 }
  0xe4   :  { %v415_v57 = vpop.f32.mrb[7].mxu0  ;;  %v7182_v59 = vcombine.high %v7177_v55, %v7177_v55  ;;  %9756 = vst [vmem:[#allocation4_spill] sm:$0xff] %v7185_v60  ;;  %v658_v2 = vmul.f32 0.2, %v6772_v56  ;;  %v721_v7 = vmax.f32 %v6771_v53, %v657_v61 }
  0xe5   :  { %v656_v5 = vmul.f32 0.2, %v415_v57  ;;  %v719_v12 = vmax.f32 %v412_v54, %v655_v63  ;;  %9761 = vst [vmem:[#allocation9_spill] sm:$0xff] %v7200_v19  ;;  %v7212_v28 = vcombine.high %v820_v15, %v820_v15  ;;  %v7216_v30 = vcombine.high %v7200_v19, %v7200_v19 }
  0xe6   :  { %1887 = vrot.lane.b32.xlu0 %v779_v52, %s6984_s0  ;;  %9755 = vst [vmem:[#allocation3_spill] sm:$0xff] %v7182_v59  ;;  %v7189_v8 = vmax.f32 %v6772_v56, %v658_v2  ;;  %v2149_v41 = vrot.slane %v820_v15, %v7173_v49  ;;  %v2163_v43 = vrot.slane %v7200_v19, %v7173_v49 }
  0xe7   :  { %v7191_v13 = vmax.f32 %v415_v57, %v656_v5  ;;  %9763 = vst [vmem:[#allocation11_spill] sm:$0xff] %v7212_v28  ;;  %9764 = vst [vmem:[#allocation12_spill] sm:$0xff] %v7216_v30  ;;  %v2156_v38 = vrot.slane %v7212_v28, %v7173_v49  ;;  %v2170_v44 = vrot.slane %v7216_v30, %v7173_v49 }
  0xe8   :  { %9757 = vst [vmem:[#allocation5_spill] sm:$0xff] %v7189_v8  ;;  %v7195_v16 = vpack.c.bf16 %v7189_v8, %v721_v7  ;;  %v2202_v58 = vshll.u32 %v2149_v41, 16 }
  0xe9   :  { %v6775_v62 = vpop.f32.mrb[8].mxu0  ;;  %9758 = vst [vmem:[#allocation6_spill] sm:$0xff] %v7191_v13  ;;  %v7203_v20 = vpack.c.bf16 %v7191_v13, %v719_v12  ;;  %v2209_v53 = vshll.u32 %v2156_v38, 16  ;;  %v2223_v63 = vshll.u32 %v2170_v44, 16  ;;  %v2207_v4 = vshrl.u32 %v2156_v38, 16 }
  0xea   :  { %v428_v0 = vpop.f32.mrb[9].mxu0  ;;  %v661_v6 = vmul.f32 0.2, %v6775_v62  ;;  %9759 = vst [vmem:[#allocation7_spill] sm:$0xff] %v7195_v16  ;;  %1893 = vrot.lane.b32.xlu0 %v7195_v16, %s6985_s30  ;;  %v2214_v12 = vshrl.u32 %v2163_v43, 16 }
  0xeb   :  { %v6776_v3 = vpop.f32.mrb[10].mxu0  ;;  %v659_v9 = vmul.f32 0.2, %v428_v0  ;;  %9762 = vst [vmem:[#allocation10_spill] sm:$0xff] %v7203_v20  ;;  %1891 = vrot.lane.b32.xlu1 %v7203_v20, %s6985_s30  ;;  %v2225_v7 = vrot.slane %v2223_v63, 1 }
  0xec   :  { %v662_v10 = vmul.f32 0.2, %v6776_v3  ;;  %v431_v11 = vpop.f32.mrb[11].mxu0  ;;  %v725_v17 = vmax.f32 %v6775_v62, %v661_v6  ;;  %v2216_v62 = vshll.u32 %v2163_v43, 16 }
  0xed   :  { %v660_v14 = vmul.f32 0.2, %v431_v11  ;;  %v723_v21 = vmax.f32 %v428_v0, %v659_v9  ;;  %v2211_v0 = vrot.slane %v2209_v53, 1 }
  0xee   :  { %v7197_v18 = vmax.f32 %v6776_v3, %v662_v10  ;;  %v2204_v3 = vrot.slane %v2202_v58, 1  ;;  %v2218_v5 = vrot.slane %v2216_v62, 1  ;;  %v2200_v10 = vshrl.u32 %v2149_v41, 16 }
  0xef   :  { %v724_v22 = vmax.f32 %v431_v11, %v660_v14  ;;  %v2212_v15 = vor.u32 %v2211_v0, %v2207_v4 }
  0xf0   :  { %9760 = vst [vmem:[#allocation8_spill] sm:$0xff] %v7197_v18  ;;  %v7208_v23 = vpack.c.bf16 %v7197_v18, %v725_v17  ;;  %v2221_v17 = vshrl.u32 %v2170_v44, 16 }
  0xf1   :  { %v6779_v24 = vpop.f32.mrb[12].mxu0  ;;  %v783_v25 = vpack.c.bf16 %v724_v22, %v723_v21  ;;  %v6364_v26 = vpack.c.bf16 %v724_v22, %v724_v22 }
  0xf2   :  { %v444_v27 = vpop.f32.mrb[13].mxu0  ;;  %v665_v33 = vmul.f32 0.2, %v6779_v24  ;;  %1897 = vrot.lane.b32.xlu0 %v7208_v23, %s6986_s10 }
  0xf3   :  { %v6780_v29 = vpop.f32.mrb[14].mxu0  ;;  %v892_v31 = vrot.slane %v783_v25, %v7173_v49  ;;  %v7222_v34 = vrot.slane %v6364_v26, %v7173_v49  ;;  %v663_v37 = vmul.f32 0.2, %v444_v27 }
  0xf4   :  { %v447_v32 = vpop.f32.mrb[15].mxu0  ;;  %v666_v39 = vmul.f32 0.2, %v6780_v29  ;;  %v729_v46 = vmax.f32 %v6779_v24, %v665_v33 }
  0xf5   :  { %v900_v36 = vcombine.high %v892_v31, %v892_v31  ;;  %v664_v40 = vmul.f32 0.2, %v447_v32  ;;  %v727_v47 = vmax.f32 %v444_v27, %v663_v37  ;;  %v2205_v27 = vor.u32 %v2204_v3, %v2200_v10 }
  0xf6   :  { %v7234_v48 = vmax.f32 %v6780_v29, %v666_v39  ;;  %1895 = vrot.lane.b32.xlu0 %v783_v25, %s6986_s10  ;;  %v2219_v29 = vor.u32 %v2218_v5, %v2214_v12  ;;  %v2226_v31 = vor.u32 %v2225_v7, %v2221_v17 }
  0xf7   :  { %v7232_v45 = vcombine.low %v900_v36, %v7222_v34  ;;  %v7236_v50 = vmax.f32 %v447_v32, %v664_v40  ;;  %v9766_v32 = vmov 0  ;;  %v7258_v36 = vsel %vm7249_vm3, %v2212_v15, 0 }
  0xf8   :  { %v7240_v54 = vpack.c.bf16 %v7234_v48, %v729_v46  ;;  %v9767_v32 = vsel %vm7249_vm3, 4294967295, %v9766_v32  ;;  %9770 = vst [vmem:[#allocation16_spill] sm:$0xff] %v7258_v36  ;;  %v2263_v39 = vsel %vm7249_vm3, %v2205_v27, 0  ;;  %v7266_v40 = vsel %vm7249_vm3, %v2219_v29, 0 }
  0xf9   :  { %9765 = vst [vmem:[#allocation13_spill] sm:$0xff] %v7232_v45  ;;  %v6783_v51 = vpop.f32.mrb[16].mxu0  ;;  %v7243_v56 = vpack.c.bf16 %v7236_v50, %v727_v47  ;;  %9768 = vst [vmem:[#allocation14_spill] sm:$0xff] %v9767_v32  ;;  %v7270_v41 = vsel %vm7249_vm3, %v2226_v31, 0  ;;  %v2630_v46 = vcombine.low %v2263_v39, %v7258_v36  ;;  %v9814_v45 = vmov 0  }
  0xfa   :  { %v460_v52 = vpop.f32.mrb[17].mxu0  ;;  %2614 = vrot.lane.b32.xlu0 %v783_v25, %s6984_s0  ;;  %v669_v6 = vmul.f32 0.2, %v6783_v51  ;;  %9772 = vst [vmem:[#allocation18_spill] sm:$0xff] %v7266_v40  ;;  %9773 = vst [vmem:[#allocation19_spill] sm:$0xff] %v7270_v41  ;;  %v2631_v47 = vcombine.low %v7266_v40, %v7270_v41 }
  0xfb   :  { %v6784_v57 = vpop.f32.mrb[18].mxu0  ;;  %v667_v22 = vmul.f32 0.2, %v460_v52 }
  0xfc   :  { %v463_v61 = vpop.f32.mrb[19].mxu0  ;;  %v670_v2 = vmul.f32 0.2, %v6784_v57  ;;  %v733_v26 = vmax.f32 %v6783_v51, %v669_v6  ;;  %v2645_v58 = vrot.slane %v2631_v47, %v7173_v49 }
  0xfd   :  { %v668_v24 = vmul.f32 0.2, %v463_v61  ;;  %v731_v37 = vmax.f32 %v460_v52, %v667_v22 }
  0xfe   :  { %v7246_v14 = vmax.f32 %v6784_v57, %v670_v2  ;;  %v2638_v57 = vrot.slane %v2630_v46, %v7173_v49 }
  0xff   :  { %v7260_v38 = vmax.f32 %v463_v61, %v668_v24 }
 0x100   :  { %v7254_v33 = vpack.c.bf16 %v7246_v14, %v733_v26  ;;  %v2646_v62 = vcombine.low %v2638_v57, %v2645_v58 }
 0x101   :  { %v6787_v9 = vpop.f32.mrb[20].mxu0  ;;  %9771 = vst [vmem:[#allocation17_spill] sm:$0xff] %v7260_v38  ;;  %v7273_v44 = vpack.c.bf16 %v7260_v38, %v731_v37 }
 0x102   :  { %v476_v11 = vpop.f32.mrb[21].mxu0  ;;  %9769 = vst [vmem:[#allocation15_spill] sm:$0xff] %v7254_v33  ;;  %v673_v0 = vmul.f32 0.2, %v6787_v9  ;;  %2664 = vrot.lane.b32.xlu0 %v2646_v62, %s6986_s10 }
 0x103   :  { %v6788_v21 = vpop.f32.mrb[22].mxu0  ;;  %9774 = vst [vmem:[#allocation20_spill] sm:$0xff] %v7273_v44  ;;  %v671_v4 = vmul.f32 0.2, %v476_v11 }
 0x104   :  { %v479_v25 = vpop.f32.mrb[23].mxu0  ;;  %v674_v5 = vmul.f32 0.2, %v6788_v21  ;;  %v737_v10 = vmax.f32 %v6787_v9, %v673_v0 }
 0x105   :  { %v672_v6 = vmul.f32 0.2, %v479_v25  ;;  %v735_v22 = vmax.f32 %v476_v11, %v671_v4 }
 0x106   :  { %v738_v12 = vmax.f32 %v6788_v21, %v674_v5  ;;  %2618 = vrot.lane.b32.xlu0 %v7243_v56, %s6985_s30 }
 0x107   :  { %v736_v24 = vmax.f32 %v479_v25, %v672_v6 }
 0x108   :  { %v7283_v29 = vpack.c.bf16 %v738_v12, %v737_v10 }
 0x109   :  { %v6791_v43 = vpop.f32.mrb[24].mxu0  ;;  %v7285_v47 = vpack.c.bf16 %v736_v24, %v735_v22 }
 0x10a   :  { %v492_v51 = vpop.f32.mrb[25].mxu0  ;;  %v677_v7 = vmul.f32 0.2, %v6791_v43  ;;  %9775 = vst [vmem:[#allocation21_spill] sm:$0xff] %v7283_v29 }
 0x10b   :  { %v6792_v52 = vpop.f32.mrb[26].mxu0  ;;  %v675_v15 = vmul.f32 0.2, %v492_v51  ;;  %9776 = vst [vmem:[#allocation22_spill] sm:$0xff] %v7285_v47 }
 0x10c   :  { %v495_v53 = vpop.f32.mrb[27].mxu0  ;;  %v678_v17 = vmul.f32 0.2, %v6792_v52  ;;  %v741_v31 = vmax.f32 %v6791_v43, %v677_v7 }
 0x10d   :  { %v676_v26 = vmul.f32 0.2, %v495_v53  ;;  %v739_v57 = vmax.f32 %v492_v51, %v675_v15 }
 0x10e   :  { %v742_v37 = vmax.f32 %v6792_v52, %v678_v17 }
 0x10f   :  { %v740_v9 = vmax.f32 %v495_v53, %v676_v26 }
 0x110   :  { %v7287_v62 = vpack.c.bf16 %v742_v37, %v741_v31  ;;  %v6367_v37 = vpack.c.bf16 %v7234_v48, %v7234_v48 }
 0x111   :  { %v6795_v61 = vpop.f32.mrb[28].mxu0  ;;  %v7289_v4 = vpack.c.bf16 %v740_v9, %v739_v57  ;;  %v945_v57 = vrot.slane %v7240_v54, %v7173_v49  ;;  %v6366_v9 = vpack.c.bf16 %v7236_v50, %v7236_v50  ;;  %v928_v50 = vrot.slane %v7243_v56, %v7173_v49 }
 0x112   :  { %v508_v63 = vpop.f32.mrb[29].mxu0  ;;  %v681_v27 = vmul.f32 0.2, %v6795_v61  ;;  %9777 = vst [vmem:[#allocation23_spill] sm:$0xff] %v7287_v62  ;;  %v7336_v48 = vrot.slane %v6367_v37, %v7173_v49 }
 0x113   :  { %v6796_v2 = vpop.f32.mrb[30].mxu0  ;;  %v679_v39 = vmul.f32 0.2, %v508_v63  ;;  %9778 = vst [vmem:[#allocation24_spill] sm:$0xff] %v7289_v4  ;;  %v7372_v42 = vcombine.high %v928_v50, %v928_v50  ;;  %v7398_v36 = vrot.slane %v928_v50, %v7173_v49 }
 0x114   :  { %v511_v3 = vpop.f32.mrb[31].mxu0  ;;  %v682_v21 = vmul.f32 0.2, %v6796_v2  ;;  %v745_v0 = vmax.f32 %v6795_v61, %v681_v27  ;;  %9784 = vst [vmem:[#allocation30_spill] sm:$0xff] %v7336_v48  ;;  %v7362_v37 = vcombine.high %v7336_v48, %v7336_v48  ;;  %v7366_v56 = vrot.slane %v7336_v48, %v7173_v49 }
 0x115   :  { %v680_v5 = vmul.f32 0.2, %v511_v3  ;;  %v743_v10 = vmax.f32 %v508_v63, %v679_v39  ;;  %v2177_v39 = vrot.slane %v7177_v55, %v7173_v49  ;;  %9789 = vst [vmem:[#allocation35_spill] sm:$0xff] %v7372_v42  ;;  %v1362_v62 = vshrl.u32 %v7398_v36, 16 }
 0x116   :  { %v7291_v6 = vmax.f32 %v6796_v2, %v682_v21  ;;  %9788 = vst [vmem:[#allocation34_spill] sm:$0xff] %v7362_v37 }
 0x117   :  { %v7293_v12 = vmax.f32 %v511_v3, %v680_v5  ;;  %v2230_v55 = vshll.u32 %v2177_v39, 16 }
 0x118   :  { %9779 = vst [vmem:[#allocation25_spill] sm:$0xff] %v7291_v6  ;;  %v7296_v53 = vpack.c.bf16 %v7291_v6, %v745_v0 }
 0x119   :  { %v6799_v46 = vpop.f32.mrb[32].mxu0  ;;  %9780 = vst [vmem:[#allocation26_spill] sm:$0xff] %v7293_v12  ;;  %v7301_v61 = vpack.c.bf16 %v7293_v12, %v743_v10  ;;  %v7351_v10 = vcombine.high %v945_v57, %v945_v57  ;;  %v2232_v35 = vrot.slane %v2230_v55, 1 }
 0x11a   :  { %v524_v58 = vpop.f32.mrb[33].mxu0  ;;  %v685_v11 = vmul.f32 0.2, %v6799_v46  ;;  %9781 = vst [vmem:[#allocation27_spill] sm:$0xff] %v7296_v53 }
 0x11b   :  { %v6800_v25 = vpop.f32.mrb[34].mxu0  ;;  %v683_v43 = vmul.f32 0.2, %v524_v58  ;;  %9782 = vst [vmem:[#allocation28_spill] sm:$0xff] %v7301_v61  ;;  %9786 = vst [vmem:[#allocation32_spill] sm:$0xff] %v7351_v10  ;;  %v7380_v6 = vrot.slane %v7351_v10, %v7173_v49 }
 0x11c   :  { %v686_v52 = vmul.f32 0.2, %v6800_v25  ;;  %v527_v7 = vpop.f32.mrb[35].mxu0  ;;  %v749_v15 = vmax.f32 %v6799_v46, %v685_v11  ;;  %v2184_v46 = vrot.slane %v7182_v59, %v7173_v49 }
 0x11d   :  { %v684_v51 = vmul.f32 0.2, %v527_v7  ;;  %v747_v22 = vmax.f32 %v524_v58, %v683_v43  ;;  %v7333_v58 = vrot.slane %v7185_v60, %v7173_v49  ;;  %v1397_v59 = vshrl.u32 %v7380_v6, 16 }
 0x11e   :  { %v7298_v17 = vmax.f32 %v6800_v25, %v686_v52  ;;  %v2237_v5 = vshll.u32 %v2184_v46, 16  ;;  %v7344_v25 = vcombine.high %v7185_v60, %v7185_v60  ;;  %v9666_v52 = vmov 0  }
 0x11f   :  { %v7303_v24 = vmax.f32 %v527_v7, %v684_v51  ;;  %v2082_v7 = vrot.slane %v9666_v52, 1  ;;  %v7354_v51 = vrot.slane %v945_v57, %v7173_v49  ;;  %v2228_v57 = vshrl.u32 %v2177_v39, 16 }
 0x120   :  { %v7306_v2 = vpack.c.bf16 %v7298_v17, %v749_v15  ;;  %9785 = vst [vmem:[#allocation31_spill] sm:$0xff] %v7344_v25  ;;  %v7357_v15 = vrot.slane %v6366_v9, %v7173_v49  ;;  %v2239_v1 = vrot.slane %v2237_v5, 1  ;;  %v7370_v52 = vrot.slane %v7344_v25, %v7173_v49 }
 0x121   :  { %v7309_v63 = vpack.c.bf16 %v7303_v24, %v747_v22  ;;  %v7311_v3 = vpop.f32.mrb[36].mxu0  ;;  %v2244_v22 = vshll.u32 %v7333_v58, 16  ;;  %v7376_v9 = vsel %vm7249_vm3, %v2082_v7, 0  ;;  %v2235_v12 = vshrl.u32 %v2184_v46, 16 }
 0x122   :  { %9783 = vst [vmem:[#allocation29_spill] sm:$0xff] %v7306_v2  ;;  %v7313_v26 = vpop.f32.mrb[37].mxu0  ;;  %9787 = vst [vmem:[#allocation33_spill] sm:$0xff] %v7357_v15  ;;  %v1390_v48 = vshrl.u32 %v7354_v51, 16  ;;  %v7385_v55 = vcombine.high %v7357_v15, %v7357_v15  ;;  %v7392_v7 = vrot.slane %v7362_v37, %v7173_v49  ;;  %v1404_v46 = vshrl.u32 %v7366_v56, 16 }
 0x123   :  { %v7315_v27 = vpop.f32.mrb[38].mxu0  ;;  %9790 = vst [vmem:[#allocation36_spill] sm:$0xff] %v7376_v9  ;;  %v7388_v53 = vrot.slane %v2244_v22, 1  ;;  %v7395_v10 = vor.u32 %v2232_v35, %v2228_v57  ;;  %v7402_v40 = vrot.slane %v7357_v15, %v7173_v49  ;;  %v7404_v39 = vor.u32 %v2239_v1, %v2235_v12 }
 0x124   :  { %v7317_v31 = vpop.f32.mrb[39].mxu0  ;;  %9791 = vst [vmem:[#allocation37_spill] sm:$0xff] %v7385_v55  ;;  %v1393_v22 = vshll.u32 %v7354_v51, 16  ;;  %v7410_v60 = vrot.slane %v7372_v42, %v7173_v49  ;;  %v689_v35 = vmul.f32 0.2, %v7311_v3  ;;  %v1392_v50 = vrot.slane %v1390_v48, 7 }
 0x125   :  { %v7417_v1 = vrot.slane %v7385_v55, %v7173_v49  ;;  %v7419_v12 = vrot.slane %v1404_v46, 7  ;;  %v687_v37 = vmul.f32 0.2, %v7313_v26  ;;  %v690_v42 = vmul.f32 0.2, %v7315_v27 }
 0x126   :  { %v6369_v48 = vpack.c.bf16 %v7246_v14, %v7246_v14  ;;  %v688_v25 = vmul.f32 0.2, %v7317_v31  ;;  %v753_v55 = vmax.f32 %v7311_v3, %v689_v35 }
 0x127   :  { %v754_v46 = vmax.f32 %v7315_v27, %v690_v42  ;;  %v751_v18 = vmax.f32 %v7313_v26, %v687_v37 }
 0x128   :  { %v752_v16 = vmax.f32 %v7317_v31, %v688_v25 }
 0x129   :  { %v7329_v21 = vpop.f32.mrb[40].mxu0  ;;  %v7436_v30 = vpack.c.bf16 %v754_v46, %v753_v55 }
 0x12a   :  { %v7338_v0 = vpop.f32.mrb[41].mxu0  ;;  %v693_v15 = vmul.f32 0.2, %v7329_v21  ;;  %v7440_v27 = vpack.c.bf16 %v752_v16, %v751_v18  ;;  %v7452_v16 = vrot.slane %v7254_v33, %v7173_v49 }
 0x12b   :  { %v7340_v11 = vpop.f32.mrb[42].mxu0  ;;  %v691_v29 = vmul.f32 0.2, %v7338_v0  ;;  %9792 = vst [vmem:[#allocation38_spill] sm:$0xff] %v7436_v30 }
 0x12c   :  { %v7348_v43 = vpop.f32.mrb[43].mxu0  ;;  %v694_v51 = vmul.f32 0.2, %v7340_v11  ;;  %v757_v28 = vmax.f32 %v7329_v21, %v693_v15  ;;  %9793 = vst [vmem:[#allocation39_spill] sm:$0xff] %v7440_v27 }
 0x12d   :  { %v692_v4 = vmul.f32 0.2, %v7348_v43  ;;  %v755_v19 = vmax.f32 %v7338_v0, %v691_v29 }
 0x12e   :  { %v758_v3 = vmax.f32 %v7340_v11, %v694_v51 }
 0x12f   :  { %v756_v26 = vmax.f32 %v7348_v43, %v692_v4 }
 0x130   :  { %v7444_v25 = vpack.c.bf16 %v758_v3, %v757_v28  ;;  %v1369_v3 = vshrl.u32 %v7410_v60, 16 }
 0x131   :  { %v6811_v5 = vpop.f32.mrb[44].mxu0  ;;  %v7446_v13 = vpack.c.bf16 %v756_v26, %v755_v19 }
 0x132   :  { %v572_v41 = vpop.f32.mrb[45].mxu0  ;;  %v697_v8 = vmul.f32 0.2, %v6811_v5  ;;  %9794 = vst [vmem:[#allocation40_spill] sm:$0xff] %v7444_v25 }
 0x133   :  { %v6812_v61 = vpop.f32.mrb[46].mxu0  ;;  %v695_v35 = vmul.f32 0.2, %v572_v41  ;;  %9795 = vst [vmem:[#allocation41_spill] sm:$0xff] %v7446_v13 }
 0x134   :  { %v575_v57 = vpop.f32.mrb[47].mxu0  ;;  %v698_v37 = vmul.f32 0.2, %v6812_v61  ;;  %v761_v47 = vmax.f32 %v6811_v5, %v697_v8  ;;  %v6373_v8 = vpack.c.bf16 %v7298_v17, %v7298_v17  ;;  %v7473_v17 = vrot.slane %v6369_v48, %v7173_v49 }
 0x135   :  { %v696_v20 = vmul.f32 0.2, %v575_v57  ;;  %v759_v18 = vmax.f32 %v572_v41, %v695_v35  ;;  %v6372_v35 = vpack.c.bf16 %v7303_v24, %v7303_v24  ;;  %v1364_v48 = vrot.slane %v1362_v62, 7 }
 0x136   :  { %v7448_v21 = vmax.f32 %v6812_v61, %v698_v37  ;;  %v1053_v61 = vrot.slane %v7306_v2, %v7173_v49  ;;  %v1376_v37 = vshrl.u32 %v7402_v40, 16 }
 0x137   :  { %v7454_v29 = vmax.f32 %v575_v57, %v696_v20  ;;  %v1414_v20 = vshll.u32 %v7392_v7, 16  ;;  %v1365_v57 = vshll.u32 %v7398_v36, 16  ;;  %v1399_v36 = vrot.slane %v1397_v59, 7 }
 0x138   :  { %9796 = vst [vmem:[#allocation42_spill] sm:$0xff] %v7448_v21  ;;  %v7459_v28 = vpack.c.bf16 %v7448_v21, %v761_v47  ;;  %v7498_v24 = vrot.slane %v1053_v61, %v7173_v49  ;;  %v9804_v59 = vshrl.u32 %v7392_v7, 16  ;;  %v7514_v21 = vrot.slane %v6372_v35, %v7173_v49 }
 0x139   :  { %v6815_v14 = vpop.f32.mrb[48].mxu0  ;;  %9797 = vst [vmem:[#allocation43_spill] sm:$0xff] %v7454_v29  ;;  %v7466_v43 = vpack.c.bf16 %v7454_v29, %v759_v18  ;;  %v7507_v18 = vrot.slane %v7473_v17, %v7173_v49  ;;  %v7516_v29 = vor.u32 %v1365_v57, %v1364_v48  ;;  %v7518_v7 = vrot.slane %v1376_v37, 7 }
 0x13a   :  { %v588_v42 = vpop.f32.mrb[49].mxu0  ;;  %v701_v55 = vmul.f32 0.2, %v6815_v14  ;;  %9798 = vst [vmem:[#allocation44_spill] sm:$0xff] %v7459_v28  ;;  %9803 = vst [vmem:[#allocation49_spill] sm:$0xff] %v7498_v24  ;;  %v1413_v62 = vrot.slane %v9804_v59, 7 }
 0x13b   :  { %v6816_v31 = vpop.f32.mrb[50].mxu0  ;;  %v699_v11 = vmul.f32 0.2, %v588_v42  ;;  %9799 = vst [vmem:[#allocation45_spill] sm:$0xff] %v7466_v43  ;;  %9805 = vst [vmem:[#allocation50_spill] sm:$0xff] %v7507_v18  ;;  %v9808_v48 = vshll.u32 %v7380_v6, 16 }
 0x13c   :  { %v591_v46 = vpop.f32.mrb[51].mxu0  ;;  %v702_v15 = vmul.f32 0.2, %v6816_v31  ;;  %v765_v19 = vmax.f32 %v6815_v14, %v701_v55  ;;  %v7480_v14 = vor.u32 %v1393_v22, %v1392_v50  ;;  %v1383_v22 = vshrl.u32 %v7417_v1, 16 }
 0x13d   :  { %v700_v4 = vmul.f32 0.2, %v591_v46  ;;  %v763_v5 = vmax.f32 %v588_v42, %v699_v11  ;;  %v7495_v50 = vrot.slane %v7452_v16, %v7173_v49  ;;  %v1402_v37 = vor.u32 %v9808_v48, %v1399_v36 }
 0x13e   :  { %v7461_v0 = vmax.f32 %v6816_v31, %v702_v15  ;;  %v1060_v31 = vrot.slane %v6373_v8, %v7173_v49  ;;  %v7509_v8 = vrot.slane %v1369_v3, 7  ;;  %v7523_v33 = vrot.slane %v1383_v22, 7 }
 0x13f   :  { %v7468_v41 = vmax.f32 %v591_v46, %v700_v4  ;;  %9802 = vst [vmem:[#allocation48_spill] sm:$0xff] %v7495_v50  ;;  %v1036_v46 = vrot.slane %v7309_v63, %v7173_v49  ;;  %v1061_v4 = vcombine.high %v1053_v61, %v1053_v61  ;;  %v2486_v3 = vshll.u32 %v7498_v24, 16 }
 0x140   :  { %v7476_v47 = vpack.c.bf16 %v7461_v0, %v765_v19  ;;  %v1062_v59 = vcombine.high %v1060_v31, %v1060_v31  ;;  %v7521_v15 = vrot.slane %v1060_v31, %v7173_v49  ;;  %v9809_v31 = vshll.u32 %v7366_v56, 16 }
 0x141   :  { %v7478_v51 = vpop.f32.mrb[52].mxu0  ;;  %v7486_v42 = vpack.c.bf16 %v7468_v41, %v763_v5  ;;  %v1044_v19 = vcombine.high %v1036_v46, %v1036_v46  ;;  %v7529_v35 = vrot.slane %v1061_v4, %v7173_v49  ;;  %v7541_v28 = vrot.slane %v1036_v46, %v7173_v49 }
 0x142   :  { %9800 = vst [vmem:[#allocation46_spill] sm:$0xff] %v7476_v47  ;;  %v7488_v26 = vpop.f32.mrb[53].mxu0  ;;  %9806 = vst [vmem:[#allocation51_spill] sm:$0xff] %v7521_v15  ;;  %v7536_v22 = vor.u32 %v9809_v31, %v7419_v12  ;;  %v6377_v4 = vpack.c.bf16 %v7461_v0, %v7461_v0  ;;  %v1416_v43 = vor.u32 %v1414_v20, %v1413_v62  ;;  %v2500_v12 = vshll.u32 %v7521_v15, 16 }
 0x143   :  { %9801 = vst [vmem:[#allocation47_spill] sm:$0xff] %v7486_v42  ;;  %v6820_v55 = vpop.f32.mrb[54].mxu0  ;;  %9807 = vst [vmem:[#allocation52_spill] sm:$0xff] %v7529_v35  ;;  %v7548_v6 = vrot.slane %v1062_v59, %v7173_v49  ;;  %v7553_v31 = vrot.slane %v2486_v3, 1  ;;  %v7556_v46 = vrot.slane %v1044_v19, %v7173_v49  ;;  %v7560_v0 = vrot.slane %v7514_v21, %v7173_v49 }
 0x144   :  { %v607_v11 = vpop.f32.mrb[55].mxu0  ;;  %v7564_v20 = vrot.slane %v7476_v47, %v7173_v49  ;;  %v2493_v56 = vshll.u32 %v7529_v35, 16  ;;  %v6376_v3 = vpack.c.bf16 %v7468_v41, %v7468_v41  ;;  %v705_v36 = vmul.f32 0.2, %v7478_v51 }
 0x145   :  { %9810 = vst [vmem:[#allocation53_spill] sm:$0xff] %v7548_v6  ;;  %9811 = vst [vmem:[#allocation54_spill] sm:$0xff] %v7553_v31  ;;  %v7572_v19 = vrot.slane %v6377_v4, %v7173_v49  ;;  %v703_v61 = vmul.f32 0.2, %v7488_v26  ;;  %v706_v38 = vmul.f32 0.2, %v6820_v55  ;;  %v7577_v47 = vrot.slane %v7486_v42, %v7173_v49 }
 0x146   :  { %9812 = vst [vmem:[#allocation55_spill] sm:$0xff] %v7564_v20  ;;  %v704_v25 = vmul.f32 0.2, %v607_v11  ;;  %v769_v59 = vmax.f32 %v7478_v51, %v705_v36  ;;  %v7582_v18 = vcombine.high %v7564_v20, %v7564_v20  ;;  %v1748_v2 = vcombine.low %v9814_v45, %v7564_v20 }
 0x147   :  { %v767_v41 = vmax.f32 %v7488_v26, %v703_v61  ;;  %v770_v50 = vmax.f32 %v6820_v55, %v706_v38  ;;  %v7594_v35 = vrot.slane %v2500_v12, 1  ;;  %v7610_v61 = vcombine.high %v7577_v47, %v7577_v47 }
 0x148   :  { %9813 = vst [vmem:[#allocation56_spill] sm:$0xff] %v7582_v18  ;;  %v7585_v4 = vmax.f32 %v607_v11, %v704_v25  ;;  %v1749_v42 = vcombine.low %v7582_v18, %v7572_v19  ;;  %v1756_v55 = vrot.slane %v1748_v2, %v7173_v49  ;;  %v7614_v12 = vrot.slane %v2493_v56, 1  ;;  %v6970_v2 = vld [vmem:[%s9658_s5 + $0x1e0] sm:$0xff]  }
 0x149   :  { %v6823_v57 = vpop.f32.mrb[56].mxu0  ;;  %9815 = vst [vmem:[#allocation57_spill] sm:$0xff] %v7594_v35  ;;  %v7596_v31 = vpack.c.bf16 %v770_v50, %v769_v59  ;;  %v2507_v59 = vshll.u32 %v7548_v6, 16  ;;  %v7619_v13 = vrot.slane %v6376_v3, %v7173_v49 }
 0x14a   :  { %v7545_v5 = vpop.f32.mrb[57].mxu0  ;;  %v709_v30 = vmul.f32 0.2, %v6823_v57  ;;  %v7599_v38 = vpack.c.bf16 %v7585_v4, %v767_v41  ;;  %9818 = vst [vmem:[#allocation60_spill] sm:$0xff] %v7614_v12  ;;  %v1731_v41 = vcombine.low %v9814_v45, %v7577_v47  ;;  %v7640_v12 = vsel %vm7623_vm6, 0, %v1402_v37 }
 0x14b   :  { %v6824_v48 = vpop.f32.mrb[58].mxu0  ;;  %9816 = vst [vmem:[#allocation58_spill] sm:$0xff] %v7596_v31  ;;  %v707_v25 = vmul.f32 0.2, %v7545_v5  ;;  %v1732_v6 = vcombine.low %v7610_v61, %v7619_v13  ;;  %9821 = vst [vmem:[#allocation61_spill] sm:$0xff] %v7640_v12 }
 0x14c   :  { %v623_v62 = vpop.f32.mrb[59].mxu0  ;;  %v773_v15 = vmax.f32 %v6823_v57, %v709_v30  ;;  %v710_v51 = vmul.f32 0.2, %v6824_v48  ;;  %9817 = vst [vmem:[#allocation59_spill] sm:$0xff] %v7599_v38  ;;  %v1763_v30 = vrot.slane %v1749_v42, %v7173_v49 }
 0x14d   :  { %v771_v3 = vmax.f32 %v7545_v5, %v707_v25  ;;  %v708_v35 = vmul.f32 0.2, %v623_v62  ;;  %v7649_v5 = vsel %vm7623_vm6, 0, %v1416_v43  ;;  %v1160_v25 = vrot.slane %v7596_v31, %v7173_v49 }
 0x14e   :  { %v7606_v11 = vmax.f32 %v6824_v48, %v710_v51  ;;  %v1764_v51 = vcombine.low %v1756_v55, %v1763_v30  ;;  %v6379_v48 = vpack.c.bf16 %v770_v50, %v770_v50  ;;  %9822 = vst [vmem:[#allocation62_spill] sm:$0xff] %v7649_v5  ;;  %v1739_v55 = vrot.slane %v1731_v41, %v7173_v49 }
 0x14f   :  { %v1746_v37 = vrot.slane %v1732_v6, %v7173_v49  ;;  %v7655_v30 = vmax.f32 %v623_v62, %v708_v35  ;;  %v7657_v50 = vrot.slane %v2507_v59, 1  ;;  %v2108_v6 = vshll.u32 %v7564_v20, 16 }
 0x150   :  { %v7631_v56 = vpack.c.bf16 %v7606_v11, %v773_v15  ;;  %1767 = vrot.lane.b32.xlu1 %v1764_v51, %s6984_s0  ;;  %v1429_v15 = vsel %vm7623_vm6, 0, %v7480_v14  ;;  %v7663_v14 = vsel %vm7623_vm6, 0, %v7536_v22  ;;  %v1167_v41 = vrot.slane %v6379_v48, %v7173_v49 }
 0x151   :  { %v7592_v36 = vpop.f32.mrb[60].mxu0  ;;  %9823 = vst [vmem:[#allocation63_spill] sm:$0xff] %v7657_v50  ;;  %9824 = vst [vmem:[#allocation64_spill] sm:$0xff] %v7663_v14  ;;  %v1870_v43 = vcombine.low %v1429_v15, %v7640_v12  ;;  %v1747_v24 = vcombine.low %v1739_v55, %v1746_v37  ;;  %v7667_v31 = vpack.c.bf16 %v7655_v30, %v771_v3  ;;  %v2115_v15 = vshll.u32 %v7582_v18, 16 }
 0x152   :  { %v7602_v26 = vpop.f32.mrb[61].mxu0  ;;  %v1871_v35 = vcombine.low %v7663_v14, %v7649_v5  ;;  %v1168_v55 = vcombine.high %v1160_v25, %v1160_v25  ;;  %v2106_v3 = vshrl.u32 %v7564_v20, 16  ;;  %v2110_v37 = vrot.slane %v2108_v6, 1 }
 0x153   :  { %v7612_v57 = vpop.f32.mrb[62].mxu0  ;;  %1765 = vrot.lane.b32.xlu0 %v1747_v24, %s6984_s0  ;;  %v2113_v51 = vshrl.u32 %v7582_v18, 16  ;;  %v1878_v62 = vrot.slane %v1870_v43, %v7173_v49  ;;  %v2117_v5 = vrot.slane %v2115_v15, 1  ;;  %v2122_v59 = vshll.u32 %v7572_v19, 16  ;;  %v6883_v43 = vld [vmem:[%s9657_s2 + $0x40] sm:$0xff]  }
 0x154   :  { %v7627_v42 = vpop.f32.mrb[63].mxu0  ;;  %1941 = vrot.lane.b32.xlu1 %v7273_v44, %s6984_s0  ;;  %v1890_v22 = vpop.permute.xlu0 %1889  ;;  %v9825_v48 = vshll.u32 %v7410_v60, 16  ;;  %v1885_v14 = vrot.slane %v1871_v35, %v7173_v49  ;;  %v2111_v44 = vor.u32 %v2110_v37, %v2106_v3  ;;  %v9826_v24 = vshll.u32 %v7402_v40, 16  ;;  %v6884_v40 = vld [vmem:[%s9657_s2] sm:$0xff]   ;;  %6523 = vmatprep.subr.bf16.mxu1 %v6883_v43  ;;  %v6886_v3 = vld [vmem:[%s9657_s2 + $0x8] sm:$0xff]  }
 0x155   :  { %v9827_v6 = vshll.u32 %v7417_v1, 16  ;;  %v2118_v15 = vor.u32 %v2117_v5, %v2113_v51  ;;  %v2120_v18 = vshrl.u32 %v7572_v19, 16  ;;  %v2124_v60 = vrot.slane %v2122_v59, 1  ;;  %6524 = vmatpush3.bf16.msra.mxu1 %v6884_v40 }
 0x156   :  { %v1374_v12 = vor.u32 %v9825_v48, %v7509_v8  ;;  %v1381_v50 = vor.u32 %v9826_v24, %v7518_v7  ;;  %v1425_v8 = vsel %vm7623_vm6, 0, %v7516_v29  ;;  %v1787_v7 = vcombine.low %v1168_v55, %v1167_v41  ;;  %v6885_v29 = vld [vmem:[%s9657_s2 + $0x48] sm:$0xff]  }
 0x157   :  { %v1388_v20 = vor.u32 %v9827_v6, %v7523_v33  ;;  %2616 = vrot.lane.b32.xlu0 %v7208_v23, %s6984_s0  ;;  %v2140_v33 = vsel %vm7249_vm3, %v2111_v44, 0  ;;  %v2125_v51 = vor.u32 %v2124_v60, %v2120_v18  ;;  %v2141_v35 = vsel %vm7249_vm3, %v2118_v15, 0  ;;  %6525 = vmatprep.subr.bf16.mxu1 %v6885_v29  ;;  %v6887_v15 = vld [vmem:[%s9657_s2 + $0x50] sm:$0xff]  }
 0x158   :  { %v7709_v1 = vsel %vm7623_vm6, 0, %v1374_v12  ;;  %v7713_v5 = vsel %vm7623_vm6, 0, %v1381_v50  ;;  %v2593_v59 = vcombine.low %v7376_v9, %v2140_v33  ;;  %v7721_v44 = vpop.permute.xlu0 %1887  ;;  %v1886_v50 = vcombine.low %v1878_v62, %v1885_v14 }
 0x159   :  { %9828 = vst [vmem:[#allocation65_spill] sm:$0xff] %v7709_v1  ;;  %9829 = vst [vmem:[#allocation66_spill] sm:$0xff] %v7713_v5  ;;  %v7725_v12 = vsel %vm7623_vm6, 0, %v1388_v20  ;;  %v7728_v41 = vcombine.low %v1425_v8, %v7709_v1  ;;  %v1786_v18 = vcombine.low %v9814_v45, %v1160_v25  ;;  %v9831_v20 = vcombine.high %v7514_v21, %v7514_v21 }
 0x15a   :  { %9830 = vst [vmem:[#allocation67_spill] sm:$0xff] %v7725_v12  ;;  %v1854_v55 = vcombine.low %v7713_v5, %v7725_v12  ;;  %v9832_v14 = vshll.u32 %v7541_v28, 16  ;;  %v2142_v48 = vsel %vm7249_vm3, %v2125_v51, 0  ;;  %v713_v25 = vmul.f32 0.2, %v7592_v36  ;;  %6526 = vmatpush3.bf16.msra.mxu1 %v6886_v3 }
 0x15b   :  { %v7740_v37 = vrot.slane %v9831_v20, %v7173_v49  ;;  %v2039_v24 = vsel %vm2015_vm7, %v1886_v50, %v1890_v22  ;;  %v2594_v6 = vcombine.low %v2141_v35, %v2142_v48  ;;  %v2601_v43 = vrot.slane %v2593_v59, %v7173_v49  ;;  %2620 = vrot.lane.b32.xlu0 %v7240_v54, %s6985_s30  ;;  %v6888_v54 = vld [vmem:[%s9657_s2 + $0x10] sm:$0xff]  }
 0x15c   :  { %v7744_v62 = vrot.slane %v9832_v14, 1  ;;  %v1801_v21 = vrot.slane %v1787_v7, %v7173_v49  ;;  %v1861_v60 = vrot.slane %v7728_v41, %v7173_v49  ;;  %v1868_v8 = vrot.slane %v1854_v55, %v7173_v49  ;;  %6527 = vmatprep.subr.bf16.mxu1 %v6887_v15  ;;  %v1894_v41 = vpop.permute.xlu0 %1893 }
 0x15d   :  { %v9833_v40 = vshrl.u32 %v7333_v58, 16  ;;  %v2251_v33 = vshll.u32 %v7370_v52, 16  ;;  %v2608_v7 = vrot.slane %v2594_v6, %v7173_v49  ;;  %v1794_v29 = vrot.slane %v1786_v18, %v7173_v49 }
 0x15e   :  { %v2249_v51 = vshrl.u32 %v7370_v52, 16  ;;  %v7773_v35 = vsel %vm7249_vm3, %v7404_v39, 0  ;;  %v2267_v59 = vsel %vm7249_vm3, %v7395_v10, 0  ;;  %v711_v50 = vmul.f32 0.2, %v7602_v26  ;;  %v6889_v39 = vld [vmem:[%s9657_s2 + $0x58] sm:$0xff]   ;;  %6528 = vmatpush3.bf16.msra.mxu1 %v6888_v54 }
 0x15f   :  { %v2247_v22 = vor.u32 %v7388_v53, %v9833_v40  ;;  %v777_v53 = vmax.f32 %v7592_v36, %v713_v25  ;;  %v2253_v58 = vrot.slane %v2251_v33, 1  ;;  %v2609_v55 = vcombine.low %v2601_v43, %v2608_v7  ;;  %v6890_v10 = vld [vmem:[%s9657_s2 + $0x18] sm:$0xff]   ;;  %6529 = vmatprep.subr.bf16.mxu1 %v6889_v39 }
 0x160   :  { %v2647_v18 = vcombine.low %v2267_v59, %v7773_v35  ;;  %v714_v52 = vmul.f32 0.2, %v7612_v57  ;;  %v712_v3 = vmul.f32 0.2, %v7627_v42  ;;  %v7786_v36 = vcombine.low %v1794_v29, %v1801_v21 }
 0x161   :  { %v2254_v20 = vor.u32 %v2253_v58, %v2249_v51  ;;  %v775_v14 = vmax.f32 %v7602_v26, %v711_v50  ;;  %v9834_v48 = vshll.u32 %v7556_v46, 16  ;;  %2612 = vrot.lane.b32.xlu1 %v2609_v55, %s6986_s10  ;;  %v7804_v26 = vsel %vm2022_vm8, %v2039_v24, %v1894_v41  ;;  %v6891_v55 = vld [vmem:[%s9657_s2 + $0x60] sm:$0xff]  }
 0x162   :  { %v7798_v6 = vmax.f32 %v7612_v57, %v714_v52  ;;  %v7801_v43 = vmax.f32 %v7627_v42, %v712_v3  ;;  %v7808_v21 = vsel %vm7249_vm3, %v2247_v22, 0  ;;  %v2087_v40 = vshll.u32 %v7577_v47, 16  ;;  %6530 = vmatpush3.bf16.msra.mxu1 %v6890_v10 }
 0x163   :  { %v7794_v25 = vrot.slane %v9834_v48, 1  ;;  %v7812_v15 = vsel %vm7249_vm3, %v2254_v20, 0  ;;  %v2094_v57 = vshll.u32 %v7610_v61, 16  ;;  %v2655_v24 = vrot.slane %v2647_v18, %v7173_v49  ;;  %v6892_v18 = vld [vmem:[%s9657_s2 + $0x20] sm:$0xff]   ;;  %6531 = vmatprep.subr.bf16.mxu1 %v6891_v55 }
 0x164   :  { %v7816_v33 = vpop.permute.xlu0 %1897  ;;  %v2648_v42 = vcombine.low %v7808_v21, %v7812_v15  ;;  %v7822_v54 = vpack.c.bf16 %v7798_v6, %v777_v53  ;;  %v7825_v22 = vpack.c.bf16 %v7801_v43, %v775_v14  ;;  %v2085_v7 = vshrl.u32 %v7577_v47, 16 }
 0x165   :  { %v2089_v29 = vrot.slane %v2087_v40, 1  ;;  %v2092_v51 = vshrl.u32 %v7610_v61, 16  ;;  %v2096_v58 = vrot.slane %v2094_v57, 1  ;;  %v1144_v59 = vrot.slane %v7599_v38, %v7173_v49  ;;  %1805 = vrot.lane.b32.xlu1 %v7786_v36, %s6985_s30  ;;  %v1892_v40 = vpop.permute.xlu1 %1891 }
 0x166   :  { %v6381_v50 = vpack.c.bf16 %v7606_v11, %v7606_v11  ;;  %v7835_v53 = vrot.slane %v7631_v56, %v7173_v49  ;;  %v2662_v41 = vrot.slane %v2648_v42, %v7173_v49  ;;  %v2479_v52 = vshll.u32 %v7740_v37, 16  ;;  %6532 = vmatpush3.bf16.msra.mxu1 %v6892_v18 }
 0x167   :  { %v2090_v11 = vor.u32 %v2089_v29, %v2085_v7  ;;  %v2097_v3 = vor.u32 %v2096_v58, %v2092_v51  ;;  %v2101_v39 = vshll.u32 %v7619_v13, 16  ;;  %v989_v20 = vcombine.high %v7452_v16, %v7452_v16 }
 0x168   :  { %v6378_v14 = vpack.c.bf16 %v7585_v4, %v7585_v4  ;;  %v1869_v10 = vcombine.low %v1861_v60, %v1868_v8  ;;  %v2663_v48 = vcombine.low %v2655_v24, %v2662_v41  ;;  %v9835_v57 = vshll.u32 %v7560_v0, 16  ;;  %v1896_v29 = vpop.permute.xlu0 %1895  ;;  %v6893_v41 = vld [vmem:[%s9657_s2 + $0x68] sm:$0xff]  }
 0x169   :  { %v2099_v12 = vshrl.u32 %v7619_v13, 16  ;;  %v2103_v1 = vrot.slane %v2101_v39, 1  ;;  %v2137_v7 = vsel %vm7249_vm3, %v2090_v11, 0  ;;  %v1152_v51 = vcombine.high %v1144_v59, %v1144_v59  ;;  %6533 = vmatprep.subr.bf16.mxu1 %v6893_v41 }
 0x16a   :  { %v2474_v42 = vrot.slane %v9835_v57, 1  ;;  %v1201_v16 = vrot.slane %v6381_v50, %v7173_v49  ;;  %v1202_v4 = vcombine.high %v7835_v53, %v7835_v53  ;;  %v2036_v60 = vsel %vm2015_vm7, %v1869_v10, %v7721_v44  ;;  %2666 = vrot.lane.b32.xlu0 %v2663_v48, %s6986_s10  ;;  %v6894_v50 = vld [vmem:[%s9657_s2 + $0x28] sm:$0xff]  }
 0x16b   :  { %v2104_v8 = vor.u32 %v2103_v1, %v2099_v12  ;;  %v2138_v24 = vsel %vm7249_vm3, %v2097_v3, 0  ;;  %v2041_v58 = vsel %vm2022_vm8, %v2036_v60, %v1892_v40  ;;  %v990_v44 = vcombine.high %v7473_v17, %v7473_v17  ;;  %v6896_v40 = vld [vmem:[%s9657_s2 + $0x30] sm:$0xff]   ;;  %6534 = vmatpush3.bf16.msra.mxu1 %v6894_v50 }
 0x16c   :  { %v1151_v55 = vrot.slane %v6378_v14, %v7173_v49  ;;  %v2576_v1 = vcombine.low %v7376_v9, %v2137_v7  ;;  %v2045_v12 = vsel %vm2027_vm9, %v2041_v58, %v1896_v29  ;;  %v6380_v18 = vpack.c.bf16 %v7655_v30, %v7655_v30  ;;  %v6895_v30 = vld [vmem:[%s9657_s2 + $0x70] sm:$0xff]  }
 0x16d   :  { %v7881_v11 = vrot.slane %v7667_v31, %v7173_v49  ;;  %v2139_v3 = vsel %vm7249_vm3, %v2104_v8, 0  ;;  %v1769_v39 = vcombine.low %v9814_v45, %v1144_v59  ;;  %3806 = vmatprep.mubr.bf16.mxu1 %v2045_v12  ;;  %v2477_v17 = vshrl.u32 %v7740_v37, 16  ;;  %6535 = vmatprep.subr.bf16.mxu1 %v6895_v30  ;;  %v9845_v30 = vld [vmem:[#allocation51_spill] sm:$0xff] }
 0x16e   :  { %v2481_v14 = vrot.slane %v2479_v52, 1  ;;  %v1770_v10 = vcombine.low %v1152_v51, %v1151_v55  ;;  %v2577_v48 = vcombine.low %v2138_v24, %v2139_v3  ;;  %1999 = vrot.lane.b32.xlu0 %v7309_v63, %s6984_s0  ;;  %v901_v59 = vcombine.high %v7222_v34, %v7222_v34 }
 0x16f   :  { %v7898_v57 = vrot.slane %v989_v20, %v7173_v49  ;;  %v1825_v37 = vcombine.low %v1202_v4, %v1201_v16  ;;  %v9836_v52 = vshrl.u32 %v7541_v28, 16  ;;  %v7904_v63 = vrot.slane %v990_v44, %v7173_v49  ;;  %v9841_v44 = vld [vmem:[#allocation54_spill] sm:$0xff]  ;;  %6536 = vmatpush3.bf16.msra.mxu1 %v6896_v40 }
 0x170   :  { %v2584_v29 = vrot.slane %v2576_v1, %v7173_v49  ;;  %v2591_v51 = vrot.slane %v2577_v48, %v7173_v49  ;;  %v9837_v60 = vshrl.u32 %v7556_v46, 16  ;;  %v1185_v20 = vrot.slane %v6380_v18, %v7173_v49  ;;  %v6897_v1 = vld [vmem:[%s9657_s2 + $0x78] sm:$0xff]  }
 0x171   :  { %v2461_v7 = vor.u32 %v7744_v62, %v9836_v52  ;;  %v1186_v28 = vcombine.high %v7881_v11, %v7881_v11  ;;  %v1777_v62 = vrot.slane %v1769_v39, %v7173_v49  ;;  %v9838_v16 = vshrl.u32 %v7560_v0, 16  ;;  %v9839_v0 = vld [vmem:[#allocation49_spill] sm:$0xff]  ;;  %v9842_v39 = vld [vmem:[#allocation52_spill] sm:$0xff]  ;;  %6537 = vmatprep.subr.bf16.mxu1 %v6897_v1 }
 0x172   :  { %v2468_v34 = vor.u32 %v7794_v25, %v9837_v60  ;;  %v2592_v8 = vcombine.low %v2584_v29, %v2591_v51  ;;  %v1784_v24 = vrot.slane %v1770_v10, %v7173_v49  ;;  %2005 = vrot.lane.b32.xlu0 %v7440_v27, %s6985_s30  ;;  %v1824_v46 = vcombine.low %v9814_v45, %v7835_v53  ;;  %v6898_v53 = vld [vmem:[%s9657_s2 + $0x38] sm:$0xff]   ;;  %v9850_v51 = vld [vmem:[#allocation63_spill] sm:$0xff] }
 0x173   :  { %v2475_v4 = vor.u32 %v2474_v42, %v9838_v16  ;;  %v2482_v25 = vor.u32 %v2481_v14, %v2477_v17  ;;  %v1839_v58 = vrot.slane %v1825_v37, %v7173_v49  ;;  %v2519_v41 = vsel %vm7249_vm3, %v2461_v7, 0  ;;  %v9844_v14 = vld [vmem:[#allocation60_spill] sm:$0xff]  ;;  %v9847_v37 = vld [vmem:[#allocation57_spill] sm:$0xff]  ;;  %6538 = vmatpush3.bf16.msra.mxu1 %v6898_v53 }
 0x174   :  { %v2520_v50 = vsel %vm7249_vm3, %v2468_v34, 0  ;;  %v9840_v42 = vshrl.u32 %v9839_v0, 16  ;;  %2610 = vrot.lane.b32.xlu1 %v2592_v8, %s6986_s10  ;;  %v9843_v17 = vshrl.u32 %v9842_v39, 16  ;;  %v9846_v40 = vshrl.u32 %v9845_v30, 16  ;;  %v9848_v7 = vld [vmem:[#allocation53_spill] sm:$0xff] }
 0x175   :  { %v2521_v12 = vsel %vm7249_vm3, %v2475_v4, 0  ;;  %v2522_v18 = vsel %vm7249_vm3, %v2482_v25, 0  ;;  %v2738_v3 = vcombine.low %v2519_v41, %v2520_v50  ;;  %v9849_v29 = vshrl.u32 %v9848_v7, 16  ;;  %v9851_v8 = vld [vmem:[#allocation41_spill] sm:$0xff]  ;;  %v6899_v50 = vld [vmem:[%s9657_s2 + $0xc0] sm:$0xff]  }
 0x176   :  { %v2489_v55 = vor.u32 %v9841_v44, %v9840_v42  ;;  %v2496_v10 = vor.u32 %v9844_v14, %v9843_v17  ;;  %v2739_v48 = vcombine.low %v2521_v12, %v2522_v18  ;;  %v2503_v52 = vor.u32 %v9847_v37, %v9846_v40  ;;  %2011 = vrot.lane.b32.xlu0 %v9851_v8, %s6986_s10  ;;  %v9852_v17 = vld [vmem:[#allocation29_spill] sm:$0xff] }
 0x177   :  { %v2510_v60 = vor.u32 %v9850_v51, %v9849_v29  ;;  %v7952_v16 = vcombine.low %v1777_v62, %v1784_v24  ;;  %v1832_v4 = vrot.slane %v1824_v46, %v7173_v49  ;;  %v2746_v25 = vrot.slane %v2738_v3, %v7173_v49  ;;  %6587 = vmatprep.subr.bf16.mxu1 %v6899_v50  ;;  %v9857_v29 = vld [vmem:[#allocation50_spill] sm:$0xff] }
 0x178   :  { %v2523_v34 = vsel %vm7249_vm3, %v2489_v55, 0  ;;  %v2524_v41 = vsel %vm7249_vm3, %v2496_v10, 0  ;;  %v2753_v0 = vrot.slane %v2739_v48, %v7173_v49  ;;  %v2525_v62 = vsel %vm7249_vm3, %v2503_v52, 0  ;;  %v9853_v10 = vld [vmem:[#allocation13_spill] sm:$0xff] }
 0x179   :  { %v2526_v24 = vsel %vm7249_vm3, %v2510_v60, 0  ;;  %v2755_v46 = vcombine.low %v2523_v34, %v2524_v41  ;;  %v2365_v42 = vshll.u32 %v7898_v57, 16  ;;  %v2379_v44 = vshll.u32 %v7904_v63, 16  ;;  %1803 = vrot.lane.b32.xlu1 %v7952_v16, %s6985_s30 }
 0x17a   :  { %v2756_v55 = vcombine.low %v2525_v62, %v2526_v24  ;;  %v1808_v1 = vcombine.low %v1186_v28, %v1185_v20  ;;  %v7972_v12 = vcombine.low %v2746_v25, %v2753_v0  ;;  %v3150_v3 = vcombine.low %v901_v59, %v9814_v45  ;;  %2001 = vrot.lane.b32.xlu0 %v9852_v17, %s6984_s0  ;;  %v9854_v28 = vld [vmem:[#allocation48_spill] sm:$0xff]  ;;  %v9859_v25 = vld [vmem:[#allocation38_spill] sm:$0xff] }
 0x17b   :  { %v2763_v18 = vrot.slane %v2755_v46, %v7173_v49  ;;  %v1840_v39 = vcombine.low %v1832_v4, %v1839_v58  ;;  %v1807_v53 = vcombine.low %v9814_v45, %v7881_v11  ;;  %v3157_v48 = vrot.slane %v9853_v10, %v7173_v49 }
 0x17c   :  { %v2770_v14 = vrot.slane %v2756_v55, %v7173_v49  ;;  %v3164_v20 = vrot.slane %v3150_v3, %v7173_v49  ;;  %v9855_v30 = vshll.u32 %v9854_v28, 16  ;;  %v6383_v59 = vpack.c.bf16 %v7798_v6, %v7798_v6 }
 0x17d   :  { %v7990_v58 = vrot.slane %v7822_v54, %v7173_v49  ;;  %1843 = vrot.lane.b32.xlu1 %v1840_v39, %s6986_s10  ;;  %v2356_v37 = vshrl.u32 %v9854_v28, 16  ;;  %v2367_v52 = vrot.slane %v2365_v42, 1  ;;  %v9858_v51 = vshll.u32 %v9857_v29, 16 }
 0x17e   :  { %v2360_v40 = vrot.slane %v9855_v30, 1  ;;  %v7993_v11 = vcombine.low %v2763_v18, %v2770_v14  ;;  %v7996_v7 = vcombine.low %v3157_v48, %v3164_v20  ;;  %v2381_v34 = vrot.slane %v2379_v44, 1  ;;  %2007 = vrot.lane.b32.xlu0 %v9859_v25, %s6985_s30  ;;  %v9866_v20 = vld [vmem:[#allocation17_spill] sm:$0xff] }
 0x17f   :  { %9856 = vst [vmem:[#allocation49_spill] sm:$0xff] %v7990_v58  ;;  %v2374_v60 = vrot.slane %v9858_v51, 1  ;;  %v1815_v4 = vrot.slane %v1807_v53, %v7173_v49  ;;  %v1822_v6 = vrot.slane %v1808_v1, %v7173_v49  ;;  %v2363_v41 = vshrl.u32 %v7898_v57, 16  ;;  %v9863_v1 = vld [vmem:[#allocation40_spill] sm:$0xff] }
 0x180   :  { %v2370_v50 = vshrl.u32 %v9857_v29, 16  ;;  %v6382_v0 = vpack.c.bf16 %v7801_v43, %v7801_v43  ;;  %v8010_v62 = vrot.slane %v7825_v22, %v7173_v49  ;;  %v2377_v24 = vshrl.u32 %v7904_v63, 16 }
 0x181   :  { %v8014_v46 = vrot.slane %v6383_v59, %v7173_v49  ;;  %2529 = vrot.lane.b32.xlu1 %v1840_v39, %s6984_s0  ;;  %v8019_v42 = vcombine.high %v7990_v58, %v7990_v58  ;;  %v2361_v57 = vor.u32 %v2360_v40, %v2356_v37  ;;  %v2548_v44 = vcombine.low %v9814_v45, %v7990_v58 }
 0x182   :  { %9860 = vst [vmem:[#allocation54_spill] sm:$0xff] %v8010_v62  ;;  %v2368_v43 = vor.u32 %v2367_v52, %v2363_v41  ;;  %v1823_v55 = vcombine.low %v1815_v4, %v1822_v6  ;;  %2013 = vrot.lane.b32.xlu0 %v9863_v1, %s6986_s10  ;;  %v2375_v18 = vor.u32 %v2374_v60, %v2370_v50 }
 0x183   :  { %9861 = vst [vmem:[#allocation52_spill] sm:$0xff] %v8014_v46  ;;  %9862 = vst [vmem:[#allocation60_spill] sm:$0xff] %v8019_v42  ;;  %v2549_v63 = vcombine.low %v8019_v42, %v8014_v46  ;;  %v2382_v3 = vor.u32 %v2381_v34, %v2377_v24  ;;  %v8028_v39 = vrot.slane %v6382_v0, %v7173_v49  ;;  %v2395_v53 = vsel %vm7249_vm3, %v2361_v57, 0 }
 0x184   :  { %v8032_v17 = vcombine.high %v8010_v62, %v8010_v62  ;;  %v2396_v14 = vsel %vm7249_vm3, %v2368_v43, 0  ;;  %v2397_v10 = vsel %vm7249_vm3, %v2375_v18, 0  ;;  %v6368_v28 = vpack.c.bf16 %v9866_v20, %v9866_v20  ;;  %v9868_v43 = vld [vmem:[#allocation20_spill] sm:$0xff] }
 0x185   :  { %9864 = vst [vmem:[#allocation51_spill] sm:$0xff] %v8028_v39  ;;  %1841 = vrot.lane.b32.xlu1 %v1823_v55, %s6986_s10  ;;  %v2398_v48 = vsel %vm7249_vm3, %v2382_v3, 0  ;;  %v2701_v30 = vcombine.low %v2395_v53, %v2396_v14  ;;  %v8047_v59 = vrot.slane %v9814_v45, %v7173_v49  ;;  %v2556_v37 = vrot.slane %v2548_v44, %v7173_v49  ;;  %v9867_v44 = vld [vmem:[#allocation45_spill] sm:$0xff]  ;;  %v9869_v3 = vld [vmem:[#allocation6_spill] sm:$0xff] }
 0x186   :  { %9865 = vst [vmem:[#allocation57_spill] sm:$0xff] %v8032_v17  ;;  %v2702_v40 = vcombine.low %v2397_v10, %v2398_v48  ;;  %v2563_v52 = vrot.slane %v2549_v63, %v7173_v49  ;;  %2722 = vrot.lane.b32.xlu0 %v9851_v8, %s6984_s0  ;;  %v2531_v29 = vcombine.low %v9814_v45, %v8010_v62 }
 0x187   :  { %v2532_v51 = vcombine.low %v8032_v17, %v8028_v39  ;;  %v2709_v60 = vrot.slane %v2701_v30, %v7173_v49  ;;  %v9731_v4 = vshrl.u32 %v8047_v59, 16  ;;  %v9730_v6 = vshll.u32 %v8047_v59, 16 }
 0x188   :  { %v2716_v34 = vrot.slane %v2702_v40, %v7173_v49  ;;  %v3465_v50 = vcombine.low %v7773_v35, %v7808_v21  ;;  %v2564_v0 = vcombine.low %v2556_v37, %v2563_v52  ;;  %v2539_v24 = vrot.slane %v2531_v29, %v7173_v49 }
 0x189   :  { %2527 = vrot.lane.b32.xlu1 %v1823_v55, %s6984_s0  ;;  %v3347_v8 = vrot.slane %v9730_v6, 1  ;;  %v2546_v57 = vrot.slane %v2532_v51, %v7173_v49  ;;  %v964_v63 = vrot.slane %v9868_v43, %v7173_v49  ;;  %v971_v55 = vrot.slane %v6368_v28, %v7173_v49  ;;  %v9871_v28 = vld [vmem:[#allocation10_spill] sm:$0xff]  ;;  %v9876_v43 = vld [vmem:[#allocation44_spill] sm:$0xff] }
 0x18a   :  { %v8062_v41 = vcombine.low %v2709_v60, %v2716_v34  ;;  %2726 = vrot.lane.b32.xlu0 %v9867_v44, %s6985_s30  ;;  %v6362_v53 = vpack.c.bf16 %v9869_v3, %v9869_v3  ;;  %v8089_v10 = vrot.slane %v3465_v50, %v7173_v49  ;;  %v856_v30 = vrot.slane %v9871_v28, %v7173_v49  ;;  %v9872_v60 = vld [vmem:[#allocation22_spill] sm:$0xff]  ;;  %v9873_v34 = vld [vmem:[#allocation9_spill] sm:$0xff] }
 0x18b   :  { %v3348_v18 = vor.u32 %v3347_v8, %v9731_v4  ;;  %v2547_v21 = vcombine.low %v2539_v24, %v2546_v57  ;;  %v972_v48 = vcombine.high %v964_v63, %v964_v63  ;;  %v973_v20 = vcombine.high %v971_v55, %v971_v55  ;;  %v9874_v8 = vld [vmem:[#allocation11_spill] sm:$0xff] }
 0x18c   :  { %v863_v40 = vrot.slane %v6362_v53, %v7173_v49  ;;  %v864_v29 = vcombine.high %v856_v30, %v856_v30  ;;  %v3073_v50 = vcombine.low %v9874_v8, %v9873_v34  ;;  %v2291_v57 = vrot.slane %v971_v55, %v7173_v49  ;;  %v9879_v8 = vld [vmem:[#allocation7_spill] sm:$0xff] }
 0x18d   :  { %2567 = vrot.lane.b32.xlu1 %v2564_v0, %s6985_s30  ;;  %v8082_v35 = vsel %vm7249_vm3, %v3348_v18, 0  ;;  %v2298_v52 = vrot.slane %v973_v20, %v7173_v49  ;;  %v9875_v0 = vld [vmem:[#allocation12_spill] sm:$0xff]  ;;  %v9877_v18 = vld [vmem:[#allocation5_spill] sm:$0xff] }
 0x18e   :  { %9870 = vst [vmem:[#allocation53_spill] sm:$0xff] %v8082_v35  ;;  %2772 = vrot.lane.b32.xlu0 %v7972_v12, %s6986_s10  ;;  %v3466_v14 = vcombine.low %v7812_v15, %v8082_v35  ;;  %v2284_v12 = vrot.slane %v972_v48, %v7173_v49  ;;  %v865_v51 = vcombine.high %v863_v40, %v863_v40  ;;  %v9878_v48 = vld [vmem:[#allocation24_spill] sm:$0xff]  ;;  %v2344_v55 = vshll.u32 %v2291_v57, 16 }
 0x18f   :  { %v3074_v24 = vcombine.low %v9875_v0, %v9814_v45  ;;  %v6363_v3 = vpack.c.bf16 %v9877_v18, %v9877_v18  ;;  %v3081_v20 = vrot.slane %v3073_v50, %v7173_v49  ;;  %v873_v0 = vrot.slane %v9879_v8, %v7173_v49  ;;  %v9880_v15 = vld [vmem:[#allocation8_spill] sm:$0xff]  ;;  %v9881_v50 = vld [vmem:[#allocation15_spill] sm:$0xff] }
 0x190   :  { %v8096_v37 = vrot.slane %v3466_v14, %v7173_v49  ;;  %v2337_v53 = vshll.u32 %v2284_v12, 16  ;;  %v3111_v14 = vcombine.low %v864_v29, %v863_v40  ;;  %v6365_v6 = vpack.c.bf16 %v9880_v15, %v9880_v15 }
 0x191   :  { %2565 = vrot.lane.b32.xlu1 %v2547_v21, %s6985_s30  ;;  %v2351_v21 = vshll.u32 %v2298_v52, 16  ;;  %v3088_v30 = vrot.slane %v3074_v24, %v7173_v49  ;;  %v880_v18 = vrot.slane %v6363_v3, %v7173_v49  ;;  %v2335_v5 = vshrl.u32 %v2284_v12, 16  ;;  %v9884_v12 = vld [vmem:[#allocation31_spill] sm:$0xff] }
 0x192   :  { %2724 = vrot.lane.b32.xlu0 %v9863_v1, %s6984_s0  ;;  %v2277_v1 = vrot.slane %v964_v63, %v7173_v49  ;;  %v3112_v63 = vcombine.low %v865_v51, %v9814_v45  ;;  %v2339_v40 = vrot.slane %v2337_v53, 1  ;;  %v3119_v51 = vrot.slane %v3111_v14, %v7173_v49  ;;  %v9882_v14 = vld [vmem:[#allocation21_spill] sm:$0xff] }
 0x193   :  { %v2353_v29 = vrot.slane %v2351_v21, 1  ;;  %v3089_v24 = vcombine.low %v3081_v20, %v3088_v30  ;;  %v2346_v25 = vrot.slane %v2344_v55, 1  ;;  %v909_v3 = vrot.slane %v7208_v23, %v7173_v49  ;;  %v9887_v55 = vld [vmem:[#allocation4_spill] sm:$0xff] }
 0x194   :  { %v2330_v34 = vshll.u32 %v2277_v1, 16  ;;  %v3126_v4 = vrot.slane %v3112_v63, %v7173_v49  ;;  %v2328_v53 = vshrl.u32 %v2277_v1, 16  ;;  %v2342_v15 = vshrl.u32 %v2291_v57, 16  ;;  %v9886_v57 = vld [vmem:[#allocation3_spill] sm:$0xff] }
 0x195   :  { %1947 = vrot.lane.b32.xlu1 %v9872_v60, %s6985_s30  ;;  %v2349_v60 = vshrl.u32 %v2298_v52, 16  ;;  %v2340_v21 = vor.u32 %v2339_v40, %v2335_v5  ;;  %v916_v20 = vrot.slane %v6365_v6, %v7173_v49  ;;  %v3091_v52 = vcombine.low %v9884_v12, %v9814_v45 }
 0x196   :  { %2728 = vrot.lane.b32.xlu0 %v9876_v43, %s6985_s30  ;;  %v2332_v9 = vrot.slane %v2330_v34, 1  ;;  %v8138_v30 = vcombine.low %v3119_v51, %v3126_v4  ;;  %v2347_v34 = vor.u32 %v2346_v25, %v2342_v15  ;;  %v917_v1 = vcombine.high %v909_v3, %v909_v3  ;;  %v9885_v4 = vld [vmem:[#allocation23_spill] sm:$0xff] }
 0x197   :  { %v2354_v27 = vor.u32 %v2353_v29, %v2349_v60  ;;  %v2392_v5 = vsel %vm7249_vm3, %v2340_v21, 0  ;;  %v918_v60 = vcombine.high %v916_v20, %v916_v20  ;;  %v9889_v12 = vshrl.u32 %v8047_v59, 16 }
 0x198   :  { %9883 = vst [vmem:[#allocation63_spill] sm:$0xff] %v8138_v30  ;;  %v2333_v63 = vor.u32 %v2332_v9, %v2328_v53  ;;  %v9888_v9 = vcombine.low %v9886_v57, %v9887_v55  ;;  %v2393_v29 = vsel %vm7249_vm3, %v2347_v34, 0  ;;  %v3166_v51 = vcombine.low %v917_v1, %v916_v20  ;;  %v9890_v20 = vld [vmem:[#allocation28_spill] sm:$0xff]  ;;  %v9895_v57 = vld [vmem:[#allocation35_spill] sm:$0xff] }
 0x199   :  { %1953 = vrot.lane.b32.xlu1 %v9878_v48, %s6986_s10  ;;  %v2394_v6 = vsel %vm7249_vm3, %v2354_v27, 0  ;;  %v3167_v15 = vcombine.low %v918_v60, %v9814_v45  ;;  %v9892_v1 = vshll.u32 %v8047_v59, 16  ;;  %v9894_v60 = vld [vmem:[#allocation33_spill] sm:$0xff] }
 0x19a   :  { %2774 = vrot.lane.b32.xlu0 %v7993_v11, %s6986_s10  ;;  %v881_v11 = vcombine.high %v873_v0, %v873_v0  ;;  %v3098_v25 = vrot.slane %v9888_v9, %v7173_v49  ;;  %v3105_v0 = vrot.slane %v3091_v52, %v7173_v49  ;;  %v2391_v40 = vsel %vm7249_vm3, %v2333_v63, 0  ;;  %v9896_v9 = vld [vmem:[#allocation37_spill] sm:$0xff] }
 0x19b   :  { %v2684_v27 = vcombine.low %v2391_v40, %v2392_v5  ;;  %v2978_v52 = vrot.slane %v9889_v12, 7  ;;  %v3174_v63 = vrot.slane %v3166_v51, %v7173_v49  ;;  %v3181_v34 = vrot.slane %v3167_v15, %v7173_v49  ;;  %v9898_v40 = vld [vmem:[#allocation16_spill] sm:$0xff]  ;;  %v9900_v51 = vld [vmem:[#allocation27_spill] sm:$0xff] }
 0x19c   :  { %v3128_v23 = vcombine.low %v881_v11, %v880_v18  ;;  %v3106_v11 = vcombine.low %v3098_v25, %v3105_v0  ;;  %v3409_v55 = vcombine.low %v9895_v57, %v9894_v60  ;;  %v3410_v25 = vcombine.low %v9896_v9, %v9814_v45 }
 0x19d   :  { %1943 = vrot.lane.b32.xlu1 %v9881_v50, %s6984_s0  ;;  %v882_v50 = vcombine.high %v880_v18, %v880_v18  ;;  %v2692_v21 = vrot.slane %v2684_v27, %v7173_v49  ;;  %v8182_v5 = vor.u32 %v9892_v1, %v2978_v52  ;;  %v9899_v27 = vld [vmem:[#allocation19_spill] sm:$0xff]  ;;  %v3232_v60 = vrot.slane %v7610_v61, %v7173_v49 }
 0x19e   :  { %3107 = vrot.lane.b32.xlu0 %v3089_v24, %s6984_s0  ;;  %v2685_v24 = vcombine.low %v2393_v29, %v2394_v6  ;;  %v3136_v3 = vrot.slane %v3128_v23, %v7173_v49  ;;  %v3182_v6 = vcombine.low %v3174_v63, %v3181_v34  ;;  %v3417_v0 = vrot.slane %v3409_v55, %v7173_v49 }
 0x19f   :  { %v3129_v18 = vcombine.low %v882_v50, %v9814_v45  ;;  %9893 = vst [vmem:[#allocation29_spill] sm:$0xff] %v8182_v5  ;;  %v3424_v59 = vrot.slane %v3410_v25, %v7173_v49  ;;  %v1117_v63 = vcombine.high %v7619_v13, %v7619_v13  ;;  %v3225_v9 = vrot.slane %v7577_v47, %v7173_v49 }
 0x1a0   :  { %v2699_v50 = vrot.slane %v2685_v24, %v7173_v49  ;;  %v3449_v24 = vcombine.low %v9899_v27, %v8082_v35  ;;  %v3239_v25 = vrot.slane %v7619_v13, %v7173_v49  ;;  %v1134_v27 = vcombine.high %v7572_v19, %v7572_v19 }
 0x1a1   :  { %1949 = vrot.lane.b32.xlu1 %v9882_v14, %s6985_s30  ;;  %v3143_v53 = vrot.slane %v3129_v18, %v7173_v49  ;;  %v9897_v18 = vld [vmem:[#allocation18_spill] sm:$0xff]  ;;  %v3246_v57 = vrot.slane %v1117_v63, %v7173_v49  ;;  %v3278_v61 = vshll.u32 %v3225_v9, 16 }
 0x1a2   :  { %3145 = vrot.lane.b32.xlu0 %v8138_v30, %s6985_s30  ;;  %v2700_v23 = vcombine.low %v2692_v21, %v2699_v50  ;;  %v3448_v29 = vcombine.low %v9898_v40, %v9897_v18  ;;  %v9901_v21 = vld [vmem:[#allocation30_spill] sm:$0xff]  ;;  %v9902_v50 = vld [vmem:[#allocation32_spill] sm:$0xff]  ;;  %v3292_v18 = vshll.u32 %v3239_v25, 16  ;;  %v9905_v40 = vcombine.low %v8089_v10, %v8096_v37 }
 0x1a3   :  { %v3426_v12 = vcombine.low %v9902_v50, %v9901_v21  ;;  %v3276_v50 = vshrl.u32 %v3225_v9, 16  ;;  %v3274_v63 = vrot.slane %v1134_v27, %v7173_v49  ;;  %v3267_v9 = vrot.slane %v7572_v19, %v7173_v49 }
 0x1a5   :  { %1955 = vrot.lane.b32.xlu1 %v9885_v4, %s6986_s10  ;;  %v3434_v1 = vrot.slane %v3426_v12, %v7173_v49  ;;  %v3290_v12 = vshrl.u32 %v3239_v25, 16 }
 0x1a6   :  { %3183 = vrot.lane.b32.xlu0 %v7996_v7, %s6986_s10 }
 0x1a9   :  { %2668 = vrot.lane.b32.xlu1 %v9878_v48, %s6984_s0  ;;  %v8174_v48 = vcombine.low %v3136_v3, %v3143_v53  ;;  %v3456_v3 = vrot.slane %v3448_v29, %v7173_v49  ;;  %v8204_v53 = vpop.permute.xlu0 %2614 }
 0x1aa   :  { %3109 = vrot.lane.b32.xlu0 %v3106_v11, %s6984_s0  ;;  %v3425_v11 = vcombine.low %v3417_v0, %v3424_v59  ;;  %v3299_v59 = vshll.u32 %v3246_v57, 16 }
 0x1ab   :  { %9891 = vst [vmem:[#allocation41_spill] sm:$0xff] %v8174_v48 }
 0x1ac   :  { %v3301_v13 = vrot.slane %v3299_v59, 1 }
 0x1ad   :  { %2672 = vrot.lane.b32.xlu1 %v9890_v20, %s6985_s30  ;;  %v8216_v34 = vpop.permute.xlu0 %2664 }
 0x1ae   :  { %3147 = vrot.lane.b32.xlu0 %v8174_v48, %s6985_s30 }
 0x1b1   :  { %2718 = vrot.lane.b32.xlu1 %v2700_v23, %s6986_s10  ;;  %v9904_v23 = vld [vmem:[#allocation47_spill] sm:$0xff]  ;;  %v8232_v0 = vpop.permute.xlu0 %2618 }
 0x1b2   :  { %3185 = vrot.lane.b32.xlu0 %v3182_v6, %s6986_s10 }
 0x1b5   :  { %2670 = vrot.lane.b32.xlu1 %v9885_v4, %s6984_s0  ;;  %v3463_v4 = vrot.slane %v3449_v24, %v7173_v49  ;;  %v9906_v24 = vld [vmem:[#allocation46_spill] sm:$0xff] }
 0x1b6   :  { %3405 = vrot.lane.b32.xlu0 %v7996_v7, %s6984_s0  ;;  %v9903_v7 = vld [vmem:[#allocation34_spill] sm:$0xff] }
 0x1b7   :  { %v3464_v15 = vcombine.low %v3456_v3, %v3463_v4  ;;  %v3427_v52 = vcombine.low %v9903_v7, %v9814_v45  ;;  %v3283_v3 = vshrl.u32 %v3232_v60, 16  ;;  %v3294_v4 = vrot.slane %v3292_v18, 1  ;;  %v9907_v7 = vld [vmem:[#allocation56_spill] sm:$0xff] }
 0x1b9   :  { %2674 = vrot.lane.b32.xlu1 %v9900_v51, %s6985_s30 }
 0x1ba   :  { %3443 = vrot.lane.b32.xlu0 %v3425_v11, %s6985_s30  ;;  %v3280_v11 = vrot.slane %v3278_v61, 1  ;;  %v3327_v61 = vshll.u32 %v3274_v63, 16 }
 0x1bd   :  { %2720 = vrot.lane.b32.xlu1 %v8062_v41, %s6986_s10  ;;  %v3441_v41 = vrot.slane %v3427_v52, %v7173_v49  ;;  %v3260_v52 = vrot.slane %v9907_v7, %v7173_v49 }
 0x1be   :  { %3482 = vrot.lane.b32.xlu0 %v3464_v15, %s6986_s10  ;;  %v3297_v15 = vshrl.u32 %v3246_v57, 16  ;;  %v9909_v57 = vld [vmem:[#allocation55_spill] sm:$0xff] }
 0x1bf   :  { %v3442_v55 = vcombine.low %v3434_v1, %v3441_v41  ;;  %v3281_v41 = vor.u32 %v3280_v11, %v3276_v50  ;;  %v3313_v59 = vshll.u32 %v3260_v52, 16  ;;  %v3311_v50 = vshrl.u32 %v3260_v52, 16 }
 0x1c0   :  { %v3302_v37 = vor.u32 %v3301_v13, %v3297_v15  ;;  %v3320_v13 = vshll.u32 %v3267_v9, 16 }
 0x1c1   :  { %3026 = vrot.lane.b32.xlu1 %v9904_v23, %s6984_s0  ;;  %v9908_v23 = vld [vmem:[#allocation58_spill] sm:$0xff] }
 0x1c2   :  { %3407 = vrot.lane.b32.xlu0 %v3182_v6, %s6984_s0  ;;  %v3285_v6 = vshll.u32 %v3232_v60, 16  ;;  %v8247_v21 = vpop.permute.xlu1 %1767  ;;  %v3295_v60 = vor.u32 %v3294_v4, %v3290_v12  ;;  %v3329_v4 = vrot.slane %v3327_v61, 1  ;;  %v3322_v12 = vrot.slane %v3320_v13, 1  ;;  %v9911_v13 = vld [vmem:[#allocation26_spill] sm:$0xff] }
 0x1c3   :  { %v1254_v61 = vshrl.u32 %v8032_v17, 16 }
 0x1c4   :  { %v3287_v29 = vrot.slane %v3285_v6, 1  ;;  %v3342_v6 = vsel %vm7249_vm3, %v3302_v37, 0  ;;  %v1247_v37 = vshrl.u32 %v8010_v62, 16 }
 0x1c5   :  { %3030 = vrot.lane.b32.xlu1 %v7599_v38, %s6985_s30  ;;  %v8241_v47 = vpop.permute.xlu0 %1765 }
 0x1c6   :  { %3445 = vrot.lane.b32.xlu0 %v3442_v55, %s6985_s30  ;;  %v3288_v10 = vor.u32 %v3287_v29, %v3283_v3  ;;  %v3253_v55 = vrot.slane %v9909_v57, %v7173_v49  ;;  %v8266_v18 = vpop.permute.xlu1 %1941  ;;  %v3341_v29 = vsel %vm7249_vm3, %v3295_v60, 0  ;;  %v3315_v3 = vrot.slane %v3313_v59, 1 }
 0x1c7   :  { %v3368_v11 = vcombine.low %v3341_v29, %v3342_v6  ;;  %v3318_v6 = vshrl.u32 %v3267_v9, 16  ;;  %v9910_v29 = vld [vmem:[#allocation25_spill] sm:$0xff]  ;;  %v1249_v9 = vrot.slane %v1247_v37, 7  ;;  %v1017_v37 = vrot.slane %v9900_v51, %v7173_v49 }
 0x1c8   :  { %v3340_v25 = vsel %vm7249_vm3, %v3288_v10, 0  ;;  %v3306_v19 = vshll.u32 %v3253_v55, 16  ;;  %v3325_v10 = vshrl.u32 %v3274_v63, 16  ;;  %v3304_v57 = vshrl.u32 %v3253_v55, 16 }
 0x1c9   :  { %3034 = vrot.lane.b32.xlu1 %v7667_v31, %s6986_s10  ;;  %v8254_v1 = vpop.permute.xlu0 %2616  ;;  %v3382_v60 = vrot.slane %v3368_v11, %v7173_v49  ;;  %v6370_v55 = vpack.c.bf16 %v9911_v13, %v9911_v13  ;;  %v1250_v11 = vshll.u32 %v8010_v62, 16  ;;  %v1242_v13 = vrot.slane %v9814_v45, 7 }
 0x1ca   :  { %3484 = vrot.lane.b32.xlu0 %v9905_v40, %s6986_s10  ;;  %v3339_v40 = vsel %vm7249_vm3, %v3281_v41, 0  ;;  %v3308_v15 = vrot.slane %v3306_v19, 1  ;;  %v3330_v59 = vor.u32 %v3329_v4, %v3325_v10  ;;  %v6371_v19 = vpack.c.bf16 %v9910_v29, %v9910_v29 }
 0x1cb   :  { %v1256_v4 = vrot.slane %v1254_v61, 7  ;;  %v1000_v29 = vrot.slane %v9890_v20, %v7173_v49  ;;  %v1268_v51 = vshrl.u32 %v7990_v58, 16  ;;  %v1252_v35 = vor.u32 %v1250_v11, %v1249_v9 }
 0x1cc   :  { %v3309_v63 = vor.u32 %v3308_v15, %v3304_v57  ;;  %v1257_v15 = vshll.u32 %v8032_v17, 16  ;;  %v1072_v20 = vrot.slane %v9867_v44, %v7173_v49  ;;  %v1285_v44 = vshll.u32 %v8014_v46, 16 }
 0x1cd   :  { %3028 = vrot.lane.b32.xlu1 %v9906_v24, %s6984_s0  ;;  %v8272_v27 = vpop.permute.xlu0 %2620  ;;  %v3367_v24 = vcombine.low %v3339_v40, %v3340_v25  ;;  %v3316_v25 = vor.u32 %v3315_v3, %v3311_v50  ;;  %v3323_v40 = vor.u32 %v3322_v12, %v3318_v6  ;;  %v1264_v12 = vshll.u32 %v8028_v39, 16 }
 0x1ce   :  { %v8354_v32 = vrot.slane %v1000_v29, %v7173_v49  ;;  %v1080_v48 = vcombine.high %v1072_v20, %v1072_v20 }
 0x1cf   :  { %v3375_v41 = vrot.slane %v3367_v24, %v7173_v49  ;;  %v3344_v3 = vsel %vm7249_vm3, %v3316_v25, 0  ;;  %v3343_v25 = vsel %vm7249_vm3, %v3309_v63, 0  ;;  %v3345_v6 = vsel %vm7249_vm3, %v3323_v40, 0 }
 0x1d0   :  { %v3384_v61 = vcombine.low %v3343_v25, %v3344_v3  ;;  %v1259_v63 = vor.u32 %v1257_v15, %v1256_v4  ;;  %v1007_v3 = vrot.slane %v6370_v55, %v7173_v49  ;;  %v1271_v25 = vshll.u32 %v7990_v58, 16 }
 0x1d1   :  { %3032 = vrot.lane.b32.xlu1 %v9908_v23, %s6985_s30  ;;  %v3383_v24 = vcombine.low %v3375_v41, %v3382_v60  ;;  %v9912_v60 = vld [vmem:[#allocation43_spill] sm:$0xff]  ;;  %v8334_v4 = vsel %vm7623_vm6, 0, %v1242_v13  ;;  %v1270_v55 = vrot.slane %v1268_v51, 7  ;;  %v8348_v51 = vrot.slane %v1017_v37, %v7173_v49 }
 0x1d2   :  { %v6374_v57 = vpack.c.bf16 %v9912_v60, %v9912_v60  ;;  %v1282_v60 = vshrl.u32 %v8014_v46, 16  ;;  %v3392_v11 = vrot.slane %v3384_v61, %v7173_v49  ;;  %9913 = vst [vmem:[#allocation13_spill] sm:$0xff] %v8334_v4 }
 0x1d3   :  { %v8277_v7 = vpop.permute.xlu1 %2612 }
 0x1d5   :  { %3036 = vrot.lane.b32.xlu1 %v7631_v56, %s6986_s10 }
 0x1d7   :  { %v8299_v10 = vpop.permute.xlu1 %1805 }
 0x1d9   :  { %3351 = vrot.lane.b32.xlu1 %v7667_v31, %s6984_s0  ;;  %v1261_v31 = vshrl.u32 %v8028_v39, 16 }
 0x1db   :  { %v1263_v50 = vrot.slane %v1261_v31, 7 }
 0x1dc   :  { %v8285_v52 = vpop.permute.xlu0 %2666 }
 0x1dd   :  { %3355 = vrot.lane.b32.xlu1 %v7825_v22, %s6985_s30  ;;  %v3346_v22 = vsel %vm7249_vm3, %v3330_v59, 0  ;;  %v1024_v59 = vrot.slane %v6371_v19, %v7173_v49  ;;  %v1266_v23 = vor.u32 %v1264_v12, %v1263_v50  ;;  %v1025_v19 = vcombine.high %v1017_v37, %v1017_v37 }
 0x1de   :  { %v3385_v31 = vcombine.low %v3345_v6, %v3346_v22  ;;  %v1079_v22 = vrot.slane %v6374_v57, %v7173_v49  ;;  %v1278_v6 = vshll.u32 %v8019_v42, 16  ;;  %v1284_v50 = vrot.slane %v1282_v60, 7 }
 0x1df   :  { %v1299_v12 = vsel %vm7623_vm6, 0, %v1252_v35  ;;  %v1300_v57 = vsel %vm7623_vm6, 0, %v1259_v63  ;;  %v1301_v61 = vsel %vm7623_vm6, 0, %v1266_v23  ;;  %v1026_v13 = vcombine.high %v1024_v59, %v1024_v59 }
 0x1e0   :  { %v8301_v41 = vpop.permute.xlu0 %1999  ;;  %v1008_v60 = vcombine.high %v1000_v29, %v1000_v29  ;;  %v1009_v35 = vcombine.high %v1007_v3, %v1007_v3  ;;  %v8357_v63 = vrot.slane %v1007_v3, %v7173_v49  ;;  %v1696_v37 = vcombine.low %v8334_v4, %v1299_v12 }
 0x1e1   :  { %3401 = vrot.lane.b32.xlu1 %v3383_v24, %s6986_s10  ;;  %v1275_v24 = vshrl.u32 %v8019_v42, 16  ;;  %v1697_v38 = vcombine.low %v1300_v57, %v1301_v61  ;;  %v1081_v30 = vcombine.high %v1079_v22, %v1079_v22  ;;  %v1287_v58 = vor.u32 %v1285_v44, %v1284_v50 }
 0x1e2   :  { %v8365_v29 = vrot.slane %v1026_v13, %v7173_v49  ;;  %v1518_v3 = vshrl.u32 %v8348_v51, 16  ;;  %v8384_v44 = vrot.slane %v1080_v48, %v7173_v49  ;;  %v1704_v50 = vrot.slane %v1696_v37, %v7173_v49 }
 0x1e3   :  { %v1277_v15 = vrot.slane %v1275_v24, 7  ;;  %v8351_v24 = vrot.slane %v1024_v59, %v7173_v49  ;;  %v1273_v59 = vor.u32 %v1271_v25, %v1270_v55  ;;  %v1711_v57 = vrot.slane %v1697_v38, %v7173_v49 }
 0x1e4   :  { %v8320_v40 = vpop.permute.xlu0 %2005  ;;  %v8389_v61 = vrot.slane %v1081_v30, %v7173_v49  ;;  %v8401_v37 = vrot.slane %v1009_v35, %v7173_v49  ;;  %v1625_v25 = vshrl.u32 %v8384_v44, 16  ;;  %v1504_v46 = vshrl.u32 %v8357_v63, 16 }
 0x1e5   :  { %3353 = vrot.lane.b32.xlu1 %v7631_v56, %s6984_s0  ;;  %v3399_v56 = vrot.slane %v3385_v31, %v7173_v49  ;;  %v1280_v42 = vor.u32 %v1278_v6, %v1277_v15  ;;  %v8376_v6 = vrot.slane %v1008_v60, %v7173_v49  ;;  %v1089_v15 = vrot.slane %v9876_v43, %v7173_v49 }
 0x1e6   :  { %v8328_v9 = vpop.permute.xlu1 %2610  ;;  %v1302_v13 = vsel %vm7623_vm6, 0, %v1273_v59  ;;  %v8397_v43 = vrot.slane %v1518_v3, 7  ;;  %v8407_v59 = vrot.slane %v1072_v20, %v7173_v49  ;;  %v1712_v35 = vcombine.low %v1704_v50, %v1711_v57  ;;  %v6900_v50 = vld [vmem:[%s9657_s2 + $0x80] sm:$0xff]  }
 0x1e7   :  { %v3400_v45 = vcombine.low %v3392_v11, %v3399_v56  ;;  %v9914_v56 = vld [vmem:[#allocation42_spill] sm:$0xff]  ;;  %v1303_v60 = vsel %vm7623_vm6, 0, %v1280_v42  ;;  %v8410_v42 = vrot.slane %v1079_v22, %v7173_v49  ;;  %v1097_v3 = vcombine.high %v1089_v15, %v1089_v15 }
 0x1e8   :  { %v8345_v31 = vpop.permute.xlu0 %2011  ;;  %v1713_v11 = vcombine.low %v8334_v4, %v1302_v13  ;;  %v1497_v30 = vshrl.u32 %v8376_v6, 16  ;;  %v1639_v20 = vshrl.u32 %v8389_v61, 16  ;;  %v2018_v13 = vsel %vm2015_vm7, %v1712_v35, %v8241_v47  ;;  %v6901_v4 = vld [vmem:[%s9657_s2 + $0xc8] sm:$0xff]  }
 0x1e9   :  { %3357 = vrot.lane.b32.xlu1 %v7822_v54, %s6985_s30  ;;  %v8360_v54 = vrot.slane %v1025_v19, %v7173_v49  ;;  %v6375_v19 = vpack.c.bf16 %v9914_v56, %v9914_v56  ;;  %v1304_v56 = vsel %vm7623_vm6, 0, %v1287_v58  ;;  %v1618_v57 = vshrl.u32 %v8407_v59, 16 }
 0x1ea   :  { %v1714_v12 = vcombine.low %v1303_v60, %v1304_v56  ;;  %v1632_v60 = vshrl.u32 %v8410_v42, 16  ;;  %v8439_v47 = vrot.slane %v1097_v3, %v7173_v49  ;;  %v1721_v35 = vrot.slane %v1713_v11, %v7173_v49 }
 0x1eb   :  { %v1804_v23 = vpop.permute.xlu1 %1803  ;;  %v1096_v38 = vrot.slane %v6375_v19, %v7173_v49  ;;  %v1499_v39 = vrot.slane %v1497_v30, 7  ;;  %v1627_v14 = vrot.slane %v1625_v25, 7  ;;  %v6902_v25 = vld [vmem:[%s9657_s2 + $0x88] sm:$0xff]   ;;  %v1620_v30 = vrot.slane %v1618_v57, 7 }
 0x1ec   :  { %v8371_v5 = vpop.permute.xlu0 %2001  ;;  %v2024_v56 = vsel %vm2022_vm8, %v2018_v13, %v1804_v23  ;;  %v1728_v62 = vrot.slane %v1714_v12, %v7173_v49  ;;  %v2048_v23 = vsel %vm2027_vm9, %v7804_v26, %v7816_v33  ;;  %v1628_v26 = vshll.u32 %v8384_v44, 16 }
 0x1ed   :  { %3403 = vrot.lane.b32.xlu1 %v3400_v45, %s6986_s10  ;;  %9915 = vst [vmem:[#allocation48_spill] sm:$0xff] %v8371_v5  ;;  %v1490_v45 = vshrl.u32 %v8354_v32, 16  ;;  %v1098_v17 = vcombine.high %v1096_v38, %v1096_v38  ;;  %v1511_v5 = vshrl.u32 %v8401_v37, 16  ;;  %v8450_v3 = vrot.slane %v1096_v38, %v7173_v49 }
 0x1ee   :  { %v1634_v33 = vrot.slane %v1632_v60, 7  ;;  %v1635_v57 = vshll.u32 %v8410_v42, 16  ;;  %v2794_v44 = vsel %vm2015_vm7, %v9871_v28, %v8204_v53 }
 0x1ef   :  { %v8379_v55 = vpop.permute.xlu1 %1843  ;;  %v8417_v19 = vrot.slane %v1490_v45, 7  ;;  %v8430_v45 = vrot.slane %v1089_v15, %v7173_v49  ;;  %v8453_v11 = vrot.slane %v1098_v17, %v7173_v49  ;;  %v6903_v17 = vld [vmem:[%s9657_s2 + $0xd0] sm:$0xff]   ;;  %v2799_v13 = vsel %vm2022_vm8, %v2794_v44, %v8232_v0  ;;  %v6905_v0 = vld [vmem:[%s9657_s2 + $0xd8] sm:$0xff]  }
 0x1f0   :  { %v8415_v48 = vpop.permute.xlu0 %2007  ;;  %v1637_v28 = vor.u32 %v1635_v57, %v1634_v33  ;;  %v1663_v44 = vshll.u32 %v8450_v3, 16 }
 0x1f1   :  { %9916 = vst [vmem:[#allocation50_spill] sm:$0xff] %v8415_v48  ;;  %v1641_v48 = vrot.slane %v1639_v20, 7  ;;  %v1642_v20 = vshll.u32 %v8389_v61, 16  ;;  %v1646_v38 = vshrl.u32 %v8430_v45, 16  ;;  %v1630_v61 = vor.u32 %v1628_v26, %v1627_v14 }
 0x1f3   :  { %v8412_v58 = vpop.permute.xlu1 %2529  ;;  %v1644_v60 = vor.u32 %v1642_v20, %v1641_v48  ;;  %v1506_v48 = vrot.slane %v1504_v46, 7  ;;  %v2803_v46 = vsel %vm2027_vm9, %v2799_v13, %v8216_v34  ;;  %v1648_v26 = vrot.slane %v1646_v38, 7 }
 0x1f4   :  { %v8455_v12 = vpop.permute.xlu0 %2013  ;;  %v9918_v20 = vshll.u32 %v8376_v6, 16  ;;  %v1683_v34 = vsel %vm7623_vm6, 0, %v1637_v28  ;;  %v1670_v38 = vshll.u32 %v8453_v11, 16  ;;  %v1539_v6 = vshrl.u32 %v8365_v29, 16 }
 0x1f5   :  { %9917 = vst [vmem:[#allocation40_spill] sm:$0xff] %v8455_v12 }
 0x1f7   :  { %v1842_v22 = vpop.permute.xlu1 %1841 }
 0x1f8   :  { %v2029_v15 = vsel %vm2027_vm9, %v2024_v56, %v1842_v22  ;;  %v1621_v56 = vshll.u32 %v8407_v59, 16  ;;  %v1513_v59 = vrot.slane %v1511_v5, 7 }
 0x1f9   :  { %3807 = vmatmul.mubr.bf16.vlgmr.msra.gmra.mrb[0].mxu1 %v2029_v15  ;;  %v1729_v15 = vcombine.low %v1721_v35, %v1728_v62  ;;  %v6904_v62 = vld [vmem:[%s9657_s2 + $0x90] sm:$0xff]   ;;  %v1649_v35 = vshll.u32 %v8430_v45, 16 }
 0x1fa   :  { %6588 = vmatpush3.bf16.msra.mxu1 %v6900_v50  ;;  %3814 = vmatprep.mubr.bf16.mxu1 %v2048_v23  ;;  %v1653_v50 = vshrl.u32 %v8439_v47, 16  ;;  %v1667_v23 = vshrl.u32 %v8453_v11, 16  ;;  %v1623_v42 = vor.u32 %v1621_v56, %v1620_v30 }
 0x1fb   :  { %v2528_v22 = vpop.permute.xlu1 %2527  ;;  %6589 = vmatprep.subr.bf16.mxu1 %v6901_v4  ;;  %v1660_v4 = vshrl.u32 %v8450_v3, 16  ;;  %v2021_v12 = vsel %vm2015_vm7, %v1729_v15, %v8247_v21  ;;  %v1514_v21 = vshll.u32 %v8401_v37, 16  ;;  %v1656_v37 = vshll.u32 %v8439_v47, 16  ;;  %v6907_v47 = vld [vmem:[%s9657_s2 + $0xe0] sm:$0xff]  }
 0x1fc   :  { %v2026_v14 = vsel %vm2022_vm8, %v2021_v12, %v8299_v10  ;;  %v1655_v30 = vrot.slane %v1653_v50, 7  ;;  %v1682_v10 = vsel %vm7623_vm6, 0, %v1630_v61  ;;  %v1684_v12 = vsel %vm7623_vm6, 0, %v1644_v60 }
 0x1fd   :  { %v2032_v5 = vsel %vm2027_vm9, %v2026_v14, %v8379_v55  ;;  %v1662_v45 = vrot.slane %v1660_v4, 7  ;;  %v1669_v33 = vrot.slane %v1667_v23, 7  ;;  %v6906_v55 = vld [vmem:[%s9657_s2 + $0x98] sm:$0xff]   ;;  %v1516_v50 = vor.u32 %v1514_v21, %v1513_v59  ;;  %v6909_v14 = vld [vmem:[%s9657_s2 + $0xe8] sm:$0xff]  }
 0x1fe   :  { %6590 = vmatpush3.bf16.msra.mxu1 %v6902_v25  ;;  %v8490_v25 = vpop.permute.xlu0 %2722  ;;  %v1681_v56 = vsel %vm7623_vm6, 0, %v1623_v42  ;;  %v1966_v57 = vcombine.low %v1683_v34, %v1684_v12  ;;  %v1658_v61 = vor.u32 %v1656_v37, %v1655_v30  ;;  %v9919_v4 = vshll.u32 %v8354_v32, 16  ;;  %v6910_v37 = vld [vmem:[%s9657_s2 + $0xa8] sm:$0xff]  }
 0x1ff   :  { %v8483_v53 = vpop.permute.xlu1 %2567  ;;  %6591 = vmatprep.subr.bf16.mxu1 %v6903_v17  ;;  %v1502_v17 = vor.u32 %v9918_v20, %v1499_v39  ;;  %v1965_v15 = vcombine.low %v1681_v56, %v1682_v10  ;;  %v2778_v39 = vsel %vm2015_vm7, %v7952_v16, %v2528_v22  ;;  %v1651_v11 = vor.u32 %v1649_v35, %v1648_v26  ;;  %v6908_v16 = vld [vmem:[%s9657_s2 + $0xa0] sm:$0xff]  }
 0x200   :  { %v1495_v23 = vor.u32 %v9919_v4, %v8417_v19  ;;  %v1672_v42 = vor.u32 %v1670_v38, %v1669_v33  ;;  %v1665_v3 = vor.u32 %v1663_v44, %v1662_v45  ;;  %v1556_v32 = vsel %vm7623_vm6, 0, %v1516_v50  ;;  %v6913_v4 = vld [vmem:[%s9657_s2 + $0xf8] sm:$0xff]  }
 0x201   :  { %3815 = vmatmul.mubr.bf16.gmra.mrb[4].mxu1 %v2032_v5  ;;  %v1554_v22 = vsel %vm7623_vm6, 0, %v1502_v17  ;;  %v1980_v21 = vrot.slane %v1966_v57, %v7173_v49  ;;  %v9921_v5 = vshrl.u32 %v8360_v54, 16  ;;  %v1686_v30 = vsel %vm7623_vm6, 0, %v1658_v61  ;;  %v6911_v17 = vld [vmem:[%s9657_s2 + $0xf0] sm:$0xff]  }
 0x202   :  { %3822 = vmatprep.mubr.bf16.mxu1 %v2803_v46  ;;  %6592 = vmatpush3.bf16.msra.mxu1 %v6904_v62  ;;  %v9920_v62 = vshll.u32 %v8357_v63, 16  ;;  %v8524_v28 = vpop.permute.xlu0 %2726  ;;  %v2797_v63 = vsel %vm2015_vm7, %v9879_v8, %v8254_v1  ;;  %v1541_v1 = vrot.slane %v1539_v6, 7  ;;  %v1553_v46 = vsel %vm7623_vm6, 0, %v1495_v23  ;;  %v6912_v6 = vld [vmem:[%s9657_s2 + $0xb0] sm:$0xff]  }
 0x203   :  { %v2566_v13 = vpop.permute.xlu1 %2565  ;;  %6593 = vmatprep.subr.bf16.mxu1 %v6905_v0  ;;  %v2801_v0 = vsel %vm2022_vm8, %v2797_v63, %v8272_v27  ;;  %v1527_v8 = vrot.slane %v9921_v5, 7  ;;  %v9922_v27 = vshrl.u32 %v8351_v24, 16  ;;  %v1688_v26 = vsel %vm7623_vm6, 0, %v1672_v42  ;;  %v9927_v5 = vld [vmem:[#allocation50_spill] sm:$0xff] }
 0x204   :  { %v2783_v60 = vsel %vm2022_vm8, %v2778_v39, %v2566_v13  ;;  %v1509_v59 = vor.u32 %v9920_v62, %v1506_v48  ;;  %v1973_v48 = vrot.slane %v1965_v15, %v7173_v49  ;;  %v2806_v10 = vsel %vm2027_vm9, %v2801_v0, %v8285_v52  ;;  %v9926_v0 = vld [vmem:[#allocation48_spill] sm:$0xff] }
 0x205   :  { %v2787_v35 = vsel %vm2027_vm9, %v2783_v60, %v8328_v9  ;;  %v1534_v12 = vrot.slane %v9922_v27, 7  ;;  %v1542_v52 = vshll.u32 %v8365_v29, 16  ;;  %v1907_v45 = vcombine.low %v1553_v46, %v1554_v22 }
 0x206   :  { %6594 = vmatpush3.bf16.msra.mxu1 %v6906_v55  ;;  %v1555_v9 = vsel %vm7623_vm6, 0, %v1509_v59  ;;  %v1685_v55 = vsel %vm7623_vm6, 0, %v1651_v11  ;;  %v1981_v50 = vcombine.low %v1973_v48, %v1980_v21  ;;  %v2781_v56 = vsel %vm2015_vm7, %v7786_v36, %v8412_v58  ;;  %v2773_v13 = vpop.permute.xlu0 %2772 }
 0x207   :  { %v8536_v19 = vpop.permute.xlu1 %1947  ;;  %6595 = vmatprep.subr.bf16.mxu1 %v6907_v47  ;;  %v1908_v33 = vcombine.low %v1555_v9, %v1556_v32  ;;  %v1687_v34 = vsel %vm7623_vm6, 0, %v1665_v3  ;;  %v1982_v29 = vcombine.low %v1685_v55, %v1686_v30  ;;  %v2785_v38 = vsel %vm2022_vm8, %v2781_v56, %v8483_v53 }
 0x208   :  { %v1983_v47 = vcombine.low %v1687_v34, %v1688_v26  ;;  %v9923_v15 = vshll.u32 %v8360_v54, 16  ;;  %v1544_v39 = vor.u32 %v1542_v52, %v1541_v1  ;;  %v9924_v36 = vshll.u32 %v8348_v51, 16  ;;  %v9930_v34 = vld [vmem:[#allocation22_spill] sm:$0xff] }
 0x209   :  { %3823 = vmatmul.mubr.bf16.gmra.mrb[8].mxu1 %v2787_v35  ;;  %v9925_v44 = vshll.u32 %v8351_v24, 16  ;;  %v1915_v60 = vrot.slane %v1907_v45, %v7173_v49  ;;  %v2068_v53 = vsel %vm2015_vm7, %v1981_v50, %v8301_v41  ;;  %v1922_v23 = vrot.slane %v1908_v33, %v7173_v49 }
 0x20a   :  { %3830 = vmatprep.mubr.bf16.mxu1 %v2806_v10  ;;  %6596 = vmatpush3.bf16.msra.mxu1 %v6908_v16  ;;  %v1530_v57 = vor.u32 %v9923_v15, %v1527_v8  ;;  %v1523_v58 = vor.u32 %v9924_v36, %v8397_v43  ;;  %v2073_v51 = vsel %vm2022_vm8, %v2068_v53, %v8320_v40  ;;  %v1560_v59 = vsel %vm7623_vm6, 0, %v1544_v39  ;;  %v2725_v42 = vpop.permute.xlu0 %2724  ;;  %v6914_v40 = vld [vmem:[%s9657_s2 + $0xb8] sm:$0xff]  }
 0x20b   :  { %v1954_v20 = vpop.permute.xlu1 %1953  ;;  %6597 = vmatprep.subr.bf16.mxu1 %v6909_v14  ;;  %v1537_v61 = vor.u32 %v9925_v44, %v1534_v12  ;;  %v1990_v43 = vrot.slane %v1982_v29, %v7173_v49  ;;  %v2790_v24 = vsel %vm2027_vm9, %v2785_v38, %v8277_v7  ;;  %v1997_v62 = vrot.slane %v1983_v47, %v7173_v49  ;;  %v9931_v47 = vld [vmem:[#allocation38_spill] sm:$0xff]  ;;  %v9932_v36 = vld [vmem:[#allocation21_spill] sm:$0xff] }
 0x20c   :  { %v1558_v41 = vsel %vm7623_vm6, 0, %v1530_v57  ;;  %v2077_v11 = vsel %vm2027_vm9, %v2073_v51, %v8345_v31  ;;  %v1557_v7 = vsel %vm7623_vm6, 0, %v1523_v58  ;;  %v1923_v22 = vcombine.low %v1915_v60, %v1922_v23 }
 0x20d   :  { %v1559_v16 = vsel %vm7623_vm6, 0, %v1537_v61  ;;  %v1924_v32 = vcombine.low %v1557_v7, %v1558_v41  ;;  %v1998_v14 = vcombine.low %v1990_v43, %v1997_v62  ;;  %v9934_v43 = vld [vmem:[#allocation54_spill] sm:$0xff]  ;;  %v9935_v62 = vld [vmem:[#allocation57_spill] sm:$0xff] }
 0x20e   :  { %6598 = vmatpush3.bf16.msra.mxu1 %v6910_v37  ;;  %v1925_v63 = vcombine.low %v1559_v16, %v1560_v59  ;;  %v2052_v31 = vsel %vm2015_vm7, %v1923_v22, %v8266_v18  ;;  %v2729_v10 = vpop.permute.xlu0 %2728  ;;  %v9928_v18 = vld [vmem:[#allocation40_spill] sm:$0xff]  ;;  %v9929_v37 = vld [vmem:[#allocation39_spill] sm:$0xff]  ;;  %v2853_v41 = vrot.slane %v9935_v62, %v7173_v49 }
 0x20f   :  { %v1944_v54 = vpop.permute.xlu1 %1943  ;;  %6599 = vmatprep.subr.bf16.mxu1 %v6911_v17  ;;  %v2071_v48 = vsel %vm2015_vm7, %v1998_v14, %v9926_v0  ;;  %v2057_v21 = vsel %vm2022_vm8, %v2052_v31, %v8536_v19  ;;  %v1932_v1 = vrot.slane %v1924_v32, %v7173_v49  ;;  %v2826_v52 = vsel %vm2015_vm7, %v9929_v37, %v8490_v25  ;;  %v9937_v31 = vld [vmem:[#allocation29_spill] sm:$0xff]  ;;  %v9940_v37 = vld [vmem:[#allocation66_spill] sm:$0xff] }
 0x210   :  { %v2075_v8 = vsel %vm2022_vm8, %v2071_v48, %v9927_v5  ;;  %v1939_v30 = vrot.slane %v1925_v63, %v7173_v49  ;;  %v2061_v27 = vsel %vm2027_vm9, %v2057_v21, %v1954_v20  ;;  %v2831_v55 = vsel %vm2022_vm8, %v2826_v52, %v8524_v28  ;;  %v9936_v63 = vld [vmem:[#allocation52_spill] sm:$0xff]  ;;  %v9941_v52 = vld [vmem:[#allocation65_spill] sm:$0xff] }
 0x211   :  { %3831 = vmatmul.mubr.bf16.gmra.mrb[12].mxu1 %v2790_v24  ;;  %v2080_v12 = vsel %vm2027_vm9, %v2075_v8, %v9928_v18  ;;  %v2835_v17 = vsel %vm2027_vm9, %v2831_v55, %v2773_v13  ;;  %v2829_v25 = vsel %vm2015_vm7, %v9931_v47, %v2725_v42  ;;  %v2846_v24 = vrot.slane %v9934_v43, %v7173_v49  ;;  %v9938_v18 = vld [vmem:[#allocation49_spill] sm:$0xff] }
 0x212   :  { %3838 = vmatprep.mubr.bf16.mxu1 %v2077_v11  ;;  %6600 = vmatpush3.bf16.msra.mxu1 %v6912_v6  ;;  %v1940_v9 = vcombine.low %v1932_v1, %v1939_v30  ;;  %v2775_v26 = vpop.permute.xlu0 %2774  ;;  %v2833_v28 = vsel %vm2022_vm8, %v2829_v25, %v2729_v10  ;;  %v2904_v7 = vshrl.u32 %v2853_v41, 16  ;;  %v1238_v14 = vcombine.high %v9936_v63, %v9936_v63 }
 0x213   :  { %v1950_v3 = vpop.permute.xlu1 %1949  ;;  %6601 = vmatprep.subr.bf16.mxu1 %v6913_v4  ;;  %v8648_v13 = vsel %vm2027_vm9, %v2833_v28, %v2775_v26  ;;  %v9933_v4 = vld [vmem:[#allocation51_spill] sm:$0xff]  ;;  %v8686_v0 = vsel %vm7623_vm6, 0, %v9937_v31  ;;  %v2900_v48 = vshll.u32 %v2846_v24, 16  ;;  %v2907_v21 = vshll.u32 %v2853_v41, 16  ;;  %v9945_v31 = vld [vmem:[#allocation62_spill] sm:$0xff] }
 0x214   :  { %v2055_v19 = vsel %vm2015_vm7, %v1940_v9, %v1944_v54  ;;  %v1221_v23 = vcombine.high %v9933_v4, %v9933_v4  ;;  %v2860_v42 = vrot.slane %v9933_v4, %v7173_v49  ;;  %v2906_v5 = vrot.slane %v2904_v7, 7 }
 0x215   :  { %v2059_v45 = vsel %vm2022_vm8, %v2055_v19, %v1950_v3  ;;  %v2888_v19 = vrot.slane %v9936_v63, %v7173_v49  ;;  %v2895_v26 = vrot.slane %v1238_v14, %v7173_v49  ;;  %v9944_v63 = vld [vmem:[#allocation61_spill] sm:$0xff] }
 0x216   :  { %6602 = vmatpush3.bf16.msra.mxu1 %v6914_v40  ;;  %v8635_v56 = vpop.permute.xlu0 %3107  ;;  %v2897_v40 = vshrl.u32 %v2846_v24, 16  ;;  %v2911_v22 = vshrl.u32 %v2860_v42, 16  ;;  %v2914_v8 = vshll.u32 %v2860_v42, 16 }
 0x217   :  { %v1956_v35 = vpop.permute.xlu1 %1955  ;;  %v2949_v7 = vshll.u32 %v2895_v26, 16 }
 0x218   :  { %v2064_v20 = vsel %vm2027_vm9, %v2059_v45, %v1956_v35  ;;  %v2899_v35 = vrot.slane %v2897_v40, 7  ;;  %v2913_v10 = vrot.slane %v2911_v22, 7  ;;  %v3039_v45 = vcombine.low %v9941_v52, %v9940_v37 }
 0x219   :  { %3839 = vmatmul.mubr.bf16.gmra.mrb[16].mxu1 %v2061_v27 }
 0x21a   :  { %3846 = vmatprep.mubr.bf16.mxu1 %v2080_v12  ;;  %v8650_v39 = vpop.permute.xlu0 %3145  ;;  %v2916_v25 = vor.u32 %v2914_v8, %v2913_v10 }
 0x21b   :  { %v2669_v46 = vpop.permute.xlu1 %2668 }
 0x21c   :  { %v2810_v29 = vsel %vm2015_vm7, %v9930_v34, %v2669_v46  ;;  %v9939_v46 = vld [vmem:[#allocation60_spill] sm:$0xff]  ;;  %v2902_v34 = vor.u32 %v2900_v48, %v2899_v35  ;;  %v2962_v43 = vsel %vm7623_vm6, 0, %v2916_v25  ;;  %v3057_v48 = vcombine.low %v9945_v31, %v8686_v0 }
 0x21d   :  { %v2881_v9 = vrot.slane %v9939_v46, %v7173_v49 }
 0x21e   :  { %v8656_v60 = vpop.permute.xlu0 %3183 }
 0x21f   :  { %v2673_v33 = vpop.permute.xlu1 %2672  ;;  %v2932_v28 = vshrl.u32 %v2881_v9, 16  ;;  %v2935_v4 = vshll.u32 %v2881_v9, 16 }
 0x220   :  { %v2815_v38 = vsel %vm2022_vm8, %v2810_v29, %v2673_v33  ;;  %v9942_v33 = vld [vmem:[#allocation67_spill] sm:$0xff]  ;;  %v2909_v29 = vor.u32 %v2907_v21, %v2906_v5 }
 0x221   :  { %3847 = vmatmul.mubr.bf16.gmra.mrb[20].mxu1 %v2064_v20  ;;  %v3040_v55 = vcombine.low %v9942_v33, %v8686_v0  ;;  %v2934_v41 = vrot.slane %v2932_v28, 7 }
 0x222   :  { %3854 = vmatprep.mubr.bf16.mxu1 %v2835_v17  ;;  %v8666_v51 = vpop.permute.xlu0 %3109 }
 0x223   :  { %v2719_v50 = vpop.permute.xlu1 %2718 }
 0x224   :  { %v8644_v57 = vsel %vm2027_vm9, %v2815_v38, %v2719_v50 }
 0x226   :  { %v8679_v3 = vpop.permute.xlu0 %3147 }
 0x227   :  { %v2671_v15 = vpop.permute.xlu1 %2670 }
 0x228   :  { %v2813_v58 = vsel %vm2015_vm7, %v9932_v36, %v2671_v15  ;;  %v2946_v36 = vshrl.u32 %v2895_v26, 16 }
 0x229   :  { %3855 = vmatmul.mubr.bf16.gmra.mrb[24].mxu1 %v8644_v57 }
 0x22a   :  { %3862 = vmatprep.mubr.bf16.mxu1 %v8648_v13  ;;  %v8701_v50 = vpop.permute.xlu0 %3185  ;;  %v2948_v40 = vrot.slane %v2946_v36, 7 }
 0x22b   :  { %v2675_v6 = vpop.permute.xlu1 %2674 }
 0x22c   :  { %v2817_v44 = vsel %vm2022_vm8, %v2813_v58, %v2675_v6  ;;  %v2939_v6 = vshrl.u32 %v2888_v19, 16  ;;  %v3054_v58 = vrot.slane %v3040_v55, %v7173_v49 }
 0x22e   :  { %v2941_v42 = vrot.slane %v2939_v6, 7 }
 0x22f   :  { %v2721_v61 = vpop.permute.xlu1 %2720 }
 0x230   :  { %v8659_v53 = vsel %vm2027_vm9, %v2817_v44, %v2721_v61  ;;  %v2960_v44 = vsel %vm7623_vm6, 0, %v2902_v34 }
 0x231   :  { %3863 = vmatmul.mubr.bf16.gmra.mrb[28].mxu1 %v8659_v53 }
 0x232   :  { %3903 = vmatprep.mubr.bf16.mxu1 %v2077_v11  ;;  %v2867_v11 = vrot.slane %v1221_v23, %v7173_v49  ;;  %v3406_v23 = vpop.permute.xlu0 %3405 }
 0x233   :  { %v8662_v54 = vpop.permute.xlu1 %3026 }
 0x234   :  { %v2918_v32 = vshrl.u32 %v2867_v11, 16  ;;  %v2921_v1 = vshll.u32 %v2867_v11, 16  ;;  %v2942_v11 = vshll.u32 %v2888_v19, 16 }
 0x236   :  { %v2944_v10 = vor.u32 %v2942_v11, %v2941_v42  ;;  %v9948_v42 = vld [vmem:[#allocation41_spill] sm:$0xff] }
 0x237   :  { %v8672_v59 = vpop.permute.xlu1 %3030 }
 0x239   :  { %3904 = vmatmul.mubr.bf16.vlgmr.msra.gmra.mrb[32].mxu1 %v2061_v27  ;;  %v2920_v27 = vrot.slane %v2918_v32, 7  ;;  %v9943_v32 = vld [vmem:[#allocation64_spill] sm:$0xff] }
 0x23a   :  { %3911 = vmatprep.mubr.bf16.mxu1 %v2080_v12  ;;  %v2874_v12 = vrot.slane %v9938_v18, %v7173_v49  ;;  %v3056_v14 = vcombine.low %v9944_v63, %v9943_v32  ;;  %v3444_v18 = vpop.permute.xlu0 %3443  ;;  %v9949_v63 = vld [vmem:[#allocation58_spill] sm:$0xff] }
 0x23b   :  { %v8677_v16 = vpop.permute.xlu1 %3034  ;;  %v2923_v38 = vor.u32 %v2921_v1, %v2920_v27  ;;  %v2937_v1 = vor.u32 %v2935_v4, %v2934_v41  ;;  %v2951_v27 = vor.u32 %v2949_v7, %v2948_v40  ;;  %v9947_v41 = vld [vmem:[#allocation59_spill] sm:$0xff] }
 0x23c   :  { %v2925_v15 = vshrl.u32 %v2874_v12, 16  ;;  %v2928_v61 = vshll.u32 %v2874_v12, 16 }
 0x23d   :  { %v2963_v24 = vsel %vm7623_vm6, 0, %v2923_v38  ;;  %v2965_v52 = vsel %vm7623_vm6, 0, %v2937_v1 }
 0x23e   :  { %v2927_v62 = vrot.slane %v2925_v15, 7  ;;  %v2993_v35 = vcombine.low %v2962_v43, %v2963_v24  ;;  %v3483_v55 = vpop.permute.xlu0 %3482 }
 0x23f   :  { %v8688_v30 = vpop.permute.xlu1 %3028 }
 0x240   :  { %v2930_v5 = vor.u32 %v2928_v61, %v2927_v62  ;;  %v3007_v26 = vrot.slane %v2993_v35, %v7173_v49 }
 0x241   :  { %3912 = vmatmul.mubr.bf16.gmra.mrb[36].mxu1 %v2064_v20  ;;  %v3047_v20 = vrot.slane %v3039_v45, %v7173_v49  ;;  %v2967_v45 = vsel %vm7623_vm6, 0, %v2951_v27 }
 0x242   :  { %3919 = vmatprep.mubr.bf16.mxu1 %v2835_v17  ;;  %v2961_v17 = vsel %vm7623_vm6, 0, %v2909_v29  ;;  %v2964_v37 = vsel %vm7623_vm6, 0, %v2930_v5 }
 0x243   :  { %v8703_v47 = vpop.permute.xlu1 %3032  ;;  %v2992_v21 = vcombine.low %v2960_v44, %v2961_v17  ;;  %v3055_v8 = vcombine.low %v3047_v20, %v3054_v58  ;;  %v3009_v34 = vcombine.low %v2964_v37, %v2965_v52  ;;  %v3408_v58 = vpop.permute.xlu0 %3407  ;;  %v9946_v17 = vld [vmem:[#allocation63_spill] sm:$0xff] }
 0x245   :  { %v3205_v12 = vsel %vm2015_vm7, %v3055_v8, %v8635_v56  ;;  %v3000_v19 = vrot.slane %v2992_v21, %v7173_v49  ;;  %v2966_v56 = vsel %vm7623_vm6, 0, %v2944_v10 }
 0x246   :  { %v3210_v9 = vsel %vm2022_vm8, %v3205_v12, %v8650_v39  ;;  %v3010_v29 = vcombine.low %v2966_v56, %v2967_v45 }
 0x247   :  { %v3037_v22 = vpop.permute.xlu1 %3036  ;;  %v3214_v39 = vsel %vm2027_vm9, %v3210_v9, %v8656_v60  ;;  %v3008_v33 = vcombine.low %v3000_v19, %v3007_v26  ;;  %v3017_v60 = vrot.slane %v3009_v34, %v7173_v49 }
 0x248   :  { %v3024_v36 = vrot.slane %v3010_v29, %v7173_v49 }
 0x249   :  { %3920 = vmatmul.mubr.bf16.gmra.mrb[40].mxu1 %v8644_v57  ;;  %v3064_v57 = vrot.slane %v3056_v14, %v7173_v49  ;;  %v3189_v15 = vsel %vm2015_vm7, %v3008_v33, %v8662_v54 }
 0x24a   :  { %3927 = vmatprep.mubr.bf16.mxu1 %v8648_v13  ;;  %v3071_v13 = vrot.slane %v3057_v48, %v7173_v49  ;;  %v3194_v6 = vsel %vm2022_vm8, %v3189_v15, %v8672_v59  ;;  %v3025_v44 = vcombine.low %v3017_v60, %v3024_v36 }
 0x24b   :  { %v3352_v46 = vpop.permute.xlu1 %3351  ;;  %v3198_v20 = vsel %vm2027_vm9, %v3194_v6, %v8677_v16  ;;  %v3446_v16 = vpop.permute.xlu0 %3445 }
 0x24c   :  { %v3072_v25 = vcombine.low %v3064_v57, %v3071_v13  ;;  %v3192_v59 = vsel %vm2015_vm7, %v3025_v44, %v8688_v30  ;;  %v3488_v30 = vsel %vm2015_vm7, %v9947_v41, %v3352_v46 }
 0x24d   :  { %v3196_v61 = vsel %vm2022_vm8, %v3192_v59, %v8703_v47 }
 0x24e   :  { %v3208_v28 = vsel %vm2015_vm7, %v3072_v25, %v8666_v51  ;;  %v3201_v43 = vsel %vm2027_vm9, %v3196_v61, %v3037_v22 }
 0x24f   :  { %v3356_v38 = vpop.permute.xlu1 %3355  ;;  %v3485_v62 = vpop.permute.xlu0 %3484 }
 0x250   :  { %v3493_v11 = vsel %vm2022_vm8, %v3488_v30, %v3356_v38 }
 0x251   :  { %3928 = vmatmul.mubr.bf16.gmra.mrb[44].mxu1 %v8659_v53  ;;  %v3212_v53 = vsel %vm2022_vm8, %v3208_v28, %v8679_v3  ;;  %v3504_v3 = vsel %vm2015_vm7, %v9946_v17, %v3406_v23  ;;  %v3507_v23 = vsel %vm2015_vm7, %v9948_v42, %v3408_v58 }
 0x252   :  { %3935 = vmatprep.mubr.bf16.mxu1 %v3214_v39  ;;  %v3217_v54 = vsel %vm2027_vm9, %v3212_v53, %v8701_v50  ;;  %v3509_v4 = vsel %vm2022_vm8, %v3504_v3, %v3444_v18  ;;  %v3511_v40 = vsel %vm2022_vm8, %v3507_v23, %v3446_v16 }
 0x253   :  { %v3402_v51 = vpop.permute.xlu1 %3401  ;;  %v3513_v50 = vsel %vm2027_vm9, %v3509_v4, %v3483_v55  ;;  %v3516_v22 = vsel %vm2027_vm9, %v3511_v40, %v3485_v62 }
 0x254   :  { %v3497_v7 = vsel %vm2027_vm9, %v3493_v11, %v3402_v51 }
 0x257   :  { %v3354_v24 = vpop.permute.xlu1 %3353 }
 0x258   :  { %v3491_v14 = vsel %vm2015_vm7, %v9949_v63, %v3354_v24 }
 0x259   :  { %3936 = vmatmul.mubr.bf16.gmra.mrb[48].mxu1 %v3198_v20 }
 0x25a   :  { %3943 = vmatprep.mubr.bf16.mxu1 %v3217_v54 }
 0x25b   :  { %v3358_v47 = vpop.permute.xlu1 %3357 }
 0x25c   :  { %v3495_v31 = vsel %vm2022_vm8, %v3491_v14, %v3358_v47 }
 0x25f   :  { %v3404_v32 = vpop.permute.xlu1 %3403 }
 0x260   :  { %v3500_v48 = vsel %vm2027_vm9, %v3495_v31, %v3404_v32 }
 0x261   :  { %3944 = vmatmul.mubr.bf16.gmra.mrb[52].mxu1 %v3201_v43 }
 0x262   :  { %3951 = vmatprep.mubr.bf16.mxu1 %v3513_v50 }
 0x269   :  { %3952 = vmatmul.mubr.bf16.gmra.mrb[56].mxu1 %v3497_v7 }
 0x26a   :  { %3959 = vmatprep.mubr.bf16.mxu1 %v3516_v22 }
 0x271   :  { %3960 = vmatmul.mubr.bf16.gmra.mrb[60].mxu1 %v3500_v48 }
 0x2cc   :  { %v6539_v21 = vpop.f32.mrb[0].mxu1 }
 0x2cd   :  { %v6540_v35 = vpop.f32.mrb[1].mxu1 }
 0x2ce   :  { %v6541_v5 = vadd.f32 %v6540_v35, %v6539_v21  ;;  %v6542_v8 = vpop.f32.mrb[2].mxu1 }
 0x2cf   :  { %v6543_v1 = vpop.f32.mrb[3].mxu1 }
 0x2d0   :  { %v6544_v10 = vadd.f32 %v6543_v1, %v6542_v8 }
 0x2d4   :  { %v6545_v27 = vpop.f32.mrb[4].mxu1 }
 0x2d5   :  { %v6546_v18 = vpop.f32.mrb[5].mxu1 }
 0x2d6   :  { %v6547_v12 = vadd.f32 %v6546_v18, %v6545_v27  ;;  %v6548_v57 = vpop.f32.mrb[6].mxu1 }
 0x2d7   :  { %v6549_v13 = vpop.f32.mrb[7].mxu1 }
 0x2d8   :  { %v6550_v46 = vadd.f32 %v6549_v13, %v6548_v57 }
 0x2dc   :  { %v6551_v9 = vpop.f32.mrb[8].mxu1 }
 0x2dd   :  { %v6552_v19 = vpop.f32.mrb[9].mxu1 }
 0x2de   :  { %v6553_v26 = vadd.f32 %v6552_v19, %v6551_v9  ;;  %v6554_v37 = vpop.f32.mrb[10].mxu1 }
 0x2df   :  { %v6555_v52 = vpop.f32.mrb[11].mxu1 }
 0x2e0   :  { %v6556_v56 = vadd.f32 %v6555_v52, %v6554_v37 }
 0x2e4   :  { %v6557_v45 = vpop.f32.mrb[12].mxu1 }
 0x2e5   :  { %v6558_v39 = vpop.f32.mrb[13].mxu1 }
 0x2e6   :  { %v8775_v33 = vadd.f32 %v6558_v39, %v6557_v45  ;;  %v6560_v55 = vpop.f32.mrb[14].mxu1 }
 0x2e7   :  { %v6561_v34 = vpop.f32.mrb[15].mxu1 }
 0x2e8   :  { %v8777_v29 = vadd.f32 %v6561_v34, %v6560_v55 }
 0x2ec   :  { %v6563_v25 = vpop.f32.mrb[16].mxu1 }
 0x2ed   :  { %v6564_v38 = vpop.f32.mrb[17].mxu1 }
 0x2ee   :  { %v8779_v15 = vadd.f32 %v6564_v38, %v6563_v25  ;;  %v6566_v28 = vpop.f32.mrb[18].mxu1 }
 0x2ef   :  { %v6567_v6 = vpop.f32.mrb[19].mxu1 }
 0x2f0   :  { %v8781_v53 = vadd.f32 %v6567_v6, %v6566_v28 }
 0x2f4   :  { %v6569_v60 = vpop.f32.mrb[20].mxu1 }
 0x2f5   :  { %v6570_v36 = vpop.f32.mrb[21].mxu1 }
 0x2f6   :  { %v8783_v20 = vadd.f32 %v6570_v36, %v6569_v60  ;;  %v6572_v54 = vpop.f32.mrb[22].mxu1 }
 0x2f7   :  { %v6573_v58 = vpop.f32.mrb[23].mxu1 }
 0x2f8   :  { %v8785_v51 = vadd.f32 %v6573_v58, %v6572_v54 }
 0x2fc   :  { %v6575_v44 = vpop.f32.mrb[24].mxu1 }
 0x2fd   :  { %v6576_v59 = vpop.f32.mrb[25].mxu1 }
 0x2fe   :  { %v8787_v17 = vadd.f32 %v6576_v59, %v6575_v44  ;;  %v6578_v3 = vpop.f32.mrb[26].mxu1 }
 0x2ff   :  { %v6579_v61 = vpop.f32.mrb[27].mxu1 }
 0x300   :  { %v8789_v4 = vadd.f32 %v6579_v61, %v6578_v3 }
 0x304   :  { %v6581_v16 = vpop.f32.mrb[28].mxu1 }
 0x305   :  { %v6582_v43 = vpop.f32.mrb[29].mxu1 }
 0x306   :  { %v8791_v24 = vadd.f32 %v6582_v43, %v6581_v16  ;;  %v6584_v50 = vpop.f32.mrb[30].mxu1 }
 0x307   :  { %v6585_v62 = vpop.f32.mrb[31].mxu1 }
 0x308   :  { %v8793_v41 = vadd.f32 %v6585_v62, %v6584_v50 }
 0x30c   :  { %v6603_v30 = vpop.f32.mrb[32].mxu1 }
 0x30d   :  { %v6604_v42 = vpop.f32.mrb[33].mxu1 }
 0x30e   :  { %v6605_v23 = vadd.f32 %v6604_v42, %v6603_v30  ;;  %v6606_v11 = vpop.f32.mrb[34].mxu1 }
 0x30f   :  { %v6607_v47 = vpop.f32.mrb[35].mxu1 }
 0x310   :  { %v8795_v40 = vadd.f32 %v6605_v23, %v6541_v5  ;;  %v6608_v7 = vadd.f32 %v6607_v47, %v6606_v11 }
 0x312   :  { %v8797_v22 = vadd.f32 %v6608_v7, %v6544_v10  ;;  %v3970_v32 = vsel %vm2022_vm8, %v8795_v40, 0.0 }
 0x314   :  { %v3971_v63 = vsel %vm2022_vm8, %v8797_v22, 0.0  ;;  %v6609_v14 = vpop.f32.mrb[36].mxu1 }
 0x315   :  { %v3972_v31 = vadd.f32 %v3971_v63, %v3970_v32  ;;  %v6610_v48 = vpop.f32.mrb[37].mxu1 }
 0x316   :  { %v6611_v21 = vadd.f32 %v6610_v48, %v6609_v14  ;;  %v6612_v35 = vpop.f32.mrb[38].mxu1 }
 0x317   :  { %v6613_v8 = vpop.f32.mrb[39].mxu1 }
 0x318   :  { %v8803_v1 = vadd.f32 %v6611_v21, %v6547_v12  ;;  %v6614_v27 = vadd.f32 %v6613_v8, %v6612_v35 }
 0x31a   :  { %v3973_v5 = vsel %vm2022_vm8, %v8803_v1, 0.0  ;;  %v8807_v10 = vadd.f32 %v6614_v27, %v6550_v46 }
 0x31b   :  { %v3974_v18 = vadd.f32 %v3973_v5, %v3972_v31 }
 0x31c   :  { %v3975_v57 = vsel %vm2022_vm8, %v8807_v10, 0.0  ;;  %v6615_v13 = vpop.f32.mrb[40].mxu1 }
 0x31d   :  { %v3976_v9 = vadd.f32 %v3975_v57, %v3974_v18  ;;  %v6616_v19 = vpop.f32.mrb[41].mxu1 }
 0x31e   :  { %v6617_v37 = vadd.f32 %v6616_v19, %v6615_v13  ;;  %v6618_v52 = vpop.f32.mrb[42].mxu1 }
 0x31f   :  { %v6619_v45 = vpop.f32.mrb[43].mxu1 }
 0x320   :  { %v8811_v39 = vadd.f32 %v6617_v37, %v6553_v26  ;;  %v6620_v12 = vadd.f32 %v6619_v45, %v6618_v52 }
 0x322   :  { %v3977_v55 = vsel %vm2022_vm8, %v8811_v39, 0.0  ;;  %v8815_v34 = vadd.f32 %v6620_v12, %v6556_v56 }
 0x323   :  { %v3978_v46 = vadd.f32 %v3977_v55, %v3976_v9 }
 0x324   :  { %v3979_v25 = vsel %vm2022_vm8, %v8815_v34, 0.0  ;;  %v6621_v38 = vpop.f32.mrb[44].mxu1 }
 0x325   :  { %v3980_v28 = vadd.f32 %v3979_v25, %v3978_v46  ;;  %v6622_v6 = vpop.f32.mrb[45].mxu1 }
 0x326   :  { %v6623_v60 = vadd.f32 %v6622_v6, %v6621_v38  ;;  %v6624_v36 = vpop.f32.mrb[46].mxu1 }
 0x327   :  { %v6625_v54 = vpop.f32.mrb[47].mxu1 }
 0x328   :  { %v8820_v58 = vadd.f32 %v6623_v60, %v8775_v33  ;;  %v6626_v26 = vadd.f32 %v6625_v54, %v6624_v36  ;;  %v6915_v33 = vld [vmem:[%s9658_s5 + $0x40] sm:$0xff]  }
 0x329   :  { %6651 = vmatprep.subr.bf16.mxu0 %v6915_v33 }
 0x32a   :  { %v3981_v44 = vsel %vm2022_vm8, %v8820_v58, 0.0  ;;  %v8825_v56 = vadd.f32 %v6626_v26, %v8777_v29  ;;  %v6916_v29 = vld [vmem:[%s9658_s5] sm:$0xff]  }
 0x32b   :  { %v3982_v59 = vadd.f32 %v3981_v44, %v3980_v28  ;;  %6652 = vmatpush3.bf16.msra.mxu0 %v6916_v29 }
 0x32c   :  { %v3983_v3 = vsel %vm2022_vm8, %v8825_v56, 0.0  ;;  %v6627_v61 = vpop.f32.mrb[48].mxu1 }
 0x32d   :  { %v3984_v16 = vadd.f32 %v3983_v3, %v3982_v59  ;;  %v6628_v43 = vpop.f32.mrb[49].mxu1 }
 0x32e   :  { %v6629_v50 = vadd.f32 %v6628_v43, %v6627_v61  ;;  %v6630_v62 = vpop.f32.mrb[50].mxu1 }
 0x32f   :  { %v6631_v30 = vpop.f32.mrb[51].mxu1 }
 0x330   :  { %v8833_v42 = vadd.f32 %v6629_v50, %v8779_v15  ;;  %v6632_v23 = vadd.f32 %v6631_v30, %v6630_v62 }
 0x332   :  { %v3985_v11 = vsel %vm2022_vm8, %v8833_v42, 0.0  ;;  %v3941_v47 = vadd.f32 %v6632_v23, %v8781_v53 }
 0x333   :  { %v3986_v7 = vadd.f32 %v3985_v11, %v3984_v16 }
 0x334   :  { %v3987_v32 = vsel %vm2022_vm8, %v3941_v47, 0.0  ;;  %v6633_v63 = vpop.f32.mrb[52].mxu1 }
 0x335   :  { %v3988_v14 = vadd.f32 %v3987_v32, %v3986_v7  ;;  %v6634_v31 = vpop.f32.mrb[53].mxu1 }
 0x336   :  { %v6635_v15 = vadd.f32 %v6634_v31, %v6633_v63  ;;  %v6636_v48 = vpop.f32.mrb[54].mxu1 }
 0x337   :  { %v6637_v21 = vpop.f32.mrb[55].mxu1 }
 0x338   :  { %v3946_v35 = vadd.f32 %v6635_v15, %v8783_v20  ;;  %v6638_v8 = vadd.f32 %v6637_v21, %v6636_v48  ;;  %v6917_v20 = vld [vmem:[%s9658_s5 + $0x48] sm:$0xff]  }
 0x339   :  { %6653 = vmatprep.subr.bf16.mxu0 %v6917_v20 }
 0x33a   :  { %v3989_v27 = vsel %vm2022_vm8, %v3946_v35, 0.0  ;;  %v3949_v5 = vadd.f32 %v6638_v8, %v8785_v51 }
 0x33b   :  { %v3990_v18 = vadd.f32 %v3989_v27, %v3988_v14 }
 0x33c   :  { %v3991_v53 = vsel %vm2022_vm8, %v3949_v5, 0.0  ;;  %v6639_v57 = vpop.f32.mrb[56].mxu1 }
 0x33d   :  { %v3992_v13 = vadd.f32 %v3991_v53, %v3990_v18  ;;  %v6640_v9 = vpop.f32.mrb[57].mxu1 }
 0x33e   :  { %v6641_v19 = vadd.f32 %v6640_v9, %v6639_v57  ;;  %v6642_v37 = vpop.f32.mrb[58].mxu1 }
 0x33f   :  { %v6643_v52 = vpop.f32.mrb[59].mxu1 }
 0x340   :  { %v3954_v45 = vadd.f32 %v6641_v19, %v8787_v17  ;;  %v6644_v12 = vadd.f32 %v6643_v52, %v6642_v37  ;;  %v6918_v17 = vld [vmem:[%s9658_s5 + $0x8] sm:$0xff]   ;;  %v6920_v19 = vld [vmem:[%s9658_s5 + $0x10] sm:$0xff]  }
 0x341   :  { %6654 = vmatpush3.bf16.msra.mxu0 %v6918_v17  ;;  %v6923_v17 = vld [vmem:[%s9658_s5 + $0x60] sm:$0xff]  }
 0x342   :  { %v3993_v55 = vsel %vm2022_vm8, %v3954_v45, 0.0  ;;  %v3957_v51 = vadd.f32 %v6644_v12, %v8789_v4 }
 0x343   :  { %v3994_v46 = vadd.f32 %v3993_v55, %v3992_v13 }
 0x344   :  { %v3995_v25 = vsel %vm2022_vm8, %v3957_v51, 0.0  ;;  %v6645_v38 = vpop.f32.mrb[60].mxu1 }
 0x345   :  { %v3996_v28 = vadd.f32 %v3995_v25, %v3994_v46  ;;  %v6646_v6 = vpop.f32.mrb[61].mxu1 }
 0x346   :  { %v6647_v60 = vadd.f32 %v6646_v6, %v6645_v38  ;;  %v6648_v36 = vpop.f32.mrb[62].mxu1 }
 0x347   :  { %v6649_v54 = vpop.f32.mrb[63].mxu1 }
 0x348   :  { %v3962_v26 = vadd.f32 %v6647_v60, %v8791_v24  ;;  %v6650_v44 = vadd.f32 %v6649_v54, %v6648_v36  ;;  %v6921_v60 = vld [vmem:[%s9658_s5 + $0x58] sm:$0xff]  }
 0x349   :  { %v6922_v36 = vld [vmem:[%s9658_s5 + $0x18] sm:$0xff]  }
 0x34a   :  { %v3997_v4 = vsel %vm2022_vm8, %v3962_v26, 0.0  ;;  %v3965_v59 = vadd.f32 %v6650_v44, %v8793_v41 }
 0x34b   :  { %v3998_v3 = vadd.f32 %v3997_v4, %v3996_v28  ;;  %v6929_v4 = vld [vmem:[%s9658_s5 + $0xc0] sm:$0xff]  }
 0x34c   :  { %v3999_v61 = vsel %vm2022_vm8, %v3965_v59, 0.0  ;;  %6679 = vmatprep.subr.bf16.mxu1 %v6929_v4 }
 0x34d   :  { %v4000_v16 = vadd.f32 %v3999_v61, %v3998_v3  ;;  %v6924_v61 = vld [vmem:[%s9658_s5 + $0x20] sm:$0xff]  }
 0x34f   :  { %v4001_v43 = vrot.slane %v4000_v16, 4 }
 0x351   :  { %v4002_v50 = vadd.f32 %v4001_v43, %v4000_v16  ;;  %v6930_v16 = vld [vmem:[%s9658_s5 + $0x80] sm:$0xff]   ;;  %v6931_v43 = vld [vmem:[%s9658_s5 + $0xc8] sm:$0xff]  }
 0x352   :  { %6680 = vmatpush3.bf16.msra.mxu1 %v6930_v16 }
 0x353   :  { %v4003_v62 = vrot.slane %v4002_v50, 2  ;;  %6681 = vmatprep.subr.bf16.mxu1 %v6931_v43 }
 0x355   :  { %v4004_v30 = vadd.f32 %v4003_v62, %v4002_v50  ;;  %v6925_v62 = vld [vmem:[%s9658_s5 + $0x68] sm:$0xff]  }
 0x357   :  { %v4005_v33 = vrot.slane %v4004_v30, 1 }
 0x359   :  { %v4006_v23 = vadd.f32 %v4005_v33, %v4004_v30 }
 0x35b   :  { %v4007_v29 = vmul.f32 0.0078125, %v4006_v23  ;;  %v6932_v23 = vld [vmem:[%s9658_s5 + $0x88] sm:$0xff]  }
 0x35c   :  { %6682 = vmatpush3.bf16.msra.mxu1 %v6932_v23 }
 0x35d   :  { %v8861_v11 = vsub.f32 %v8795_v40, %v4007_v29  ;;  %v8864_v24 = vsub.f32 %v8797_v22, %v4007_v29  ;;  %v8867_v7 = vsub.f32 %v8803_v1, %v4007_v29  ;;  %v8870_v41 = vsub.f32 %v8807_v10, %v4007_v29 }
 0x35e   :  { %v8873_v32 = vsub.f32 %v8811_v39, %v4007_v29  ;;  %v8876_v63 = vsub.f32 %v8815_v34, %v4007_v29  ;;  %v8879_v14 = vsub.f32 %v8820_v58, %v4007_v29  ;;  %v8882_v40 = vsub.f32 %v8825_v56, %v4007_v29 }
 0x35f   :  { %v8885_v22 = vsub.f32 %v8833_v42, %v4007_v29  ;;  %v8887_v1 = vsub.f32 %v3941_v47, %v4007_v29  ;;  %v8889_v31 = vsub.f32 %v3946_v35, %v4007_v29  ;;  %v8891_v10 = vsub.f32 %v3949_v5, %v4007_v29  ;;  %v6919_v47 = vld [vmem:[%s9658_s5 + $0x50] sm:$0xff]  }
 0x360   :  { %v8893_v39 = vsub.f32 %v3954_v45, %v4007_v29  ;;  %v8895_v15 = vsub.f32 %v3957_v51, %v4007_v29  ;;  %v8897_v34 = vsub.f32 %v3962_v26, %v4007_v29  ;;  %v8899_v58 = vsub.f32 %v3965_v59, %v4007_v29  ;;  %6655 = vmatprep.subr.bf16.mxu0 %v6919_v47 }
 0x361   :  { %v4024_v56 = vmul.f32 %v8861_v11, %v8861_v11  ;;  %v4025_v42 = vmul.f32 %v8864_v24, %v8864_v24  ;;  %v4026_v48 = vmul.f32 %v8867_v7, %v8867_v7  ;;  %v4027_v21 = vmul.f32 %v8870_v41, %v8870_v41  ;;  %6656 = vmatpush3.bf16.msra.mxu0 %v6920_v19  ;;  %v6933_v19 = vld [vmem:[%s9658_s5 + $0x78] sm:$0xff]  }
 0x362   :  { %v4028_v5 = vmul.f32 %v8873_v32, %v8873_v32  ;;  %v4029_v57 = vmul.f32 %v8876_v63, %v8876_v63  ;;  %v4030_v37 = vmul.f32 %v8879_v14, %v8879_v14  ;;  %v4031_v12 = vmul.f32 %v8882_v40, %v8882_v40  ;;  %6657 = vmatprep.subr.bf16.mxu0 %v6921_v60 }
 0x363   :  { %v4040_v35 = vsel %vm2022_vm8, %v4024_v56, 0.0  ;;  %v4041_v8 = vsel %vm2022_vm8, %v4025_v42, 0.0  ;;  %v4043_v18 = vsel %vm2022_vm8, %v4026_v48, 0.0  ;;  %v4045_v13 = vsel %vm2022_vm8, %v4027_v21, 0.0  ;;  %v6935_v56 = vld [vmem:[%s9658_s5 + $0xd0] sm:$0xff]   ;;  %v6926_v48 = vld [vmem:[%s9658_s5 + $0x28] sm:$0xff]  }
 0x364   :  { %v4042_v27 = vadd.f32 %v4041_v8, %v4040_v35  ;;  %v4047_v52 = vsel %vm2022_vm8, %v4028_v5, 0.0  ;;  %v4049_v20 = vsel %vm2022_vm8, %v4029_v57, 0.0  ;;  %v4032_v51 = vmul.f32 %v8885_v22, %v8885_v22  ;;  %v6927_v35 = vld [vmem:[%s9658_s5 + $0x70] sm:$0xff]   ;;  %6683 = vmatprep.subr.bf16.mxu1 %v6935_v56 }
 0x365   :  { %v4051_v46 = vsel %vm2022_vm8, %v4030_v37, 0.0  ;;  %v4033_v38 = vmul.f32 %v8887_v1, %v8887_v1  ;;  %v4053_v28 = vsel %vm2022_vm8, %v4031_v12, 0.0  ;;  %v4034_v54 = vmul.f32 %v8889_v31, %v8889_v31  ;;  %6658 = vmatpush3.bf16.msra.mxu0 %v6922_v36  ;;  %v6936_v5 = vld [vmem:[%s9658_s5 + $0x90] sm:$0xff]   ;;  %v6934_v12 = vld [vmem:[%s9658_s5 + $0x38] sm:$0xff]   ;;  %v3968_v36 = vld [vmem:[%s9659_s3] sm:$0x1] }
 0x366   :  { %v4044_v53 = vadd.f32 %v4043_v18, %v4042_v27  ;;  %v4055_v26 = vsel %vm2022_vm8, %v4032_v51, 0.0  ;;  %v4035_v59 = vmul.f32 %v8891_v10, %v8891_v10  ;;  %6659 = vmatprep.subr.bf16.mxu0 %v6923_v17  ;;  %v4036_v30 = vmul.f32 %v8893_v39, %v8893_v39  ;;  %6684 = vmatpush3.bf16.msra.mxu1 %v6936_v5  ;;  %v9950_v17 = vld [vmem:[#allocation2_spill] sm:$0xff] }
 0x367   :  { %v4057_v3 = vsel %vm2022_vm8, %v4033_v38, 0.0  ;;  %v4059_v33 = vsel %vm2022_vm8, %v4034_v54, 0.0  ;;  %v4037_v42 = vmul.f32 %v8895_v15, %v8895_v15  ;;  %v4038_v8 = vmul.f32 %v8897_v34, %v8897_v34 }
 0x368   :  { %v4046_v9 = vadd.f32 %v4045_v13, %v4044_v53  ;;  %v4061_v47 = vsel %vm2022_vm8, %v4035_v59, 0.0  ;;  %v4063_v27 = vsel %vm2022_vm8, %v4036_v30, 0.0  ;;  %v4039_v53 = vmul.f32 %v8899_v58, %v8899_v58  ;;  %v6928_v13 = vld [vmem:[%s9658_s5 + $0x30] sm:$0xff]   ;;  %v9014_v59 = vld [vmem:[%s9660_s4] ss:$0 sm:$0xff] }
 0x369   :  { %6660 = vmatpush3.bf16.msra.mxu0 %v6924_v61  ;;  %v4065_v57 = vsel %vm2022_vm8, %v4037_v42, 0.0  ;;  %v4067_v37 = vsel %vm2022_vm8, %v4038_v8, 0.0  ;;  %v4083_v54 = vsub.s32 0, %v9950_v17 }
 0x36a   :  { %v4048_v45 = vadd.f32 %v4047_v52, %v4046_v9  ;;  %6661 = vmatprep.subr.bf16.mxu0 %v6925_v62 }
 0x36c   :  { %v4050_v55 = vadd.f32 %v4049_v20, %v4048_v45  ;;  %v4069_v45 = vsel %vm2022_vm8, %v4039_v53, 0.0 }
 0x36d   :  { %6662 = vmatpush3.bf16.msra.mxu0 %v6926_v48 }
 0x36e   :  { %v4052_v25 = vadd.f32 %v4051_v46, %v4050_v55  ;;  %6663 = vmatprep.subr.bf16.mxu0 %v6927_v35 }
 0x370   :  { %v4054_v6 = vadd.f32 %v4053_v28, %v4052_v25 }
 0x371   :  { %6664 = vmatpush3.bf16.msra.mxu0 %v6928_v13 }
 0x372   :  { %v4056_v44 = vadd.f32 %v4055_v26, %v4054_v6  ;;  %6665 = vmatprep.subr.bf16.mxu0 %v6933_v19 }
 0x374   :  { %v4058_v50 = vadd.f32 %v4057_v3, %v4056_v44 }
 0x375   :  { %6666 = vmatpush3.bf16.msra.mxu0 %v6934_v12  ;;  %v6937_v12 = vld [vmem:[%s9658_s5 + $0xd8] sm:$0xff]  }
 0x376   :  { %v4060_v29 = vadd.f32 %v4059_v33, %v4058_v50  ;;  %6685 = vmatprep.subr.bf16.mxu1 %v6937_v12 }
 0x378   :  { %v4062_v21 = vadd.f32 %v4061_v47, %v4060_v29 }
 0x37a   :  { %v4064_v18 = vadd.f32 %v4063_v27, %v4062_v21 }
 0x37c   :  { %v4066_v9 = vadd.f32 %v4065_v57, %v4064_v18 }
 0x37e   :  { %v4068_v52 = vadd.f32 %v4067_v37, %v4066_v9 }
 0x380   :  { %v4070_v20 = vadd.f32 %v4069_v45, %v4068_v52 }
 0x382   :  { %v4071_v55 = vrot.slane %v4070_v20, 4 }
 0x384   :  { %v4072_v51 = vadd.f32 %v4071_v55, %v4070_v20  ;;  %v6938_v20 = vld [vmem:[%s9658_s5 + $0x98] sm:$0xff]  }
 0x385   :  { %6686 = vmatpush3.bf16.msra.mxu1 %v6938_v20 }
 0x386   :  { %v4073_v46 = vrot.slane %v4072_v51, 2 }
 0x388   :  { %v4074_v25 = vadd.f32 %v4073_v46, %v4072_v51 }
 0x38a   :  { %v4075_v38 = vrot.slane %v4074_v25, 1 }
 0x38c   :  { %v4076_v28 = vadd.f32 %v4075_v38, %v4074_v25 }
 0x38e   :  { %v4077_v6 = vmul.f32 0.0078125, %v4076_v28 }
 0x390   :  { %v4078_v60 = vadd.f32 1e-05, %v4077_v6 }
 0x392   :  { %6979 = vrsqrt.f32 %v4078_v60 }
 0x39c   :  { %v6980_v26 = vpop.eup %6979 }
 0x39d   :  { %v4080_v44 = vmul.f32 %v6980_v26, %v3968_v36 }
 0x39f   :  { %v9009_v4 = vrot.slane %v4080_v44, %v4083_v54 }
 0x3a1   :  { %v4095_v3 = vmul.f32 %v9009_v4, %v8889_v31  ;;  %v4096_v61 = vmul.f32 %v9009_v4, %v8891_v10  ;;  %v4097_v16 = vmul.f32 %v9009_v4, %v8893_v39  ;;  %v4098_v43 = vmul.f32 %v9009_v4, %v8895_v15 }
 0x3a2   :  { %v4099_v50 = vmul.f32 %v9009_v4, %v8897_v34  ;;  %v4100_v62 = vmul.f32 %v9009_v4, %v8899_v58  ;;  %v4093_v30 = vmul.f32 %v9009_v4, %v8885_v22  ;;  %v4094_v31 = vmul.f32 %v9009_v4, %v8887_v1 }
 0x3a3   :  { %v4119_v10 = vadd.f32 %v9014_v59, %v4097_v16  ;;  %v4120_v33 = vadd.f32 %v9014_v59, %v4098_v43  ;;  %v4117_v39 = vadd.f32 %v9014_v59, %v4095_v3  ;;  %v4118_v15 = vadd.f32 %v9014_v59, %v4096_v61  ;;  %v6939_v61 = vld [vmem:[%s9658_s5 + $0xe0] sm:$0xff]  }
 0x3a4   :  { %v4121_v23 = vadd.f32 %v9014_v59, %v4099_v50  ;;  %v4122_v34 = vadd.f32 %v9014_v59, %v4100_v62  ;;  %v4115_v58 = vadd.f32 %v9014_v59, %v4093_v30  ;;  %v4116_v29 = vadd.f32 %v9014_v59, %v4094_v31  ;;  %v6940_v16 = vld [vmem:[%s9658_s5 + $0xa0] sm:$0xff]   ;;  %6687 = vmatprep.subr.bf16.mxu1 %v6939_v61 }
 0x3a5   :  { %v4135_v22 = vmul.f32 0.2, %v4119_v10  ;;  %v4136_v56 = vmul.f32 0.2, %v4120_v33  ;;  %v4133_v42 = vmul.f32 0.2, %v4117_v39  ;;  %v4085_v1 = vmul.f32 %v9009_v4, %v8861_v11  ;;  %6688 = vmatpush3.bf16.msra.mxu1 %v6940_v16 }
 0x3a6   :  { %v4137_v47 = vmul.f32 0.2, %v4121_v23  ;;  %v4138_v48 = vmul.f32 0.2, %v4122_v34  ;;  %v4131_v21 = vmul.f32 0.2, %v4115_v58  ;;  %v4086_v35 = vmul.f32 %v9009_v4, %v8864_v24 }
 0x3a7   :  { %v4151_v8 = vmax.f32 %v4119_v10, %v4135_v22  ;;  %v9044_v27 = vmax.f32 %v4120_v33, %v4136_v56  ;;  %v4132_v5 = vmul.f32 0.2, %v4116_v29  ;;  %v4134_v18 = vmul.f32 0.2, %v4118_v15 }
 0x3a8   :  { %v4153_v53 = vmax.f32 %v4121_v23, %v4137_v47  ;;  %v9046_v57 = vmax.f32 %v4122_v34, %v4138_v48  ;;  %v4147_v13 = vmax.f32 %v4115_v58, %v4131_v21  ;;  %v4149_v9 = vmax.f32 %v4117_v39, %v4133_v42 }
 0x3a9   :  { %v9049_v19 = vpack.c.bf16 %v9044_v27, %v4151_v8  ;;  %v4148_v11 = vmax.f32 %v4116_v29, %v4132_v5  ;;  %v4150_v37 = vmax.f32 %v4118_v15, %v4134_v18  ;;  %v9055_v24 = vadd.f32 %v9014_v59, %v4085_v1  ;;  %v6941_v18 = vld [vmem:[%s9658_s5 + $0xe8] sm:$0xff]  }
 0x3aa   :  { %v9052_v52 = vpack.c.bf16 %v9046_v57, %v4153_v53  ;;  %v4108_v45 = vadd.f32 %v9014_v59, %v4086_v35  ;;  %v6423_v38 = vpack.c.bf16 %v9044_v27, %v9044_v27  ;;  %v6424_v28 = vpack.c.bf16 %v9046_v57, %v9046_v57  ;;  %v6942_v53 = vld [vmem:[%s9658_s5 + $0x140] sm:$0xff]   ;;  %6689 = vmatprep.subr.bf16.mxu1 %v6941_v18 }
 0x3ab   :  { %v9064_v55 = vpack.c.bf16 %v4148_v11, %v4147_v13  ;;  %v6421_v51 = vpack.c.bf16 %v4148_v11, %v4148_v11  ;;  %v9066_v46 = vpack.c.bf16 %v4150_v37, %v4149_v9  ;;  %v6422_v25 = vpack.c.bf16 %v4150_v37, %v4150_v37  ;;  %6707 = vmatprep.subr.bf16.mxu0 %v6942_v53 }
 0x3ac   :  { %v4123_v6 = vmul.f32 0.2, %v9055_v24  ;;  %v4124_v60 = vmul.f32 0.2, %v4108_v45  ;;  %v9096_v62 = vmul.f32 %v9009_v4, %v8867_v7  ;;  %v9100_v30 = vmul.f32 %v9009_v4, %v8870_v41 }
 0x3ad   :  { %v9075_v36 = vrot.slane %v9064_v55, %v7173_v49  ;;  %v9078_v26 = vrot.slane %v6421_v51, %v7173_v49  ;;  %v9082_v44 = vrot.slane %v9066_v46, %v7173_v49  ;;  %v9085_v3 = vrot.slane %v6422_v25, %v7173_v49 }
 0x3ae   :  { %v4139_v43 = vmax.f32 %v9055_v24, %v4123_v6  ;;  %v4140_v50 = vmax.f32 %v4108_v45, %v4124_v60  ;;  %v9951_v10 = vmov 0   ;;  %v6943_v24 = vld [vmem:[%s9658_s5 + $0xa8] sm:$0xff]  }
 0x3af   :  { %v9104_v31 = vcombine.high %v9075_v36, %v9075_v36  ;;  %v4967_v33 = vcombine.low %v9951_v10, %v9075_v36  ;;  %v9110_v39 = vcombine.high %v9082_v44, %v9082_v44  ;;  %v4984_v15 = vcombine.low %v9951_v10, %v9082_v44  ;;  %6690 = vmatpush3.bf16.msra.mxu1 %v6943_v24 }
 0x3b0   :  { %v4362_v7 = vshrl.u32 %v9075_v36, 16  ;;  %v4364_v41 = vshll.u32 %v9075_v36, 16  ;;  %v4376_v23 = vshrl.u32 %v9078_v26, 16  ;;  %v4378_v34 = vshll.u32 %v9078_v26, 16 }
 0x3b1   :  { %v4968_v58 = vcombine.low %v9104_v31, %v9078_v26  ;;  %v4975_v29 = vrot.slane %v4967_v33, %v7173_v49  ;;  %v4985_v22 = vcombine.low %v9110_v39, %v9085_v3  ;;  %v4992_v56 = vrot.slane %v4984_v15, %v7173_v49  ;;  %v9953_v33 = vld [vmem:[#allocation36_spill] sm:$0xff] }
 0x3b2   :  { %v4366_v42 = vrot.slane %v4364_v41, 1  ;;  %v4369_v1 = vshrl.u32 %v9104_v31, 16  ;;  %v4371_v47 = vshll.u32 %v9104_v31, 16  ;;  %v4380_v48 = vrot.slane %v4378_v34, 1 }
 0x3b3   :  { %v4982_v21 = vrot.slane %v4968_v58, %v7173_v49  ;;  %v4999_v35 = vrot.slane %v4985_v22, %v7173_v49  ;;  %v4383_v8 = vshrl.u32 %v9082_v44, 16  ;;  %v4385_v5 = vshll.u32 %v9082_v44, 16 }
 0x3b4   :  { %v4367_v13 = vor.u32 %v4366_v42, %v4362_v7  ;;  %v4373_v9 = vrot.slane %v4371_v47, 1  ;;  %v4381_v11 = vor.u32 %v4380_v48, %v4376_v23  ;;  %v4390_v37 = vshrl.u32 %v9110_v39, 16  ;;  %v6947_v42 = vld [vmem:[%s9658_s5 + $0xb0] sm:$0xff]  }
 0x3b5   :  { %v4983_v45 = vcombine.low %v4975_v29, %v4982_v21  ;;  %v5000_v12 = vcombine.low %v4992_v56, %v4999_v35  ;;  %v4387_v20 = vrot.slane %v4385_v5, 1  ;;  %v4392_v51 = vshll.u32 %v9110_v39, 16  ;;  %v6945_v56 = vld [vmem:[%s9658_s5 + $0xf0] sm:$0xff]  }
 0x3b6   :  { %v4374_v25 = vor.u32 %v4373_v9, %v4369_v1  ;;  %v4409_v60 = vsel %vm7249_vm3, %v4367_v13, 0  ;;  %v4411_v61 = vsel %vm7249_vm3, %v4381_v11, 0  ;;  %v4397_v16 = vshrl.u32 %v9085_v3, 16  ;;  %6691 = vmatprep.subr.bf16.mxu1 %v6945_v56 }
 0x3b7   :  { %5001 = vrot.lane.b32.xlu1 %v4983_v45, %s6985_s30  ;;  %v5045_v15 = vcombine.low %v9953_v33, %v4409_v60  ;;  %v4388_v7 = vor.u32 %v4387_v20, %v4383_v8  ;;  %v4394_v41 = vrot.slane %v4392_v51, 1  ;;  %v4399_v23 = vshll.u32 %v9085_v3, 16  ;;  %6692 = vmatpush3.bf16.msra.mxu1 %v6947_v42 }
 0x3b8   :  { %v4410_v34 = vsel %vm7249_vm3, %v4374_v25, 0  ;;  %v4155_v58 = vpack.c.bf16 %v4140_v50, %v4139_v43  ;;  %v6417_v29 = vpack.c.bf16 %v4140_v50, %v4140_v50  ;;  %v4253_v22 = vcombine.high %v9078_v26, %v9078_v26 }
 0x3b9   :  { %v5046_v1 = vcombine.low %v4410_v34, %v4411_v61  ;;  %v5053_v47 = vrot.slane %v5045_v15, %v7173_v49  ;;  %v4395_v48 = vor.u32 %v4394_v41, %v4390_v37  ;;  %v4401_v21 = vrot.slane %v4399_v23, 1 }
 0x3ba   :  { %v4412_v43 = vsel %vm7249_vm3, %v4388_v7, 0  ;;  %v9163_v50 = vrot.slane %v6417_v29, %v7173_v49  ;;  %v4172_v35 = vrot.slane %v4155_v58, %v7173_v49  ;;  %v4805_v8 = vrot.slane %v9075_v36, %v7173_v49 }
 0x3bb   :  { %5003 = vrot.lane.b32.xlu1 %v5000_v12, %s6985_s30  ;;  %v5060_v5 = vrot.slane %v5046_v1, %v7173_v49  ;;  %v4402_v18 = vor.u32 %v4401_v21, %v4397_v16  ;;  %v4413_v53 = vsel %vm7249_vm3, %v4395_v48, 0  ;;  %v5062_v13 = vcombine.low %v9953_v33, %v4412_v43 }
 0x3bc   :  { %v9175_v9 = vcombine.high %v9163_v50, %v9163_v50  ;;  %v9179_v11 = vrot.slane %v9163_v50, %v7173_v49  ;;  %v9181_v36 = vcombine.high %v4172_v35, %v4172_v35  ;;  %v4549_v37 = vrot.slane %v4172_v35, %v7173_v49 }
 0x3bd   :  { %v5061_v24 = vcombine.low %v5053_v47, %v5060_v5  ;;  %v4414_v45 = vsel %vm7249_vm3, %v4402_v18, 0  ;;  %v5070_v12 = vrot.slane %v5062_v13, %v7173_v49  ;;  %v4812_v20 = vrot.slane %v9104_v31, %v7173_v49 }
 0x3be   :  { %v5063_v51 = vcombine.low %v4413_v53, %v4414_v45  ;;  %v4556_v25 = vrot.slane %v9181_v36, %v7173_v49  ;;  %v4600_v60 = vshrl.u32 %v4549_v37, 16  ;;  %v4602_v61 = vshll.u32 %v4549_v37, 16 }
 0x3bf   :  { %5079 = vrot.lane.b32.xlu0 %v5061_v24, %s6985_s30  ;;  %5217 = vrot.lane.b32.xlu1 %v9064_v55, %s6985_s30  ;;  %v4819_v16 = vrot.slane %v9078_v26, %v7173_v49  ;;  %v4826_v33 = vrot.slane %v4253_v22, %v7173_v49  ;;  %v4856_v15 = vshrl.u32 %v4805_v8, 16  ;;  %v4858_v7 = vshll.u32 %v4805_v8, 16  ;;  %v6949_v26 = vld [vmem:[%s9658_s5 + $0xf8] sm:$0xff]  }
 0x3c0   :  { %v5077_v31 = vrot.slane %v5063_v51, %v7173_v49  ;;  %v4604_v41 = vrot.slane %v4602_v61, 1  ;;  %v4607_v23 = vshrl.u32 %v4556_v25, 16  ;;  %v4609_v34 = vshll.u32 %v4556_v25, 16  ;;  %v6951_v22 = vld [vmem:[%s9658_s5 + $0xb8] sm:$0xff]   ;;  %6693 = vmatprep.subr.bf16.mxu1 %v6949_v26 }
 0x3c1   :  { %v4860_v29 = vrot.slane %v4858_v7, 1  ;;  %v4863_v56 = vshrl.u32 %v4812_v20, 16  ;;  %v4865_v42 = vshll.u32 %v4812_v20, 16  ;;  %v4870_v1 = vshrl.u32 %v4819_v16, 16  ;;  %6694 = vmatpush3.bf16.msra.mxu1 %v6951_v22 }
 0x3c2   :  { %v5078_v47 = vcombine.low %v5070_v12, %v5077_v31  ;;  %v4611_v48 = vrot.slane %v4609_v34, 1  ;;  %v4872_v21 = vshll.u32 %v4819_v16, 16  ;;  %v4877_v55 = vshrl.u32 %v4826_v33, 16 }
 0x3c3   :  { %5125 = vrot.lane.b32.xlu1 %v4155_v58, %s6985_s30  ;;  %v4861_v43 = vor.u32 %v4860_v29, %v4856_v15  ;;  %v4867_v35 = vrot.slane %v4865_v42, 1  ;;  %v4879_v8 = vshll.u32 %v4826_v33, 16  ;;  %v4570_v5 = vrot.slane %v9175_v9, %v7173_v49 }
 0x3c4   :  { %5081 = vrot.lane.b32.xlu0 %v5078_v47, %s6985_s30  ;;  %v4874_v18 = vrot.slane %v4872_v21, 1  ;;  %v4605_v53 = vor.u32 %v4604_v41, %v4600_v60  ;;  %v4612_v13 = vor.u32 %v4611_v48, %v4607_v23  ;;  %v4614_v37 = vshrl.u32 %v9179_v11, 16  ;;  %v9228_v23 = vld [vmem:[%s9658_s5 + $0x1c0] sm:$0xff]  }
 0x3c5   :  { %v4868_v24 = vor.u32 %v4867_v35, %v4863_v56  ;;  %v4881_v45 = vrot.slane %v4879_v8, 1  ;;  %v4919_v12 = vsel %vm7249_vm3, %v4861_v43, 0  ;;  %v4616_v58 = vshll.u32 %v9179_v11, 16  ;;  %6829 = vmatprep.subr.bf16.mxu1 %v9228_v23 }
 0x3c6   :  { %v4875_v20 = vor.u32 %v4874_v18, %v4870_v1  ;;  %v4621_v51 = vshrl.u32 %v4570_v5, 16  ;;  %v4623_v25 = vshll.u32 %v4570_v5, 16  ;;  %v4663_v61 = vsel %vm7249_vm3, %v4605_v53, 0 }
 0x3c7   :  { %v4882_v16 = vor.u32 %v4881_v45, %v4877_v55  ;;  %v4920_v60 = vsel %vm7249_vm3, %v4868_v24, 0  ;;  %5219 = vrot.lane.b32.xlu1 %v9066_v46, %s6985_s30  ;;  %v4618_v33 = vrot.slane %v4616_v58, 1  ;;  %v9220_v15 = vsel %vm7249_vm3, %v4612_v13, 0 }
 0x3c8   :  { %v4921_v11 = vsel %vm7249_vm3, %v4875_v20, 0  ;;  %v5229_v7 = vcombine.low %v4919_v12, %v4920_v60  ;;  %v4625_v31 = vrot.slane %v4623_v25, 1  ;;  %v5137_v41 = vcombine.low %v4663_v61, %v9220_v15 }
 0x3c9   :  { %v4922_v46 = vsel %vm7249_vm3, %v4882_v16, 0  ;;  %v4619_v34 = vor.u32 %v4618_v33, %v4614_v37  ;;  %v4109_v29 = vadd.f32 %v9014_v59, %v9096_v62  ;;  %v4110_v56 = vadd.f32 %v9014_v59, %v9100_v30 }
 0x3ca   :  { %v5230_v42 = vcombine.low %v4921_v11, %v4922_v46  ;;  %v5237_v1 = vrot.slane %v5229_v7, %v7173_v49  ;;  %v4626_v47 = vor.u32 %v4625_v31, %v4621_v51  ;;  %v5145_v48 = vrot.slane %v5137_v41, %v7173_v49 }
 0x3cb   :  { %v9241_v21 = vsel %vm7249_vm3, %v4619_v34, 0  ;;  %v4125_v55 = vmul.f32 0.2, %v4109_v29  ;;  %v4126_v26 = vmul.f32 0.2, %v4110_v56  ;;  %v4270_v62 = vcombine.high %v9085_v3, %v9085_v3 }
 0x3cc   :  { %v5244_v22 = vrot.slane %v5230_v42, %v7173_v49  ;;  %v9248_v30 = vsel %vm7249_vm3, %v4626_v47, 0  ;;  %v4833_v43 = vrot.slane %v9082_v44, %v7173_v49  ;;  %v4840_v35 = vrot.slane %v9110_v39, %v7173_v49 }
 0x3cd   :  { %v5138_v8 = vcombine.low %v9241_v21, %v9248_v30  ;;  %v4141_v5 = vmax.f32 %v4109_v29, %v4125_v55  ;;  %v4142_v18 = vmax.f32 %v4110_v56, %v4126_v26  ;;  %v4847_v53 = vrot.slane %v9085_v3, %v7173_v49 }
 0x3ce   :  { %v5245_v13 = vcombine.low %v5237_v1, %v5244_v22  ;;  %v4854_v37 = vrot.slane %v4270_v62, %v7173_v49  ;;  %v4884_v24 = vshrl.u32 %v4833_v43, 16  ;;  %v4886_v45 = vshll.u32 %v4833_v43, 16 }
 0x3cf   :  { %v5152_v12 = vrot.slane %v5138_v8, %v7173_v49  ;;  %v4156_v58 = vpack.c.bf16 %v4142_v18, %v4141_v5  ;;  %v6418_v44 = vpack.c.bf16 %v4142_v18, %v4142_v18  ;;  %v4891_v20 = vshrl.u32 %v4840_v35, 16 }
 0x3d0   :  { %5263 = vrot.lane.b32.xlu0 %v5245_v13, %s6985_s30  ;;  %v4888_v39 = vrot.slane %v4886_v45, 1  ;;  %v4893_v51 = vshll.u32 %v4840_v35, 16  ;;  %v4898_v25 = vshrl.u32 %v4847_v53, 16  ;;  %v4900_v61 = vshll.u32 %v4847_v53, 16 }
 0x3d1   :  { %v5153_v16 = vcombine.low %v5145_v48, %v5152_v12  ;;  %v4189_v60 = vrot.slane %v4156_v58, %v7173_v49  ;;  %v4196_v3 = vrot.slane %v6418_v44, %v7173_v49  ;;  %5127 = vrot.lane.b32.xlu1 %v4156_v58, %s6985_s30  ;;  %v4905_v33 = vshrl.u32 %v4854_v37, 16 }
 0x3d2   :  { %v4889_v11 = vor.u32 %v4888_v39, %v4884_v24  ;;  %v4895_v7 = vrot.slane %v4893_v51, 1  ;;  %v4902_v31 = vrot.slane %v4900_v61, 1  ;;  %v4907_v41 = vshll.u32 %v4854_v37, 16 }
 0x3d3   :  { %v4197_v46 = vcombine.high %v4189_v60, %v4189_v60  ;;  %v4198_v34 = vcombine.high %v4196_v3, %v4196_v3  ;;  %v4577_v29 = vrot.slane %v4189_v60, %v7173_v49  ;;  %v4591_v56 = vrot.slane %v4196_v3, %v7173_v49 }
 0x3d4   :  { %5171 = vrot.lane.b32.xlu0 %v5153_v16, %s6985_s30  ;;  %v4896_v42 = vor.u32 %v4895_v7, %v4891_v20  ;;  %v4903_v1 = vor.u32 %v4902_v31, %v4898_v25  ;;  %v4909_v47 = vrot.slane %v4907_v41, 1  ;;  %v4923_v48 = vsel %vm7249_vm3, %v4889_v11, 0 }
 0x3d5   :  { %v4584_v55 = vrot.slane %v4197_v46, %v7173_v49  ;;  %v4628_v26 = vshrl.u32 %v4577_v29, 16  ;;  %v4630_v62 = vshll.u32 %v4577_v29, 16  ;;  %v5301_v22 = vcombine.low %v9181_v36, %v9163_v50 }
 0x3d6   :  { %v4910_v43 = vor.u32 %v4909_v47, %v4905_v33  ;;  %v4924_v35 = vsel %vm7249_vm3, %v4896_v42, 0  ;;  %v4925_v8 = vsel %vm7249_vm3, %v4903_v1, 0  ;;  %v5302_v5 = vcombine.low %v9175_v9, %v9951_v10  ;;  %v9954_v1 = vld [vmem:[#allocation53_spill] sm:$0xff] }
 0x3d7   :  { %v4632_v18 = vrot.slane %v4630_v62, 1  ;;  %v4635_v53 = vshrl.u32 %v4584_v55, 16  ;;  %v4637_v13 = vshll.u32 %v4584_v55, 16  ;;  %v5246_v37 = vcombine.low %v4923_v48, %v4924_v35 }
 0x3d8   :  { %v4926_v24 = vsel %vm7249_vm3, %v4910_v43, 0  ;;  %v5309_v45 = vrot.slane %v5301_v22, %v7173_v49  ;;  %v5316_v50 = vrot.slane %v5302_v5, %v7173_v49  ;;  %v4598_v36 = vrot.slane %v4198_v34, %v7173_v49 }
 0x3d9   :  { %v4639_v12 = vrot.slane %v4637_v13, 1  ;;  %v5247_v58 = vcombine.low %v4925_v8, %v4926_v24  ;;  %v5254_v44 = vrot.slane %v5246_v37, %v7173_v49  ;;  %v4633_v20 = vor.u32 %v4632_v18, %v4628_v26 }
 0x3da   :  { %v5317_v39 = vcombine.low %v5309_v45, %v5316_v50  ;;  %v4642_v9 = vshrl.u32 %v4591_v56, 16  ;;  %v4644_v51 = vshll.u32 %v4591_v56, 16  ;;  %v4649_v25 = vshrl.u32 %v4598_v36, 16 }
 0x3db   :  { %v5261_v61 = vrot.slane %v5247_v58, %v7173_v49  ;;  %v4640_v16 = vor.u32 %v4639_v12, %v4635_v53  ;;  %v4651_v60 = vshll.u32 %v4598_v36, 16  ;;  %v4667_v33 = vsel %vm7249_vm3, %v4633_v20, 0 }
 0x3dc   :  { %5335 = vrot.lane.b32.xlu1 %v5317_v39, %s6985_s30  ;;  %v4646_v11 = vrot.slane %v4644_v51, 1  ;;  %v5318_v7 = vcombine.low %v4197_v46, %v4196_v3  ;;  %v5319_v31 = vcombine.low %v4198_v34, %v9951_v10  ;;  %v5373_v41 = vcombine.low %v9220_v15, %v9241_v21 }
 0x3dd   :  { %v5262_v29 = vcombine.low %v5254_v44, %v5261_v61  ;;  %v4653_v42 = vrot.slane %v4651_v60, 1  ;;  %v4668_v56 = vsel %vm7249_vm3, %v4640_v16, 0  ;;  %v5374_v47 = vcombine.low %v9248_v30, %v9954_v1 }
 0x3de   :  { %v4647_v48 = vor.u32 %v4646_v11, %v4642_v9  ;;  %v5154_v55 = vcombine.low %v4667_v33, %v4668_v56  ;;  %v5326_v26 = vrot.slane %v5318_v7, %v7173_v49  ;;  %v5333_v62 = vrot.slane %v5319_v31, %v7173_v49 }
 0x3df   :  { %5265 = vrot.lane.b32.xlu0 %v5262_v29, %s6985_s30  ;;  %v4654_v3 = vor.u32 %v4653_v42, %v4649_v25  ;;  %v5381_v46 = vrot.slane %v5373_v41, %v7173_v49  ;;  %v5388_v15 = vrot.slane %v5374_v47, %v7173_v49  ;;  %v4280_v21 = vrot.slane %v9049_v19, %v7173_v49  ;;  %v9955_v47 = vld [vmem:[#allocation13_spill] sm:$0xff] }
 0x3e0   :  { %v9304_v34 = vrot.slane %v9052_v52, %v7173_v49  ;;  %v4669_v30 = vsel %vm7249_vm3, %v4647_v48, 0  ;;  %v5334_v22 = vcombine.low %v5326_v26, %v5333_v62  ;;  %v9312_v43 = vrot.slane %v6423_v38, %v7173_v49 }
 0x3e1   :  { %v4670_v35 = vsel %vm7249_vm3, %v4654_v3, 0  ;;  %v5162_v8 = vrot.slane %v5154_v55, %v7173_v49  ;;  %v5390_v5 = vcombine.low %v4668_v56, %v4669_v30  ;;  %v4288_v18 = vcombine.high %v4280_v21, %v4280_v21 }
 0x3e2   :  { %v5155_v53 = vcombine.low %v4669_v30, %v4670_v35  ;;  %5337 = vrot.lane.b32.xlu1 %v5334_v22, %s6985_s30  ;;  %v5389_v13 = vcombine.low %v5381_v46, %v5388_v15  ;;  %v5391_v37 = vcombine.low %v4670_v35, %v9954_v1  ;;  %v4308_v24 = vshrl.u32 %v4280_v21, 16 }
 0x3e3   :  { %v5398_v45 = vrot.slane %v5390_v5, %v7173_v49  ;;  %v4311_v50 = vshll.u32 %v4280_v21, 16  ;;  %v4315_v27 = vshrl.u32 %v4288_v18, 16  ;;  %v4322_v38 = vshrl.u32 %v9312_v43, 16 }
 0x3e4   :  { %v5169_v6 = vrot.slane %v5155_v53, %v7173_v49  ;;  %v4310_v36 = vrot.slane %v4308_v24, 7  ;;  %v4318_v12 = vshll.u32 %v4288_v18, 16  ;;  %v4325_v58 = vshll.u32 %v9312_v43, 16 }
 0x3e5   :  { %v4317_v44 = vrot.slane %v4315_v27, 7  ;;  %v4324_v20 = vrot.slane %v4322_v38, 7  ;;  %v4289_v39 = vcombine.high %v9312_v43, %v9312_v43  ;;  %v4677_v9 = vrot.slane %v4280_v21, %v7173_v49 }
 0x3e6   :  { %v5170_v51 = vcombine.low %v5162_v8, %v5169_v6  ;;  %v5405_v25 = vrot.slane %v5391_v37, %v7173_v49  ;;  %v4313_v61 = vor.u32 %v4311_v50, %v4310_v36  ;;  %v4684_v16 = vrot.slane %v4288_v18, %v7173_v49 }
 0x3e7   :  { %v4320_v60 = vor.u32 %v4318_v12, %v4317_v44  ;;  %v4327_v33 = vor.u32 %v4325_v58, %v4324_v20  ;;  %v4691_v11 = vrot.slane %v9312_v43, %v7173_v49  ;;  %v4698_v7 = vrot.slane %v4289_v39, %v7173_v49 }
 0x3e8   :  { %5173 = vrot.lane.b32.xlu0 %v5170_v51, %s6985_s30  ;;  %v4355_v31 = vsel %vm7623_vm6, 0, %v4313_v61  ;;  %v4728_v41 = vshrl.u32 %v4677_v9, 16  ;;  %v4731_v29 = vshll.u32 %v4677_v9, 16  ;;  %v4735_v42 = vshrl.u32 %v4684_v16, 16 }
 0x3e9   :  { %v4356_v56 = vsel %vm7623_vm6, 0, %v4320_v60  ;;  %v4357_v1 = vsel %vm7623_vm6, 0, %v4327_v33  ;;  %v4933_v48 = vcombine.low %v9955_v47, %v4355_v31  ;;  %v4738_v55 = vshll.u32 %v4684_v16, 16 }
 0x3ea   :  { %v4934_v26 = vcombine.low %v4356_v56, %v4357_v1  ;;  %v4730_v62 = vrot.slane %v4728_v41, 7  ;;  %v4737_v3 = vrot.slane %v4735_v42, 7  ;;  %v4742_v46 = vshrl.u32 %v4691_v11, 16 }
 0x3eb   :  { %v5406_v15 = vcombine.low %v5398_v45, %v5405_v25  ;;  %v4941_v30 = vrot.slane %v4933_v48, %v7173_v49  ;;  %v4745_v22 = vshll.u32 %v4691_v11, 16  ;;  %v4749_v35 = vshrl.u32 %v4698_v7, 16 }
 0x3ec   :  { %5407 = vrot.lane.b32.xlu0 %v5389_v13, %s6985_s30  ;;  %v4948_v8 = vrot.slane %v4934_v26, %v7173_v49  ;;  %v4733_v5 = vor.u32 %v4731_v29, %v4730_v62  ;;  %v4740_v53 = vor.u32 %v4738_v55, %v4737_v3  ;;  %v4744_v37 = vrot.slane %v4742_v46, 7 }
 0x3ed   :  { %v4751_v24 = vrot.slane %v4749_v35, 7  ;;  %v4752_v50 = vshll.u32 %v4698_v7, 16  ;;  %v5005_v27 = vcombine.low %v9951_v10, %v4280_v21  ;;  %v5006_v38 = vcombine.low %v4288_v18, %v9312_v43 }
 0x3ee   :  { %v9344_v6 = vcombine.low %v4941_v30, %v4948_v8  ;;  %v4747_v45 = vor.u32 %v4745_v22, %v4744_v37  ;;  %v4791_v36 = vsel %vm7623_vm6, 0, %v4733_v5  ;;  %v4792_v13 = vsel %vm7623_vm6, 0, %v4740_v53 }
 0x3ef   :  { %v4754_v12 = vor.u32 %v4752_v50, %v4751_v24  ;;  %v5183_v58 = vcombine.low %v4791_v36, %v4792_v13  ;;  %v5013_v44 = vrot.slane %v5005_v27, %v7173_v49  ;;  %v5020_v20 = vrot.slane %v5006_v38, %v7173_v49 }
 0x3f0   :  { %v4304_v21 = vrot.slane %v6424_v28, %v7173_v49  ;;  %5409 = vrot.lane.b32.xlu0 %v5406_v15, %s6985_s30  ;;  %v4305_v43 = vcombine.high %v9304_v34, %v9304_v34  ;;  %v4793_v18 = vsel %vm7623_vm6, 0, %v4747_v45  ;;  %v5022_v51 = vcombine.low %v9951_v10, %v9304_v34 }
 0x3f1   :  { %v4794_v39 = vsel %vm7623_vm6, 0, %v4754_v12  ;;  %v9363_v9 = vcombine.low %v5013_v44, %v5020_v20  ;;  %v5191_v57 = vrot.slane %v5183_v58, %v7173_v49  ;;  %v4329_v61 = vshrl.u32 %v9304_v34, 16 }
 0x3f2   :  { %v5184_v25 = vcombine.low %v4793_v18, %v4794_v39  ;;  %v5023_v28 = vcombine.low %v4305_v43, %v4304_v21  ;;  %v4336_v16 = vshrl.u32 %v4305_v43, 16  ;;  %v5030_v33 = vrot.slane %v5022_v51, %v7173_v49 }
 0x3f3   :  { %v4332_v7 = vshll.u32 %v9304_v34, 16  ;;  %v4331_v31 = vrot.slane %v4329_v61, 7  ;;  %v4339_v29 = vshll.u32 %v4305_v43, 16  ;;  %v4343_v42 = vshrl.u32 %v4304_v21, 16 }
 0x3f4   :  { %v5198_v60 = vrot.slane %v5184_v25, %v7173_v49  ;;  %v5037_v11 = vrot.slane %v5023_v28, %v7173_v49  ;;  %v4338_v41 = vrot.slane %v4336_v16, 7  ;;  %v4346_v62 = vshll.u32 %v4304_v21, 16 }
 0x3f5   :  { %v4334_v48 = vor.u32 %v4332_v7, %v4331_v31  ;;  %v4345_v26 = vrot.slane %v4343_v42, 7  ;;  %v4705_v37 = vrot.slane %v9304_v34, %v7173_v49  ;;  %v4712_v50 = vrot.slane %v4305_v43, %v7173_v49 }
 0x3f6   :  { %v9373_v56 = vcombine.low %v5191_v57, %v5198_v60  ;;  %v9375_v1 = vcombine.low %v5030_v33, %v5037_v11  ;;  %v4341_v55 = vor.u32 %v4339_v29, %v4338_v41  ;;  %v4306_v27 = vcombine.high %v4304_v21, %v4304_v21 }
 0x3f7   :  { %v4348_v3 = vor.u32 %v4346_v62, %v4345_v26  ;;  %v4358_v46 = vsel %vm7623_vm6, 0, %v4334_v48  ;;  %v4756_v24 = vshrl.u32 %v4705_v37, 16  ;;  %v4719_v38 = vrot.slane %v4304_v21, %v7173_v49 }
 0x3f8   :  { %v4359_v15 = vsel %vm7623_vm6, 0, %v4341_v55  ;;  %v4950_v30 = vcombine.low %v9955_v47, %v4358_v46  ;;  %v4089_v45 = vmul.f32 %v9009_v4, %v8873_v32  ;;  %v4090_v36 = vmul.f32 %v9009_v4, %v8876_v63 }
 0x3f9   :  { %v4360_v22 = vsel %vm7623_vm6, 0, %v4348_v3  ;;  %v4758_v47 = vrot.slane %v4756_v24, 7  ;;  %v4763_v13 = vshrl.u32 %v4712_v50, 16  ;;  %v4726_v12 = vrot.slane %v4306_v27, %v7173_v49 }
 0x3fa   :  { %v4951_v35 = vcombine.low %v4359_v15, %v4360_v22  ;;  %v4958_v8 = vrot.slane %v4950_v30, %v7173_v49  ;;  %v4759_v58 = vshll.u32 %v4705_v37, 16  ;;  %v4766_v34 = vshll.u32 %v4712_v50, 16 }
 0x3fb   :  { %v4765_v20 = vrot.slane %v4763_v13, 7  ;;  %v4770_v18 = vshrl.u32 %v4719_v38, 16  ;;  %v4111_v43 = vadd.f32 %v9014_v59, %v4089_v45  ;;  %v4112_v39 = vadd.f32 %v9014_v59, %v4090_v36 }
 0x3fc   :  { %v4965_v5 = vrot.slane %v4951_v35, %v7173_v49  ;;  %v4761_v44 = vor.u32 %v4759_v58, %v4758_v47  ;;  %v4773_v25 = vshll.u32 %v4719_v38, 16  ;;  %v4777_v57 = vshrl.u32 %v4726_v12, 16  ;;  %v6944_v58 = vld [vmem:[%s9658_s5 + $0x100] sm:$0xff]  }
 0x3fd   :  { %v4768_v21 = vor.u32 %v4766_v34, %v4765_v20  ;;  %v4772_v51 = vrot.slane %v4770_v18, 7  ;;  %v4780_v32 = vshll.u32 %v4726_v12, 16  ;;  %v4127_v60 = vmul.f32 0.2, %v4111_v43  ;;  %v6946_v18 = vld [vmem:[%s9658_s5 + $0x148] sm:$0xff]  }
 0x3fe   :  { %v9386_v53 = vcombine.low %v4958_v8, %v4965_v5  ;;  %v4779_v61 = vrot.slane %v4777_v57, 7  ;;  %v4795_v63 = vsel %vm7623_vm6, 0, %v4761_v44  ;;  %v4128_v33 = vmul.f32 0.2, %v4112_v39 }
 0x3ff   :  { %v4775_v28 = vor.u32 %v4773_v25, %v4772_v51  ;;  %v4796_v16 = vsel %vm7623_vm6, 0, %v4768_v21  ;;  %v4143_v29 = vmax.f32 %v4111_v43, %v4127_v60  ;;  %v4091_v15 = vmul.f32 %v9009_v4, %v8879_v14 }
 0x400   :  { %v5200_v11 = vcombine.low %v4795_v63, %v4796_v16  ;;  %v4782_v7 = vor.u32 %v4780_v32, %v4779_v61  ;;  %v4144_v42 = vmax.f32 %v4112_v39, %v4128_v33  ;;  %v4092_v30 = vmul.f32 %v9009_v4, %v8882_v40 }
 0x401   :  { %v4797_v31 = vsel %vm7623_vm6, 0, %v4775_v28  ;;  %v4113_v8 = vadd.f32 %v9014_v59, %v4091_v15 }
 0x402   :  { %v4798_v41 = vsel %vm7623_vm6, 0, %v4782_v7  ;;  %v5208_v55 = vrot.slane %v5200_v11, %v7173_v49  ;;  %v9409_v62 = vpack.c.bf16 %v4144_v42, %v4143_v29  ;;  %v6419_v3 = vpack.c.bf16 %v4144_v42, %v4144_v42 }
 0x403   :  { %v5201_v48 = vcombine.low %v4797_v31, %v4798_v41  ;;  %v4114_v5 = vadd.f32 %v9014_v59, %v4092_v30  ;;  %v4129_v14 = vmul.f32 0.2, %v4113_v8 }
 0x404   :  { %v4208_v22 = vrot.slane %v9409_v62, %v7173_v49  ;;  %v9420_v35 = vrot.slane %v6419_v3, %v7173_v49 }
 0x405   :  { %v5215_v26 = vrot.slane %v5201_v48, %v7173_v49  ;;  %v4130_v50 = vmul.f32 0.2, %v4114_v5  ;;  %v4145_v59 = vmax.f32 %v4113_v8, %v4129_v14  ;;  %v6955_v14 = vld [vmem:[%s9658_s5 + $0x118] sm:$0xff]  }
 0x406   :  { %v9424_v37 = vcombine.high %v4208_v22, %v4208_v22  ;;  %v9428_v24 = vcombine.high %v9420_v35, %v9420_v35  ;;  %v4421_v27 = vrot.slane %v4208_v22, %v7173_v49  ;;  %v4435_v38 = vrot.slane %v9420_v35, %v7173_v49 }
 0x407   :  { %v9411_v46 = vcombine.low %v5208_v55, %v5215_v26  ;;  %v4146_v47 = vmax.f32 %v4114_v5, %v4130_v50  ;;  %v6952_v55 = vld [vmem:[%s9658_s5 + $0x110] sm:$0xff]   ;;  %v6953_v26 = vld [vmem:[%s9658_s5 + $0x158] sm:$0xff]  }
 0x408   :  { %v4428_v40 = vrot.slane %v9424_v37, %v7173_v49  ;;  %v4442_v4 = vrot.slane %v9428_v24, %v7173_v49  ;;  %v4472_v44 = vshrl.u32 %v4421_v27, 16  ;;  %v4486_v20 = vshrl.u32 %v4435_v38, 16 }
 0x409   :  { %v9445_v43 = vpack.c.bf16 %v4146_v47, %v4145_v59  ;;  %v6420_v25 = vpack.c.bf16 %v4146_v47, %v4146_v47  ;;  %v4475_v16 = vshll.u32 %v4421_v27, 16  ;;  %v4489_v60 = vshll.u32 %v4435_v38, 16  ;;  %v6959_v59 = vld [vmem:[%s9658_s5 + $0x120] sm:$0xff]  }
 0x40a   :  { %v4479_v45 = vshrl.u32 %v4428_v40, 16  ;;  %v4493_v36 = vshrl.u32 %v4442_v4, 16  ;;  %v4474_v57 = vrot.slane %v4472_v44, 7  ;;  %v4482_v32 = vshll.u32 %v4428_v40, 16  ;;  %v6957_v40 = vld [vmem:[%s9658_s5 + $0x160] sm:$0xff]  }
 0x40b   :  { %v4488_v28 = vrot.slane %v4486_v20, 7  ;;  %v4496_v61 = vshll.u32 %v4442_v4, 16  ;;  %v4225_v33 = vrot.slane %v9445_v43, %v7173_v49  ;;  %v9460_v41 = vrot.slane %v6420_v25, %v7173_v49 }
 0x40c   :  { %v4481_v21 = vrot.slane %v4479_v45, 7  ;;  %v4495_v51 = vrot.slane %v4493_v36, 7  ;;  %v4477_v42 = vor.u32 %v4475_v16, %v4474_v57 }
 0x40d   :  { %v4491_v48 = vor.u32 %v4489_v60, %v4488_v28  ;;  %v9468_v3 = vcombine.high %v4225_v33, %v4225_v33  ;;  %v9482_v22 = vcombine.high %v9460_v41, %v9460_v41  ;;  %v4463_v47 = vrot.slane %v9460_v41, %v7173_v49 }
 0x40e   :  { %v4484_v11 = vor.u32 %v4482_v32, %v4481_v21  ;;  %v4498_v7 = vor.u32 %v4496_v61, %v4495_v51  ;;  %v4535_v8 = vsel %vm7623_vm6, 0, %v4477_v42  ;;  %v4449_v45 = vrot.slane %v4225_v33, %v7173_v49  ;;  %v6963_v51 = vld [vmem:[%s9658_s5 + $0x128] sm:$0xff]   ;;  %v6956_v32 = vld [vmem:[%s9658_s5 + $0x180] sm:$0xff]  }
 0x40f   :  { %v9488_v5 = vsel %vm7623_vm6, 0, %v4491_v48  ;;  %v4456_v27 = vrot.slane %v9468_v3, %v7173_v49  ;;  %v4470_v38 = vrot.slane %v9482_v22, %v7173_v49  ;;  %v6958_v61 = vld [vmem:[%s9658_s5 + $0x1c8] sm:$0xff]   ;;  %v4517_v42 = vshll.u32 %v4463_v47, 16 }
 0x410   :  { %v9476_v15 = vsel %vm7623_vm6, 0, %v4498_v7  ;;  %v4500_v21 = vshrl.u32 %v4449_v45, 16  ;;  %v6967_v7 = vld [vmem:[%s9658_s5 + $0x130] sm:$0xff]  }
 0x411   :  { %v4507_v20 = vshrl.u32 %v4456_v27, 16  ;;  %v4510_v60 = vshll.u32 %v4456_v27, 16  ;;  %v4524_v33 = vshll.u32 %v4470_v38, 16  ;;  %v6966_v27 = vld [vmem:[%s9658_s5 + $0x1d8] sm:$0xff]  }
 0x429   :  { %v5002_v13 = vpop.permute.xlu1 %5001 }
 0x42a   :  { %v5413_v39 = vsel %vm2022_vm8, %v9344_v6, %v5002_v13  ;;  %v6950_v6 = vld [vmem:[%s9658_s5 + $0x150] sm:$0xff]  }
 0x42d   :  { %v5004_v29 = vpop.permute.xlu1 %5003 }
 0x42e   :  { %v5417_v30 = vsel %vm2022_vm8, %v9386_v53, %v5004_v29  ;;  %v5092_v53 = vcombine.low %v9488_v5, %v9476_v15 }
 0x430   :  { %v5106_v13 = vrot.slane %v5092_v53, %v7173_v49 }
 0x431   :  { %v5080_v12 = vpop.permute.xlu0 %5079  ;;  %v9499_v4 = vpop.permute.xlu1 %5217 }
 0x432   :  { %v5421_v34 = vsel %vm2022_vm8, %v9363_v9, %v5080_v12  ;;  %v6948_v9 = vld [vmem:[%s9658_s5 + $0x108] sm:$0xff]  }
 0x433   :  { %6019 = vmatprep.mubr.bf16.mxu0 %v5421_v34  ;;  %v4521_v34 = vshrl.u32 %v4470_v38, 16 }
 0x434   :  { %6020 = vmatmul.mubr.bf16.vlgmr.msra.gmra.mrb[64].mxu0 %v5413_v39  ;;  %v4514_v39 = vshrl.u32 %v4463_v47, 16 }
 0x435   :  { %6708 = vmatpush3.bf16.msra.mxu0 %v6944_v58  ;;  %v6961_v58 = vld [vmem:[%s9658_s5 + $0x168] sm:$0xff]  }
 0x436   :  { %v5082_v63 = vpop.permute.xlu0 %5081  ;;  %6709 = vmatprep.subr.bf16.mxu0 %v6946_v18  ;;  %v5126_v18 = vpop.permute.xlu1 %5125 }
 0x437   :  { %v5425_v31 = vsel %vm2022_vm8, %v9375_v1, %v5082_v63  ;;  %v9472_v1 = vsel %vm7623_vm6, 0, %v4484_v11  ;;  %v4523_v63 = vrot.slane %v4521_v34, 7  ;;  %v4502_v11 = vrot.slane %v4500_v21, 7  ;;  %v6972_v34 = vld [vmem:[%s9658_s5 + $0x1a0] sm:$0xff]  }
 0x438   :  { %6027 = vmatprep.mubr.bf16.mxu0 %v5425_v31  ;;  %v5091_v50 = vcombine.low %v4535_v8, %v9472_v1  ;;  %v6969_v31 = vld [vmem:[%s9658_s5 + $0x178] sm:$0xff]  }
 0x439   :  { %6710 = vmatpush3.bf16.msra.mxu0 %v6948_v9  ;;  %v4509_v9 = vrot.slane %v4507_v20, 7  ;;  %v4526_v48 = vor.u32 %v4524_v33, %v4523_v63  ;;  %v5339_v20 = vcombine.low %v9424_v37, %v9420_v35  ;;  %v5356_v35 = vcombine.low %v9468_v3, %v9460_v41  ;;  %v6977_v63 = vld [vmem:[%s9658_s5 + $0x1f8] sm:$0xff]  }
 0x43a   :  { %6711 = vmatprep.subr.bf16.mxu0 %v6950_v6  ;;  %v5099_v36 = vrot.slane %v5091_v50, %v7173_v49  ;;  %v4516_v6 = vrot.slane %v4514_v39, 7  ;;  %v6964_v50 = vld [vmem:[%s9658_s5 + $0x190] sm:$0xff]   ;;  %v5357_v37 = vcombine.low %v9482_v22, %v9951_v10 }
 0x43b   :  { %v4512_v29 = vor.u32 %v4510_v60, %v4509_v9  ;;  %v5364_v22 = vrot.slane %v5356_v35, %v7173_v49 }
 0x43c   :  { %6028 = vmatmul.mubr.bf16.gmra.mrb[68].mxu0 %v5417_v30  ;;  %v5107_v25 = vcombine.low %v5099_v36, %v5106_v13  ;;  %v4519_v30 = vor.u32 %v4517_v42, %v4516_v6  ;;  %v6968_v13 = vld [vmem:[%s9658_s5 + $0x198] sm:$0xff]  }
 0x43d   :  { %6712 = vmatpush3.bf16.msra.mxu0 %v6952_v55  ;;  %v6962_v55 = vld [vmem:[%s9658_s5 + $0x1d0] sm:$0xff]   ;;  %v9553_v53 = vsel %vm7623_vm6, 0, %v4512_v29 }
 0x43e   :  { %6713 = vmatprep.subr.bf16.mxu0 %v6953_v26  ;;  %v5429_v16 = vsel %vm2022_vm8, %v5107_v25, %v5126_v18  ;;  %v4503_v26 = vshll.u32 %v4449_v45, 16  ;;  %v6974_v25 = vld [vmem:[%s9658_s5 + $0x1a8] sm:$0xff]  }
 0x440   :  { %v4505_v8 = vor.u32 %v4503_v26, %v4502_v11 }
 0x441   :  { %6714 = vmatpush3.bf16.msra.mxu0 %v6955_v14  ;;  %v6971_v14 = vld [vmem:[%s9658_s5 + $0x138] sm:$0xff]  }
 0x442   :  { %v5264_v12 = vpop.permute.xlu0 %5263  ;;  %6715 = vmatprep.subr.bf16.mxu0 %v6957_v40  ;;  %v9557_v40 = vsel %vm7623_vm6, 0, %v4526_v48  ;;  %v4539_v47 = vsel %vm7623_vm6, 0, %v4505_v8  ;;  %v5267_v48 = vcombine.low %v9472_v1, %v9488_v5 }
 0x443   :  { %v5453_v44 = vsel %vm2022_vm8, %v9049_v19, %v5264_v12  ;;  %v6965_v19 = vld [vmem:[%s9658_s5 + $0x170] sm:$0xff]   ;;  %v5108_v45 = vcombine.low %v4539_v47, %v9553_v53  ;;  %v5445_v12 = vsel %vm2022_vm8, %v9373_v56, %v9499_v4 }
 0x444   :  { %6117 = vmatprep.mubr.bf16.mxu0 %v5453_v44  ;;  %v5275_v26 = vrot.slane %v5267_v48, %v7173_v49 }
 0x445   :  { %6716 = vmatpush3.bf16.msra.mxu0 %v6959_v59  ;;  %v4541_v59 = vsel %vm7623_vm6, 0, %v4519_v30  ;;  %v5116_v56 = vrot.slane %v5108_v45, %v7173_v49 }
 0x446   :  { %v5172_v57 = vpop.permute.xlu0 %5171  ;;  %6717 = vmatprep.subr.bf16.mxu0 %v6961_v58  ;;  %v5109_v36 = vcombine.low %v4541_v59, %v9557_v40  ;;  %v5220_v58 = vpop.permute.xlu1 %5219 }
 0x447   :  { %v5437_v28 = vsel %vm2022_vm8, %v9409_v62, %v5172_v57  ;;  %v6960_v62 = vld [vmem:[%s9658_s5 + $0x188] sm:$0xff]   ;;  %v5449_v41 = vsel %vm2022_vm8, %v9411_v46, %v5220_v58  ;;  %v6976_v46 = vld [vmem:[%s9658_s5 + $0x1b0] sm:$0xff]  }
 0x448   :  { %6068 = vmatprep.mubr.bf16.mxu1 %v5437_v28  ;;  %v5123_v4 = vrot.slane %v5109_v36, %v7173_v49  ;;  %v5285_v28 = vcombine.low %v9557_v40, %v8686_v0 }
 0x449   :  { %6069 = vmatmul.mubr.bf16.vlgmr.msra.gmra.mrb[64].mxu1 %v5429_v16  ;;  %6718 = vmatpush3.bf16.msra.mxu0 %v6963_v51 }
 0x44a   :  { %6837 = vmatpush3.bf16.msra.mxu1 %v6956_v32  ;;  %6719 = vmatprep.subr.bf16.mxu0 %v6965_v19  ;;  %v5128_v18 = vpop.permute.xlu1 %5127  ;;  %v5124_v51 = vcombine.low %v5116_v56, %v5123_v4  ;;  %v5299_v33 = vrot.slane %v5285_v28, %v7173_v49 }
 0x44b   :  { %6830 = vmatprep.subr.bf16.mxu1 %v6958_v61 }
 0x44c   :  { %v5433_v3 = vsel %vm2022_vm8, %v5124_v51, %v5128_v18 }
 0x44d   :  { %6720 = vmatpush3.bf16.msra.mxu0 %v6967_v7  ;;  %v6978_v7 = vld [vmem:[%s9658_s5 + $0x1b8] sm:$0xff]  }
 0x44e   :  { %6838 = vmatpush3.bf16.msra.mxu1 %v6960_v62  ;;  %6721 = vmatprep.subr.bf16.mxu0 %v6969_v31  ;;  %v5336_v9 = vpop.permute.xlu1 %5335 }
 0x44f   :  { %6831 = vmatprep.subr.bf16.mxu1 %v6962_v55 }
 0x451   :  { %v5266_v38 = vpop.permute.xlu0 %5265  ;;  %6722 = vmatpush3.bf16.msra.mxu0 %v6971_v14 }
 0x452   :  { %6839 = vmatpush3.bf16.msra.mxu1 %v6964_v50  ;;  %6735 = vmatprep.subr.bf16.mxu0 %v9228_v23  ;;  %v5457_v44 = vsel %vm2022_vm8, %v9052_v52, %v5266_v38  ;;  %v5340_v23 = vcombine.low %v9428_v24, %v9951_v10  ;;  %v6973_v52 = vld [vmem:[%s9658_s5 + $0x1e8] sm:$0xff]   ;;  %v5347_v24 = vrot.slane %v5339_v20, %v7173_v49  ;;  %v6975_v10 = vld [vmem:[%s9658_s5 + $0x1f0] sm:$0xff]  }
 0x453   :  { %6832 = vmatprep.subr.bf16.mxu1 %v6966_v27 }
 0x454   :  { %6118 = vmatmul.mubr.bf16.vlgmr.msra.gmra.mrb[72].mxu0 %v5445_v12  ;;  %v5354_v39 = vrot.slane %v5340_v23, %v7173_v49  ;;  %v5338_v31 = vpop.permute.xlu1 %5337 }
 0x455   :  { %6125 = vmatprep.mubr.bf16.mxu0 %v5457_v44  ;;  %6736 = vmatpush3.bf16.msra.mxu0 %v6956_v32  ;;  %v5371_v32 = vrot.slane %v5357_v37, %v7173_v49 }
 0x456   :  { %6840 = vmatpush3.bf16.msra.mxu1 %v6968_v13  ;;  %6737 = vmatprep.subr.bf16.mxu0 %v6958_v61  ;;  %v5355_v19 = vcombine.low %v5347_v24, %v5354_v39 }
 0x457   :  { %6833 = vmatprep.subr.bf16.mxu1 %v6970_v2  ;;  %v5372_v60 = vcombine.low %v5364_v22, %v5371_v32 }
 0x459   :  { %6738 = vmatpush3.bf16.msra.mxu0 %v6960_v62 }
 0x45a   :  { %v5174_v21 = vpop.permute.xlu0 %5173  ;;  %6841 = vmatpush3.bf16.msra.mxu1 %v6972_v34  ;;  %6739 = vmatprep.subr.bf16.mxu0 %v6962_v55  ;;  %v5268_v55 = vcombine.low %v9476_v15, %v8686_v0 }
 0x45b   :  { %v5441_v57 = vsel %vm2022_vm8, %v9445_v43, %v5174_v21  ;;  %6834 = vmatprep.subr.bf16.mxu1 %v6973_v52  ;;  %v5284_v43 = vcombine.low %v9553_v53, %v4541_v59 }
 0x45c   :  { %6076 = vmatprep.mubr.bf16.mxu1 %v5441_v57  ;;  %6126 = vmatmul.mubr.bf16.gmra.mrb[76].mxu0 %v5449_v41  ;;  %v5282_v30 = vrot.slane %v5268_v55, %v7173_v49 }
 0x45d   :  { %6077 = vmatmul.mubr.bf16.gmra.mrb[68].mxu1 %v5433_v3  ;;  %6740 = vmatpush3.bf16.msra.mxu0 %v6964_v50  ;;  %v5292_v6 = vrot.slane %v5284_v43, %v7173_v49 }
 0x45e   :  { %v5408_v61 = vpop.permute.xlu0 %5407  ;;  %6842 = vmatpush3.bf16.msra.mxu1 %v6974_v25  ;;  %6741 = vmatprep.subr.bf16.mxu0 %v6966_v27  ;;  %v5283_v8 = vcombine.low %v5275_v26, %v5282_v30 }
 0x45f   :  { %6835 = vmatprep.subr.bf16.mxu1 %v6975_v10  ;;  %v5469_v16 = vsel %vm2022_vm8, %v5355_v19, %v5408_v61  ;;  %v5300_v29 = vcombine.low %v5292_v6, %v5299_v33 }
 0x460   :  { %6166 = vmatprep.mubr.bf16.mxu0 %v5469_v16  ;;  %v5461_v14 = vsel %vm2022_vm8, %v5283_v8, %v5336_v9 }
 0x461   :  { %6742 = vmatpush3.bf16.msra.mxu0 %v6968_v13  ;;  %v5465_v42 = vsel %vm2022_vm8, %v5300_v29, %v5338_v31 }
 0x462   :  { %v5410_v11 = vpop.permute.xlu0 %5409  ;;  %6843 = vmatpush3.bf16.msra.mxu1 %v6976_v46  ;;  %6743 = vmatprep.subr.bf16.mxu0 %v6970_v2 }
 0x463   :  { %v5473_v62 = vsel %vm2022_vm8, %v5372_v60, %v5410_v11  ;;  %6836 = vmatprep.subr.bf16.mxu1 %v6977_v63 }
 0x464   :  { %6174 = vmatprep.mubr.bf16.mxu1 %v5473_v62 }
 0x465   :  { %6744 = vmatpush3.bf16.msra.mxu0 %v6972_v34 }
 0x466   :  { %6844 = vmatpush3.bf16.msra.mxu1 %v6978_v7  ;;  %6745 = vmatprep.subr.bf16.mxu0 %v6973_v52 }
 0x469   :  { %6175 = vmatmul.mubr.bf16.vlgmr.msra.gmra.mrb[72].mxu1 %v5465_v42  ;;  %6746 = vmatpush3.bf16.msra.mxu0 %v6974_v25 }
 0x46a   :  { %6747 = vmatprep.subr.bf16.mxu0 %v6975_v10 }
 0x46d   :  { %6748 = vmatpush3.bf16.msra.mxu0 %v6976_v46 }
 0x46e   :  { %6749 = vmatprep.subr.bf16.mxu0 %v6977_v63 }
 0x471   :  { %6750 = vmatpush3.bf16.msra.mxu0 %v6978_v7 }
 0x474   :  { %6167 = vmatmul.mubr.bf16.vlgmr.msra.gmra.mrb[80].mxu0 %v5461_v14 }
 0x507   :  { %v6667_v50 = vpop.f32.mrb[64].mxu0 }
 0x508   :  { %v6668_v53 = vpop.f32.mrb[65].mxu0 }
 0x509   :  { %v6669_v1 = vadd.f32 %v6668_v53, %v6667_v50  ;;  %v6670_v5 = vpop.f32.mrb[66].mxu0 }
 0x50a   :  { %v6671_v40 = vpop.f32.mrb[67].mxu0 }
 0x50b   :  { %v6672_v0 = vadd.f32 %v6671_v40, %v6670_v5 }
 0x50f   :  { %v6673_v15 = vpop.f32.mrb[68].mxu0 }
 0x510   :  { %v6674_v27 = vpop.f32.mrb[69].mxu0 }
 0x511   :  { %v6675_v38 = vadd.f32 %v6674_v27, %v6673_v15  ;;  %v6676_v59 = vpop.f32.mrb[70].mxu0 }
 0x512   :  { %v6677_v47 = vpop.f32.mrb[71].mxu0 }
 0x513   :  { %v6678_v45 = vadd.f32 %v6677_v47, %v6676_v59 }
 0x51c   :  { %v6695_v49 = vpop.f32.mrb[64].mxu1 }
 0x51d   :  { %v6696_v36 = vpop.f32.mrb[65].mxu1 }
 0x51e   :  { %v6697_v13 = vadd.f32 %v6696_v36, %v6695_v49  ;;  %v6698_v12 = vpop.f32.mrb[66].mxu1 }
 0x51f   :  { %v6699_v58 = vpop.f32.mrb[67].mxu1 }
 0x520   :  { %v6071_v2 = vadd.f32 %v6697_v13, %v6669_v1  ;;  %v6700_v44 = vadd.f32 %v6699_v58, %v6698_v12 }
 0x522   :  { %v6074_v20 = vadd.f32 %v6700_v44, %v6672_v0 }
 0x527   :  { %v6723_v23 = vpop.f32.mrb[72].mxu0 }
 0x528   :  { %v6724_v56 = vpop.f32.mrb[73].mxu0 }
 0x529   :  { %v6725_v4 = vadd.f32 %v6724_v56, %v6723_v23  ;;  %v6726_v34 = vpop.f32.mrb[74].mxu0 }
 0x52a   :  { %v6727_v52 = vpop.f32.mrb[75].mxu0 }
 0x52b   :  { %v6120_v18 = vadd.f32 %v6725_v4, %v6071_v2  ;;  %v6728_v35 = vadd.f32 %v6727_v52, %v6726_v34 }
 0x52d   :  { %v6123_v37 = vadd.f32 %v6728_v35, %v6074_v20 }
 0x52f   :  { %v6729_v24 = vpop.f32.mrb[76].mxu0 }
 0x530   :  { %v6701_v39 = vpop.f32.mrb[68].mxu1  ;;  %v6730_v21 = vpop.f32.mrb[77].mxu0 }
 0x531   :  { %v6702_v51 = vpop.f32.mrb[69].mxu1  ;;  %v6731_v25 = vadd.f32 %v6730_v21, %v6729_v24  ;;  %v6732_v57 = vpop.f32.mrb[78].mxu0 }
 0x532   :  { %v6703_v10 = vadd.f32 %v6702_v51, %v6701_v39  ;;  %v6704_v41 = vpop.f32.mrb[70].mxu1  ;;  %v6733_v3 = vpop.f32.mrb[79].mxu0  ;;  %v6489_v51 = vld [vmem:[%s9662_s7] ss:$0 sm:$0xff] }
 0x533   :  { %v6705_v22 = vpop.f32.mrb[71].mxu1  ;;  %v6734_v32 = vadd.f32 %v6733_v3, %v6732_v57 }
 0x534   :  { %v6079_v19 = vadd.f32 %v6703_v10, %v6675_v38  ;;  %v6706_v43 = vadd.f32 %v6705_v22, %v6704_v41 }
 0x536   :  { %v6082_v28 = vadd.f32 %v6706_v43, %v6678_v45  ;;  %v6128_v61 = vadd.f32 %v6731_v25, %v6079_v19 }
 0x538   :  { %v6131_v46 = vadd.f32 %v6734_v32, %v6082_v28 }
 0x53c   :  { %v6757_v9 = vpop.f32.mrb[72].mxu1 }
 0x53d   :  { %v6758_v63 = vpop.f32.mrb[73].mxu1 }
 0x53e   :  { %v6759_v16 = vadd.f32 %v6758_v63, %v6757_v9  ;;  %v6760_v60 = vpop.f32.mrb[74].mxu1 }
 0x53f   :  { %v6761_v6 = vpop.f32.mrb[75].mxu1 }
 0x540   :  { %v6177_v33 = vadd.f32 %v6759_v16, %v6128_v61  ;;  %v6762_v11 = vadd.f32 %v6761_v6, %v6760_v60 }
 0x542   :  { %v6180_v7 = vadd.f32 %v6762_v11, %v6131_v46  ;;  %v6243_v46 = vld [vmem:[%s9663_s8 + $0x8] sm:$0xff] }
 0x547   :  { %v6751_v62 = vpop.f32.mrb[80].mxu0 }
 0x548   :  { %v6752_v31 = vpop.f32.mrb[81].mxu0 }
 0x549   :  { %v6753_v29 = vadd.f32 %v6752_v31, %v6751_v62  ;;  %v6754_v42 = vpop.f32.mrb[82].mxu0  ;;  %v9956_v31 = vlaneseq }
 0x54a   :  { %v6755_v48 = vpop.f32.mrb[83].mxu0 }
 0x54b   :  { %v6169_v55 = vadd.f32 %v6753_v29, %v6120_v18  ;;  %v6756_v26 = vadd.f32 %v6755_v48, %v6754_v42  ;;  %v6261_v29 = vand.u32 127, %v9956_v31 }
 0x54d   :  { %v6172_v30 = vadd.f32 %v6756_v26, %v6123_v37  ;;  %v6183_v37 = vld [vmem:[%s9661_s6] sm:$0x1]  ;;  %v6266_v42 = vadd.s32 4294967288, %v6261_v29  ;;  %v6264_v26 = vsub.s32 %v6261_v29, %v9950_v17 }
 0x54f   :  { %v6185_v8 = vadd.f32 %v6172_v30, %v6169_v55 }
 0x551   :  { %v6186_v14 = vadd.f32 %v6185_v8, %v6177_v33 }
 0x553   :  { %v6187_v50 = vadd.f32 %v6186_v14, %v6180_v7 }
 0x555   :  { %v6188_v53 = vrot.slane %v6187_v50, 4 }
 0x557   :  { %v6189_v1 = vadd.f32 %v6188_v53, %v6187_v50 }
 0x559   :  { %v6190_v5 = vrot.slane %v6189_v1, 2 }
 0x55b   :  { %v6191_v40 = vadd.f32 %v6190_v5, %v6189_v1 }
 0x55d   :  { %v6192_v0 = vrot.slane %v6191_v40, 1 }
 0x55f   :  { %v6193_v15 = vadd.f32 %v6192_v0, %v6191_v40 }
 0x561   :  { %v6194_v27 = vmul.f32 0.03125, %v6193_v15 }
 0x563   :  { %v6195_v38 = vsub.f32 %v6169_v55, %v6194_v27  ;;  %v6196_v59 = vsub.f32 %v6172_v30, %v6194_v27  ;;  %v6197_v47 = vsub.f32 %v6177_v33, %v6194_v27  ;;  %v6198_v45 = vsub.f32 %v6180_v7, %v6194_v27 }
 0x564   :  { %v6269_v55 = vsub.s32 %v6266_v42, %v9950_v17 }
 0x565   :  { %v6199_v49 = vmul.f32 %v6195_v38, %v6195_v38  ;;  %v6200_v36 = vmul.f32 %v6196_v59, %v6196_v59  ;;  %v6201_v13 = vmul.f32 %v6197_v47, %v6197_v47  ;;  %v6202_v58 = vmul.f32 %v6198_v45, %v6198_v45 }
 0x567   :  { %v6203_v12 = vadd.f32 %v6200_v36, %v6199_v49 }
 0x569   :  { %v6204_v2 = vadd.f32 %v6203_v12, %v6201_v13 }
 0x56b   :  { %v6205_v44 = vadd.f32 %v6204_v2, %v6202_v58 }
 0x56d   :  { %v6206_v20 = vrot.slane %v6205_v44, 4 }
 0x56f   :  { %v6207_v23 = vadd.f32 %v6206_v20, %v6205_v44 }
 0x571   :  { %v6208_v56 = vrot.slane %v6207_v23, 2 }
 0x573   :  { %v6209_v4 = vadd.f32 %v6208_v56, %v6207_v23 }
 0x575   :  { %v6210_v34 = vrot.slane %v6209_v4, 1 }
 0x577   :  { %v6211_v52 = vadd.f32 %v6210_v34, %v6209_v4 }
 0x579   :  { %v6212_v18 = vmul.f32 0.03125, %v6211_v52 }
 0x57b   :  { %v6213_v35 = vadd.f32 1e-05, %v6212_v18 }
 0x57d   :  { %6981 = vrsqrt.f32 %v6213_v35 }
 0x587   :  { %v6982_v24 = vpop.eup %6981 }
 0x588   :  { %v6215_v39 = vmul.f32 %v6982_v24, %v6183_v37 }
 0x58a   :  { %v6219_v21 = vrot.slane %v6215_v39, %v4083_v54  ;;  %v6242_v54 = vld [vmem:[%s9663_s8] sm:$0xff] }
 0x58c   :  { %v6221_v25 = vmul.f32 %v6219_v21, %v6196_v59  ;;  %v6220_v57 = vmul.f32 %v6219_v21, %v6195_v38  ;;  %v6222_v10 = vmul.f32 %v6219_v21, %v6197_v47  ;;  %v6223_v41 = vmul.f32 %v6219_v21, %v6198_v45 }
 0x58e   :  { %v6231_v3 = vadd.f32 %v6489_v51, %v6221_v25  ;;  %v6230_v22 = vadd.f32 %v6489_v51, %v6220_v57  ;;  %v6232_v32 = vadd.f32 %v6489_v51, %v6222_v10  ;;  %v6233_v61 = vadd.f32 %v6489_v51, %v6223_v41 }
 0x590   :  { %v6235_v19 = vmul.f32 0.2, %v6231_v3  ;;  %v6234_v43 = vmul.f32 0.2, %v6230_v22  ;;  %v6236_v28 = vmul.f32 0.2, %v6232_v32 }
 0x591   :  { %v6237_v33 = vmul.f32 0.2, %v6233_v61 }
 0x592   :  { %v6239_v9 = vmax.f32 %v6231_v3, %v6235_v19  ;;  %v6238_v63 = vmax.f32 %v6230_v22, %v6234_v43  ;;  %v6240_v6 = vmax.f32 %v6232_v32, %v6236_v28 }
 0x593   :  { %v6241_v7 = vmax.f32 %v6233_v61, %v6237_v33 }
 0x594   :  { %v6245_v16 = vmul.f32 %v6243_v46, %v6239_v9  ;;  %v6244_v60 = vmul.f32 %v6242_v54, %v6238_v63  ;;  %v6246_v11 = vmul.f32 %v6242_v54, %v6240_v6 }
 0x595   :  { %v6247_v62 = vmul.f32 %v6243_v46, %v6241_v7 }
 0x596   :  { %6250 = vadd.xlane.f32.xlu1 %v6245_v16  ;;  %6248 = vadd.xlane.f32.xlu0 %v6244_v60 }
 0x59a   :  { %6252 = vadd.xlane.f32.xlu0 %v6246_v11 }
 0x59e   :  { %6254 = vadd.xlane.f32.xlu0 %v6247_v62 }
 0x623   :  { %v6249_v48 = vpop.xlane.xlu0 %6248  ;;  %v6251_v30 = vpop.xlane.xlu1 %6250 }
 0x624   :  { %v6270_v14 = vrot.slane %v6251_v30, %v6269_v55  ;;  %v6265_v50 = vrot.slane %v6249_v48, %v6264_v26 }
 0x626   :  { %v6272_v40 = vsel %vm6271_vm10, %v6270_v14, %v6265_v50 }
 0x627   :  { %v6253_v8 = vpop.xlane.xlu0 %6252 }
 0x628   :  { %v6276_v1 = vrot.slane %v6253_v8, %v6264_v26 }
 0x62b   :  { %v6255_v53 = vpop.xlane.xlu0 %6254 }
 0x62c   :  { %v6280_v5 = vrot.slane %v6255_v53, %v6269_v55 }
 0x62e   :  { %v6281_v0 = vsel %vm6271_vm10, %v6280_v5, %v6276_v1 }
 0x62f   :  { %v6283_v15 = vsel %vm6282_vm11, %v6281_v0, %v6272_v40 }
 0x630   :  { %v6286_v27 = vsel %vm6285_vm12, %v6283_v15, 0.0 }
 0x631   :  { %6287 = vadd.xlane.f32.xlu1 %v6286_v27 }
 0x6be   :  { %v6288_v38 = vpop.xlane.xlu1 %6287 }
 0x6bf   :  { %6290 = vst.msk [vmem:[%s9664_s9] sm:$0x3] %vm6289_vm13, %v6288_v38 }

</bundles_post_ra>
